<compile_context>
chip_gen: v7x
topology: tpu7x:2x2x1
jax: 0.10.0
libtpu: 0.0.40
codegen_flags: <defaults>
</compile_context>

<pallas_src>
import functools
import math

import jax
import jax.numpy as jnp
from jax import lax
from jax.experimental import pallas as pl
from jax.experimental.pallas import tpu as pltpu


def _layer_norm(x, a, b, eps):
    """Annotated-Transformer LayerNorm: a*(x-mean)/(std+eps)+b, unbiased std."""
    d = x.shape[-1]
    mean = jnp.mean(x, axis=-1, keepdims=True)
    var = jnp.sum((x - mean) ** 2, axis=-1, keepdims=True) * (1.0 / (d - 1))
    inv = pl.reciprocal(jnp.sqrt(var) + eps, approx=True)   # EUP slot, not VPU divide
    return a * (x - mean) * inv + b


def encoder_kernel(x_ref,
                   wqkv_ref, bqkv_ref, wo_ref, bo_ref,
                   w1_ref, b1_ref, w2_ref, b2_ref,
                   ln1a_ref, ln1b_ref, ln2a_ref, ln2b_ref,
                   lnfa_ref, lnfb_ref,
                   o_ref, *, n_layers, num_heads, eps, unrolled_layers):
    TB, S, D = x_ref.shape
    H = num_heads
    dk = D // H
    f32 = jnp.float32
    cdt = wqkv_ref.dtype          # compute dtype chosen by the wrapper (bf16)

    # Layers share identical params (clones of one initialized layer): load once.
    # Matmul weights arrive already in bf16 (no in-kernel casts / f32 copies).
    wqkv = wqkv_ref[...]          # (D, 3D)  [q|k|v] head-major cols, 1/sqrt(dk) folded into q
    bqkv = bqkv_ref[...]          # (1, 3D)  f32
    wo, bo = wo_ref[...], bo_ref[...]          # (D, D) bf16, (1, D) f32
    w1, b1 = w1_ref[...], b1_ref[...]          # (D, DFF) bf16, (1, DFF) f32
    w2, b2 = w2_ref[...], b2_ref[...]          # (DFF, D) bf16, (1, D) f32
    ln1a, ln1b = ln1a_ref[...], ln1b_ref[...]
    ln2a, ln2b = ln2a_ref[...], ln2b_ref[...]

    def to_heads(m2d):
        # (S, H*dk) -> (H, S, dk) via static lane slices + stack (no big transposes).
        return jnp.stack([m2d[:, h * dk:(h + 1) * dk] for h in range(H)], axis=0)

    def layer(x):
        # ---- SublayerConnection #1: x + SelfAttn(LayerNorm(x))   (dropout == identity)
        xn = _layer_norm(x, ln1a, ln1b, eps)                         # (TB, S, D) f32
        xn2d = xn.reshape(TB * S, D).astype(cdt)
        # Fused QKV projection: single lane-dense matmul, N = 3D (full MXU width).
        qkv = jnp.dot(xn2d, wqkv, preferred_element_type=f32) + bqkv  # (TB*S, 3D) f32

        ctx_rows = []
        for b in range(TB):                                   # static; TB is small
            row = qkv[b * S:(b + 1) * S, :]                   # (S, 3D)
            q = to_heads(row[:, 0:D]).astype(cdt)             # (H, S, dk) scale pre-folded
            k = to_heads(row[:, D:2 * D]).astype(cdt)
            v = to_heads(row[:, 2 * D:3 * D]).astype(cdt)
            s = jnp.einsum('hqf,hkf->hqk', q, k, preferred_element_type=f32)
            s = s - jnp.max(s, axis=-1, keepdims=True)
            p = jnp.exp(s)
            p = p * pl.reciprocal(jnp.sum(p, axis=-1, keepdims=True), approx=True)
            ctx = jnp.einsum('hqk,hkf->hqf', p.astype(cdt), v,
                             preferred_element_type=f32)      # (H, S, dk)
            # head-major concat back to (S, D) so the output projection is one matmul
            ctx_rows.append(jnp.concatenate([ctx[h] for h in range(H)], axis=-1))
        ctx2d = (ctx_rows[0] if TB == 1
                 else jnp.concatenate(ctx_rows, axis=0)).astype(cdt)   # (TB*S, D)
        # Single lane-dense output projection (K = D, N = D) instead of per-head sums.
        attn = jnp.dot(ctx2d, wo, preferred_element_type=f32) + bo     # (TB*S, D)
        x = x + attn.reshape(TB, S, D)

        # ---- SublayerConnection #2: x + FFN(LayerNorm(x))          (dropout == identity)
        xn2 = _layer_norm(x, ln2a, ln2b, eps).reshape(TB * S, D).astype(cdt)
        h1 = jnp.maximum(jnp.dot(xn2, w1, preferred_element_type=f32) + b1, 0.0)
        ff = jnp.dot(h1.astype(cdt), w2, preferred_element_type=f32) + b2
        return x + ff.reshape(TB, S, D)

    x = x_ref[...].astype(f32)    # activations stay resident across all layers

    if n_layers <= unrolled_layers:
        for _ in range(n_layers):             # static unroll for shallow stacks
            x = layer(x)
    else:
        x = lax.fori_loop(0, n_layers, lambda _, xc: layer(xc), x)

    # ---- final encoder LayerNorm
    o_ref[...] = _layer_norm(x, lnfa_ref[...], lnfb_ref[...], eps).astype(o_ref.dtype)


def encoder_forward(x, params, *, n_layers, num_heads, eps=1e-6,
                    compute_dtype=jnp.bfloat16, rows_per_block=1,
                    unrolled_layers=4):
    B, S, D = x.shape
    assert D % num_heads == 0, "d_model must be divisible by num_heads"
    assert B % rows_per_block == 0, "batch must divide rows_per_block"
    lp = params["layer"]
    dk = D // num_heads
    dff = lp["w1"].shape[1]
    f32 = jnp.float32
    scale = 1.0 / math.sqrt(dk)

    # One-time wrapper-side weight prep:
    #  * QKV fused into one lane-dense (D, 3D) weight (full MXU N width),
    #  * 1/sqrt(dk) folded into wq / bq,
    #  * all matmul weights pre-cast to bf16 (half the DMA bytes / VMEM residency).
    wqkv = jnp.concatenate([lp["wq"] * scale, lp["wk"], lp["wv"]],
                           axis=1).astype(compute_dtype)              # (D, 3D)
    bqkv = jnp.concatenate([lp["bq"] * scale, lp["bk"], lp["bv"]],
                           axis=1).astype(f32)                        # (1, 3D)
    weight_args = (
        wqkv, bqkv,
        lp["wo"].astype(compute_dtype), lp["bo"].astype(f32),
        lp["w1"].astype(compute_dtype), lp["b1"].astype(f32),
        lp["w2"].astype(compute_dtype), lp["b2"].astype(f32),
        lp["ln1_a"].astype(f32), lp["ln1_b"].astype(f32),
        lp["ln2_a"].astype(f32), lp["ln2_b"].astype(f32),
        params["norm_a"].astype(f32), params["norm_b"].astype(f32),
    )

    # Grid over batch rows. Keep grid length >= 2 (B >= 2*rows_per_block) so both
    # v7x TensorCores get work; "parallel" is a no-op on single-TC v5e/v6e.
    grid = (B // rows_per_block,)
    act_spec = pl.BlockSpec((rows_per_block, S, D), lambda b: (b, 0, 0))

    # VMEM budget derived from the actual resident footprint (weights single-buffered,
    # activation block double-buffered, plus in-kernel f32 intermediates).
    weight_bytes = sum(int(w.size) * w.dtype.itemsize for w in weight_args)
    act_bytes = 4 * rows_per_block * S * D * x.dtype.itemsize            # in+out, 2 bufs each
    scratch_bytes = (rows_per_block * S * (D + 3 * D + D + dff) * 4      # x, qkv, attn/ffn, hidden
                     + num_heads * S * S * 4)                            # score tile per row
    footprint = weight_bytes + act_bytes + scratch_bytes
    try:
        phys_vmem = pltpu.get_tpu_info().vmem_capacity_bytes
    except Exception:
        phys_vmem = 64 << 20          # assume the smallest generation (v7x per-TC)
    vmem_limit = int(min(max(1.5 * footprint + (1 << 20), 16 << 20), 0.75 * phys_vmem))

    flops = 2 * B * n_layers * (3 * S * D * D                 # fused QKV projection
                                + 2 * num_heads * S * S * dk  # scores + ctx
                                + S * D * D                   # output projection
                                + 2 * S * D * dff)            # feed-forward
    cost = pl.CostEstimate(
        flops=int(flops),
        transcendentals=int(n_layers * B * num_heads * S * S),
        bytes_accessed=int(2 * x.size * x.dtype.itemsize + weight_bytes),
    )

    kernel = functools.partial(encoder_kernel, n_layers=n_layers, num_heads=num_heads,
                               eps=eps, unrolled_layers=unrolled_layers)

    def make_call(weight_pipeline_mode):
        def full_spec(arr):
            idx = lambda b, _n=arr.ndim: (0,) * _n   # constant index_map -> fetched once
            if weight_pipeline_mode is None:
                return pl.BlockSpec(arr.shape, idx)
            return pl.BlockSpec(arr.shape, idx, pipeline_mode=weight_pipeline_mode)
        return pl.pallas_call(
            kernel,
            out_shape=jax.ShapeDtypeStruct((B, S, D), x.dtype),
            grid=grid,
            in_specs=[act_spec] + [full_spec(w) for w in weight_args],
            out_specs=act_spec,
            compiler_params=pltpu.CompilerParams(
                dimension_semantics=("parallel",),
                vmem_limit_bytes=vmem_limit),
            cost_estimate=cost,
        )

    try:
        # Single-buffer the weights: constant index_map means they are fetched once,
        # so default double-buffering would only double their resident VMEM.
        return jax.block_until_ready(make_call(pl.Buffered(1))(x, *weight_args))
    except Exception:
        # Fallback for JAX versions without BlockSpec(pipeline_mode=...).
        return make_call(None)(x, *weight_args)


def reference_forward(x, params, *, n_layers, num_heads, eps=1e-6):
    """Pure-JAX f32 reference mirroring the PyTorch SublayerConnection encoder."""
    lp = params["layer"]
    B, S, D = x.shape
    H = num_heads
    dk = D // H

    def ln(t, a, b):
        mean = jnp.mean(t, axis=-1, keepdims=True)
        var = jnp.sum((t - mean) ** 2, axis=-1, keepdims=True) / (D - 1)
        return a * (t - mean) / (jnp.sqrt(var) + eps) + b

    def attn(xn):
        def proj(w, bias):
            t = xn @ w + bias                                      # (B, S, D)
            return t.reshape(B, S, H, dk).transpose(0, 2, 1, 3)    # (B, H, S, dk)
        q = proj(lp["wq"], lp["bq"])
        k = proj(lp["wk"], lp["bk"])
        v = proj(lp["wv"], lp["bv"])
        s = jnp.einsum('bhqd,bhkd->bhqk', q, k) / math.sqrt(dk)
        p = jax.nn.softmax(s, axis=-1)
        ctx = jnp.einsum('bhqk,bhkd->bhqd', p, v)
        ctx = ctx.transpose(0, 2, 1, 3).reshape(B, S, D)
        return ctx @ lp["wo"] + lp["bo"]

    def ffn(xn):
        return jnp.maximum(xn @ lp["w1"] + lp["b1"], 0.0) @ lp["w2"] + lp["b2"]

    for _ in range(n_layers):
        x = x + attn(ln(x, lp["ln1_a"], lp["ln1_b"]))       # SublayerConnection #1
        x = x + ffn(ln(x, lp["ln2_a"], lp["ln2_b"]))        # SublayerConnection #2
    return ln(x, params["norm_a"], params["norm_b"])


if __name__ == "__main__":
    B, S, D, H, DFF, N_LAYERS = 2, 8, 32, 4, 64, 2
    key = jax.random.PRNGKey(0)
    keys = jax.random.split(key, 13)

    def nrm(k, shape):
        return jax.random.normal(k, shape, jnp.float32) * 0.05

    layer_params = dict(
        wq=nrm(keys[0], (D, D)),    bq=nrm(keys[1], (1, D)),
        wk=nrm(keys[2], (D, D)),    bk=nrm(keys[3], (1, D)),
        wv=nrm(keys[4], (D, D)),    bv=nrm(keys[5], (1, D)),
        wo=nrm(keys[6], (D, D)),    bo=nrm(keys[7], (1, D)),
        w1=nrm(keys[8], (D, DFF)),  b1=nrm(keys[9], (1, DFF)),
        w2=nrm(keys[10], (DFF, D)), b2=nrm(keys[11], (1, D)),
        # SublayerConnection LayerNorms initialize as ones / zeros (as in the module).
        ln1_a=jnp.ones((1, D), jnp.float32), ln1_b=jnp.zeros((1, D), jnp.float32),
        ln2_a=jnp.ones((1, D), jnp.float32), ln2_b=jnp.zeros((1, D), jnp.float32),
    )
    params = dict(
        layer=layer_params,
        norm_a=jnp.ones((1, D), jnp.float32),
        norm_b=jnp.zeros((1, D), jnp.float32),
    )

    x = jax.random.normal(keys[12], (B, S, D), jnp.float32)

    out = encoder_forward(x, params, n_layers=N_LAYERS, num_heads=H)
    out = jax.block_until_ready(out)

    ref = reference_forward(x, params, n_layers=N_LAYERS, num_heads=H)
    assert out.shape == (B, S, D)
    assert bool(jnp.all(jnp.isfinite(out)))
    max_err = float(jnp.max(jnp.abs(out - ref)))
    # bf16 matmuls + approx reciprocals vs. f32 reference -> tolerance check.
    assert max_err < 5e-2, f"max abs error vs reference: {max_err}"
    print("KERNEL_OK")
</pallas_src>

<mosaic_0001>
module attributes {stable_mosaic.version = 11 : i64} {
  func.func @encoder_kernel(%arg0: i32, %arg1: memref<1x8x32xf32, #tpu.memory_space<vmem>>, %arg2: memref<32x96xbf16, #tpu.memory_space<vmem>>, %arg3: memref<1x96xf32, #tpu.memory_space<vmem>>, %arg4: memref<32x32xbf16, #tpu.memory_space<vmem>>, %arg5: memref<1x32xf32, #tpu.memory_space<vmem>>, %arg6: memref<32x64xbf16, #tpu.memory_space<vmem>>, %arg7: memref<1x64xf32, #tpu.memory_space<vmem>>, %arg8: memref<64x32xbf16, #tpu.memory_space<vmem>>, %arg9: memref<1x32xf32, #tpu.memory_space<vmem>>, %arg10: memref<1x32xf32, #tpu.memory_space<vmem>>, %arg11: memref<1x32xf32, #tpu.memory_space<vmem>>, %arg12: memref<1x32xf32, #tpu.memory_space<vmem>>, %arg13: memref<1x32xf32, #tpu.memory_space<vmem>>, %arg14: memref<1x32xf32, #tpu.memory_space<vmem>>, %arg15: memref<1x32xf32, #tpu.memory_space<vmem>>, %arg16: memref<1x8x32xf32, #tpu.memory_space<vmem>>) attributes {dimension_semantics = [#tpu.dimension_semantics<parallel>], iteration_bounds = array<i64: 2>, scalar_prefetch = 0 : i64, scratch_operands = 0 : i64, tpu.core_type = #tpu.core_type<tc>, window_params = [{transform_indices = @transform_0, window_bounds = array<i64: 1, 8, 32>}, {pipeline_mode = #tpu.pipeline_mode<synchronous>, transform_indices = @transform_1, window_bounds = array<i64: 32, 96>}, {pipeline_mode = #tpu.pipeline_mode<synchronous>, transform_indices = @transform_2, window_bounds = array<i64: 1, 96>}, {pipeline_mode = #tpu.pipeline_mode<synchronous>, transform_indices = @transform_3, window_bounds = array<i64: 32, 32>}, {pipeline_mode = #tpu.pipeline_mode<synchronous>, transform_indices = @transform_4, window_bounds = array<i64: 1, 32>}, {pipeline_mode = #tpu.pipeline_mode<synchronous>, transform_indices = @transform_5, window_bounds = array<i64: 32, 64>}, {pipeline_mode = #tpu.pipeline_mode<synchronous>, transform_indices = @transform_6, window_bounds = array<i64: 1, 64>}, {pipeline_mode = #tpu.pipeline_mode<synchronous>, transform_indices = @transform_7, window_bounds = array<i64: 64, 32>}, {pipeline_mode = #tpu.pipeline_mode<synchronous>, transform_indices = @transform_8, window_bounds = array<i64: 1, 32>}, {pipeline_mode = #tpu.pipeline_mode<synchronous>, transform_indices = @transform_9, window_bounds = array<i64: 1, 32>}, {pipeline_mode = #tpu.pipeline_mode<synchronous>, transform_indices = @transform_10, window_bounds = array<i64: 1, 32>}, {pipeline_mode = #tpu.pipeline_mode<synchronous>, transform_indices = @transform_11, window_bounds = array<i64: 1, 32>}, {pipeline_mode = #tpu.pipeline_mode<synchronous>, transform_indices = @transform_12, window_bounds = array<i64: 1, 32>}, {pipeline_mode = #tpu.pipeline_mode<synchronous>, transform_indices = @transform_13, window_bounds = array<i64: 1, 32>}, {pipeline_mode = #tpu.pipeline_mode<synchronous>, transform_indices = @transform_14, window_bounds = array<i64: 1, 32>}, {transform_indices = @transform_15, window_bounds = array<i64: 1, 8, 32>}]} {
    %c0 = arith.constant 0 : index
    %c0_0 = arith.constant 0 : index
    %0 = vector.load %arg2[%c0, %c0_0] : memref<32x96xbf16, #tpu.memory_space<vmem>>, vector<32x96xbf16>
    %c0_1 = arith.constant 0 : index
    %c0_2 = arith.constant 0 : index
    %1 = vector.load %arg3[%c0_1, %c0_2] : memref<1x96xf32, #tpu.memory_space<vmem>>, vector<1x96xf32>
    %c0_3 = arith.constant 0 : index
    %c0_4 = arith.constant 0 : index
    %2 = vector.load %arg4[%c0_3, %c0_4] : memref<32x32xbf16, #tpu.memory_space<vmem>>, vector<32x32xbf16>
    %c0_5 = arith.constant 0 : index
    %c0_6 = arith.constant 0 : index
    %3 = vector.load %arg5[%c0_5, %c0_6] : memref<1x32xf32, #tpu.memory_space<vmem>>, vector<1x32xf32>
    %c0_7 = arith.constant 0 : index
    %c0_8 = arith.constant 0 : index
    %4 = vector.load %arg6[%c0_7, %c0_8] : memref<32x64xbf16, #tpu.memory_space<vmem>>, vector<32x64xbf16>
    %c0_9 = arith.constant 0 : index
    %c0_10 = arith.constant 0 : index
    %5 = vector.load %arg7[%c0_9, %c0_10] : memref<1x64xf32, #tpu.memory_space<vmem>>, vector<1x64xf32>
    %c0_11 = arith.constant 0 : index
    %c0_12 = arith.constant 0 : index
    %6 = vector.load %arg8[%c0_11, %c0_12] : memref<64x32xbf16, #tpu.memory_space<vmem>>, vector<64x32xbf16>
    %c0_13 = arith.constant 0 : index
    %c0_14 = arith.constant 0 : index
    %7 = vector.load %arg9[%c0_13, %c0_14] : memref<1x32xf32, #tpu.memory_space<vmem>>, vector<1x32xf32>
    %c0_15 = arith.constant 0 : index
    %c0_16 = arith.constant 0 : index
    %8 = vector.load %arg10[%c0_15, %c0_16] : memref<1x32xf32, #tpu.memory_space<vmem>>, vector<1x32xf32>
    %c0_17 = arith.constant 0 : index
    %c0_18 = arith.constant 0 : index
    %9 = vector.load %arg11[%c0_17, %c0_18] : memref<1x32xf32, #tpu.memory_space<vmem>>, vector<1x32xf32>
    %c0_19 = arith.constant 0 : index
    %c0_20 = arith.constant 0 : index
    %10 = vector.load %arg12[%c0_19, %c0_20] : memref<1x32xf32, #tpu.memory_space<vmem>>, vector<1x32xf32>
    %c0_21 = arith.constant 0 : index
    %c0_22 = arith.constant 0 : index
    %11 = vector.load %arg13[%c0_21, %c0_22] : memref<1x32xf32, #tpu.memory_space<vmem>>, vector<1x32xf32>
    %c0_23 = arith.constant 0 : index
    %c0_24 = arith.constant 0 : index
    %c0_25 = arith.constant 0 : index
    %12 = vector.load %arg1[%c0_23, %c0_24, %c0_25] : memref<1x8x32xf32, #tpu.memory_space<vmem>>, vector<1x8x32xf32>
    %cst = arith.constant dense<0.000000e+00> : vector<1x8xf32>
    %13 = vector.multi_reduction <add>, %12, %cst [2] : vector<1x8x32xf32> to vector<1x8xf32>
    %14 = vector.shape_cast %13 : vector<1x8xf32> to vector<1x8x1xf32>
    %cst_26 = arith.constant 3.200000e+01 : f32
    %15 = vector.broadcast %cst_26 : f32 to vector<1x8x1xf32>
    %16 = arith.divf %14, %15 : vector<1x8x1xf32>
    %17 = vector.broadcast %16 : vector<1x8x1xf32> to vector<1x8x32xf32>
    %18 = arith.subf %12, %17 : vector<1x8x32xf32>
    %19 = arith.mulf %18, %18 : vector<1x8x32xf32>
    %cst_27 = arith.constant dense<0.000000e+00> : vector<1x8xf32>
    %20 = vector.multi_reduction <add>, %19, %cst_27 [2] : vector<1x8x32xf32> to vector<1x8xf32>
    %21 = vector.shape_cast %20 : vector<1x8xf32> to vector<1x8x1xf32>
    %cst_28 = arith.constant 0.0322580636 : f32
    %22 = vector.broadcast %cst_28 : f32 to vector<1x8x1xf32>
    %23 = arith.mulf %21, %22 : vector<1x8x1xf32>
    %24 = math.sqrt %23 : vector<1x8x1xf32>
    %cst_29 = arith.constant 9.99999997E-7 : f32
    %25 = vector.broadcast %cst_29 : f32 to vector<1x8x1xf32>
    %26 = arith.addf %24, %25 : vector<1x8x1xf32>
    %27 = tpu.reciprocal %26 {approx = true} : vector<1x8x1xf32> -> vector<1x8x1xf32>
    %28 = vector.broadcast %16 : vector<1x8x1xf32> to vector<1x8x32xf32>
    %29 = arith.subf %12, %28 : vector<1x8x32xf32>
    %30 = vector.shape_cast %8 : vector<1x32xf32> to vector<1x1x32xf32>
    %31 = vector.broadcast %30 : vector<1x1x32xf32> to vector<1x8x32xf32>
    %32 = arith.mulf %31, %29 : vector<1x8x32xf32>
    %33 = vector.broadcast %27 : vector<1x8x1xf32> to vector<1x8x32xf32>
    %34 = arith.mulf %32, %33 : vector<1x8x32xf32>
    %35 = vector.shape_cast %9 : vector<1x32xf32> to vector<1x1x32xf32>
    %36 = vector.broadcast %35 : vector<1x1x32xf32> to vector<1x8x32xf32>
    %37 = arith.addf %34, %36 : vector<1x8x32xf32>
    %38 = vector.shape_cast %37 : vector<1x8x32xf32> to vector<8x32xf32>
    %39 = arith.truncf %38 : vector<8x32xf32> to vector<8x32xbf16>
    %cst_30 = arith.constant dense<0.000000e+00> : vector<8x96xf32>
    %40 = tpu.matmul %39, %0, %cst_30 {dimension_numbers = #tpu.dot_dimension_numbers<[1], [0], [0], [1], [0, 0, 1, 1], [], []>} : vector<8x32xbf16>, vector<32x96xbf16>, vector<8x96xf32> -> vector<8x96xf32>
    %41 = vector.broadcast %1 : vector<1x96xf32> to vector<8x96xf32>
    %42 = arith.addf %40, %41 : vector<8x96xf32>
    %43 = vector.extract_strided_slice %42 {offsets = [0, 0], sizes = [8, 32], strides = [1, 1]} : vector<8x96xf32> to vector<8x32xf32>
    %44 = vector.extract_strided_slice %43 {offsets = [0, 0], sizes = [8, 8], strides = [1, 1]} : vector<8x32xf32> to vector<8x8xf32>
    %45 = vector.extract_strided_slice %43 {offsets = [0, 8], sizes = [8, 8], strides = [1, 1]} : vector<8x32xf32> to vector<8x8xf32>
    %46 = vector.extract_strided_slice %43 {offsets = [0, 16], sizes = [8, 8], strides = [1, 1]} : vector<8x32xf32> to vector<8x8xf32>
    %47 = vector.extract_strided_slice %43 {offsets = [0, 24], sizes = [8, 8], strides = [1, 1]} : vector<8x32xf32> to vector<8x8xf32>
    %48 = vector.shape_cast %44 : vector<8x8xf32> to vector<1x8x8xf32>
    %49 = vector.shape_cast %45 : vector<8x8xf32> to vector<1x8x8xf32>
    %50 = vector.shape_cast %46 : vector<8x8xf32> to vector<1x8x8xf32>
    %51 = vector.shape_cast %47 : vector<8x8xf32> to vector<1x8x8xf32>
    %52 = tpu.concatenate %48, %49, %50, %51 in 0 : vector<1x8x8xf32>, vector<1x8x8xf32>, vector<1x8x8xf32>, vector<1x8x8xf32> -> vector<4x8x8xf32>
    %53 = arith.truncf %52 : vector<4x8x8xf32> to vector<4x8x8xbf16>
    %54 = vector.extract_strided_slice %42 {offsets = [0, 32], sizes = [8, 32], strides = [1, 1]} : vector<8x96xf32> to vector<8x32xf32>
    %55 = vector.extract_strided_slice %54 {offsets = [0, 0], sizes = [8, 8], strides = [1, 1]} : vector<8x32xf32> to vector<8x8xf32>
    %56 = vector.extract_strided_slice %54 {offsets = [0, 8], sizes = [8, 8], strides = [1, 1]} : vector<8x32xf32> to vector<8x8xf32>
    %57 = vector.extract_strided_slice %54 {offsets = [0, 16], sizes = [8, 8], strides = [1, 1]} : vector<8x32xf32> to vector<8x8xf32>
    %58 = vector.extract_strided_slice %54 {offsets = [0, 24], sizes = [8, 8], strides = [1, 1]} : vector<8x32xf32> to vector<8x8xf32>
    %59 = vector.shape_cast %55 : vector<8x8xf32> to vector<1x8x8xf32>
    %60 = vector.shape_cast %56 : vector<8x8xf32> to vector<1x8x8xf32>
    %61 = vector.shape_cast %57 : vector<8x8xf32> to vector<1x8x8xf32>
    %62 = vector.shape_cast %58 : vector<8x8xf32> to vector<1x8x8xf32>
    %63 = tpu.concatenate %59, %60, %61, %62 in 0 : vector<1x8x8xf32>, vector<1x8x8xf32>, vector<1x8x8xf32>, vector<1x8x8xf32> -> vector<4x8x8xf32>
    %64 = arith.truncf %63 : vector<4x8x8xf32> to vector<4x8x8xbf16>
    %65 = vector.extract_strided_slice %42 {offsets = [0, 64], sizes = [8, 32], strides = [1, 1]} : vector<8x96xf32> to vector<8x32xf32>
    %66 = vector.extract_strided_slice %65 {offsets = [0, 0], sizes = [8, 8], strides = [1, 1]} : vector<8x32xf32> to vector<8x8xf32>
    %67 = vector.extract_strided_slice %65 {offsets = [0, 8], sizes = [8, 8], strides = [1, 1]} : vector<8x32xf32> to vector<8x8xf32>
    %68 = vector.extract_strided_slice %65 {offsets = [0, 16], sizes = [8, 8], strides = [1, 1]} : vector<8x32xf32> to vector<8x8xf32>
    %69 = vector.extract_strided_slice %65 {offsets = [0, 24], sizes = [8, 8], strides = [1, 1]} : vector<8x32xf32> to vector<8x8xf32>
    %70 = vector.shape_cast %66 : vector<8x8xf32> to vector<1x8x8xf32>
    %71 = vector.shape_cast %67 : vector<8x8xf32> to vector<1x8x8xf32>
    %72 = vector.shape_cast %68 : vector<8x8xf32> to vector<1x8x8xf32>
    %73 = vector.shape_cast %69 : vector<8x8xf32> to vector<1x8x8xf32>
    %74 = tpu.concatenate %70, %71, %72, %73 in 0 : vector<1x8x8xf32>, vector<1x8x8xf32>, vector<1x8x8xf32>, vector<1x8x8xf32> -> vector<4x8x8xf32>
    %75 = arith.truncf %74 : vector<4x8x8xf32> to vector<4x8x8xbf16>
    "tpu.trace_start"() <{level = 10 : i32, message = "hqf,hkf->hqk"}> : () -> ()
    %cst_31 = arith.constant dense<0.000000e+00> : vector<4x8x8xf32>
    %76 = tpu.matmul %53, %64, %cst_31 {dimension_numbers = #tpu.dot_dimension_numbers<[2], [2], [1], [1], [0, 0, 0, 1, 1, 1], [0], [0]>} : vector<4x8x8xbf16>, vector<4x8x8xbf16>, vector<4x8x8xf32> -> vector<4x8x8xf32>
    "tpu.trace_stop"() : () -> ()
    %cst_32 = arith.constant dense<0xFF800000> : vector<4x8xf32>
    %77 = vector.multi_reduction <maximumf>, %76, %cst_32 [2] : vector<4x8x8xf32> to vector<4x8xf32>
    %78 = vector.shape_cast %77 : vector<4x8xf32> to vector<4x8x1xf32>
    %79 = vector.broadcast %78 : vector<4x8x1xf32> to vector<4x8x8xf32>
    %80 = arith.subf %76, %79 : vector<4x8x8xf32>
    %81 = math.exp %80 : vector<4x8x8xf32>
    %cst_33 = arith.constant dense<0.000000e+00> : vector<4x8xf32>
    %82 = vector.multi_reduction <add>, %81, %cst_33 [2] : vector<4x8x8xf32> to vector<4x8xf32>
    %83 = vector.shape_cast %82 : vector<4x8xf32> to vector<4x8x1xf32>
    %84 = tpu.reciprocal %83 {approx = true} : vector<4x8x1xf32> -> vector<4x8x1xf32>
    %85 = vector.broadcast %84 : vector<4x8x1xf32> to vector<4x8x8xf32>
    %86 = arith.mulf %81, %85 : vector<4x8x8xf32>
    %87 = arith.truncf %86 : vector<4x8x8xf32> to vector<4x8x8xbf16>
    "tpu.trace_start"() <{level = 10 : i32, message = "hqk,hkf->hqf"}> : () -> ()
    %cst_34 = arith.constant dense<0.000000e+00> : vector<4x8x8xf32>
    %88 = tpu.matmul %87, %75, %cst_34 {dimension_numbers = #tpu.dot_dimension_numbers<[2], [1], [1], [2], [0, 0, 0, 1, 1, 2], [0], [0]>} : vector<4x8x8xbf16>, vector<4x8x8xbf16>, vector<4x8x8xf32> -> vector<4x8x8xf32>
    "tpu.trace_stop"() : () -> ()
    %89 = vector.extract_strided_slice %88 {offsets = [0, 0, 0], sizes = [1, 8, 8], strides = [1, 1, 1]} : vector<4x8x8xf32> to vector<1x8x8xf32>
    %90 = vector.shape_cast %89 : vector<1x8x8xf32> to vector<8x8xf32>
    %91 = vector.extract_strided_slice %88 {offsets = [1, 0, 0], sizes = [1, 8, 8], strides = [1, 1, 1]} : vector<4x8x8xf32> to vector<1x8x8xf32>
    %92 = vector.shape_cast %91 : vector<1x8x8xf32> to vector<8x8xf32>
    %93 = vector.extract_strided_slice %88 {offsets = [2, 0, 0], sizes = [1, 8, 8], strides = [1, 1, 1]} : vector<4x8x8xf32> to vector<1x8x8xf32>
    %94 = vector.shape_cast %93 : vector<1x8x8xf32> to vector<8x8xf32>
    %95 = vector.extract_strided_slice %88 {offsets = [3, 0, 0], sizes = [1, 8, 8], strides = [1, 1, 1]} : vector<4x8x8xf32> to vector<1x8x8xf32>
    %96 = vector.shape_cast %95 : vector<1x8x8xf32> to vector<8x8xf32>
    %97 = tpu.concatenate %90, %92, %94, %96 in 1 : vector<8x8xf32>, vector<8x8xf32>, vector<8x8xf32>, vector<8x8xf32> -> vector<8x32xf32>
    %98 = arith.truncf %97 : vector<8x32xf32> to vector<8x32xbf16>
    %cst_35 = arith.constant dense<0.000000e+00> : vector<8x32xf32>
    %99 = tpu.matmul %98, %2, %cst_35 {dimension_numbers = #tpu.dot_dimension_numbers<[1], [0], [0], [1], [0, 0, 1, 1], [], []>} : vector<8x32xbf16>, vector<32x32xbf16>, vector<8x32xf32> -> vector<8x32xf32>
    %100 = vector.broadcast %3 : vector<1x32xf32> to vector<8x32xf32>
    %101 = arith.addf %99, %100 : vector<8x32xf32>
    %102 = vector.shape_cast %101 : vector<8x32xf32> to vector<1x8x32xf32>
    %103 = arith.addf %12, %102 : vector<1x8x32xf32>
    %cst_36 = arith.constant dense<0.000000e+00> : vector<1x8xf32>
    %104 = vector.multi_reduction <add>, %103, %cst_36 [2] : vector<1x8x32xf32> to vector<1x8xf32>
    %105 = vector.shape_cast %104 : vector<1x8xf32> to vector<1x8x1xf32>
    %cst_37 = arith.constant 3.200000e+01 : f32
    %106 = vector.broadcast %cst_37 : f32 to vector<1x8x1xf32>
    %107 = arith.divf %105, %106 : vector<1x8x1xf32>
    %108 = vector.broadcast %107 : vector<1x8x1xf32> to vector<1x8x32xf32>
    %109 = arith.subf %103, %108 : vector<1x8x32xf32>
    %110 = arith.mulf %109, %109 : vector<1x8x32xf32>
    %cst_38 = arith.constant dense<0.000000e+00> : vector<1x8xf32>
    %111 = vector.multi_reduction <add>, %110, %cst_38 [2] : vector<1x8x32xf32> to vector<1x8xf32>
    %112 = vector.shape_cast %111 : vector<1x8xf32> to vector<1x8x1xf32>
    %cst_39 = arith.constant 0.0322580636 : f32
    %113 = vector.broadcast %cst_39 : f32 to vector<1x8x1xf32>
    %114 = arith.mulf %112, %113 : vector<1x8x1xf32>
    %115 = math.sqrt %114 : vector<1x8x1xf32>
    %cst_40 = arith.constant 9.99999997E-7 : f32
    %116 = vector.broadcast %cst_40 : f32 to vector<1x8x1xf32>
    %117 = arith.addf %115, %116 : vector<1x8x1xf32>
    %118 = tpu.reciprocal %117 {approx = true} : vector<1x8x1xf32> -> vector<1x8x1xf32>
    %119 = vector.broadcast %107 : vector<1x8x1xf32> to vector<1x8x32xf32>
    %120 = arith.subf %103, %119 : vector<1x8x32xf32>
    %121 = vector.shape_cast %10 : vector<1x32xf32> to vector<1x1x32xf32>
    %122 = vector.broadcast %121 : vector<1x1x32xf32> to vector<1x8x32xf32>
    %123 = arith.mulf %122, %120 : vector<1x8x32xf32>
    %124 = vector.broadcast %118 : vector<1x8x1xf32> to vector<1x8x32xf32>
    %125 = arith.mulf %123, %124 : vector<1x8x32xf32>
    %126 = vector.shape_cast %11 : vector<1x32xf32> to vector<1x1x32xf32>
    %127 = vector.broadcast %126 : vector<1x1x32xf32> to vector<1x8x32xf32>
    %128 = arith.addf %125, %127 : vector<1x8x32xf32>
    %129 = vector.shape_cast %128 : vector<1x8x32xf32> to vector<8x32xf32>
    %130 = arith.truncf %129 : vector<8x32xf32> to vector<8x32xbf16>
    %cst_41 = arith.constant dense<0.000000e+00> : vector<8x64xf32>
    %131 = tpu.matmul %130, %4, %cst_41 {dimension_numbers = #tpu.dot_dimension_numbers<[1], [0], [0], [1], [0, 0, 1, 1], [], []>} : vector<8x32xbf16>, vector<32x64xbf16>, vector<8x64xf32> -> vector<8x64xf32>
    %132 = vector.broadcast %5 : vector<1x64xf32> to vector<8x64xf32>
    %133 = arith.addf %131, %132 : vector<8x64xf32>
    %cst_42 = arith.constant 0.000000e+00 : f32
    %134 = vector.broadcast %cst_42 : f32 to vector<8x64xf32>
    %135 = arith.maximumf %133, %134 : vector<8x64xf32>
    %136 = arith.truncf %135 : vector<8x64xf32> to vector<8x64xbf16>
    %cst_43 = arith.constant dense<0.000000e+00> : vector<8x32xf32>
    %137 = tpu.matmul %136, %6, %cst_43 {dimension_numbers = #tpu.dot_dimension_numbers<[1], [0], [0], [1], [0, 0, 1, 1], [], []>} : vector<8x64xbf16>, vector<64x32xbf16>, vector<8x32xf32> -> vector<8x32xf32>
    %138 = vector.broadcast %7 : vector<1x32xf32> to vector<8x32xf32>
    %139 = arith.addf %137, %138 : vector<8x32xf32>
    %140 = vector.shape_cast %139 : vector<8x32xf32> to vector<1x8x32xf32>
    %141 = arith.addf %103, %140 : vector<1x8x32xf32>
    %cst_44 = arith.constant dense<0.000000e+00> : vector<1x8xf32>
    %142 = vector.multi_reduction <add>, %141, %cst_44 [2] : vector<1x8x32xf32> to vector<1x8xf32>
    %143 = vector.shape_cast %142 : vector<1x8xf32> to vector<1x8x1xf32>
    %cst_45 = arith.constant 3.200000e+01 : f32
    %144 = vector.broadcast %cst_45 : f32 to vector<1x8x1xf32>
    %145 = arith.divf %143, %144 : vector<1x8x1xf32>
    %146 = vector.broadcast %145 : vector<1x8x1xf32> to vector<1x8x32xf32>
    %147 = arith.subf %141, %146 : vector<1x8x32xf32>
    %148 = arith.mulf %147, %147 : vector<1x8x32xf32>
    %cst_46 = arith.constant dense<0.000000e+00> : vector<1x8xf32>
    %149 = vector.multi_reduction <add>, %148, %cst_46 [2] : vector<1x8x32xf32> to vector<1x8xf32>
    %150 = vector.shape_cast %149 : vector<1x8xf32> to vector<1x8x1xf32>
    %cst_47 = arith.constant 0.0322580636 : f32
    %151 = vector.broadcast %cst_47 : f32 to vector<1x8x1xf32>
    %152 = arith.mulf %150, %151 : vector<1x8x1xf32>
    %153 = math.sqrt %152 : vector<1x8x1xf32>
    %cst_48 = arith.constant 9.99999997E-7 : f32
    %154 = vector.broadcast %cst_48 : f32 to vector<1x8x1xf32>
    %155 = arith.addf %153, %154 : vector<1x8x1xf32>
    %156 = tpu.reciprocal %155 {approx = true} : vector<1x8x1xf32> -> vector<1x8x1xf32>
    %157 = vector.broadcast %145 : vector<1x8x1xf32> to vector<1x8x32xf32>
    %158 = arith.subf %141, %157 : vector<1x8x32xf32>
    %159 = vector.shape_cast %8 : vector<1x32xf32> to vector<1x1x32xf32>
    %160 = vector.broadcast %159 : vector<1x1x32xf32> to vector<1x8x32xf32>
    %161 = arith.mulf %160, %158 : vector<1x8x32xf32>
    %162 = vector.broadcast %156 : vector<1x8x1xf32> to vector<1x8x32xf32>
    %163 = arith.mulf %161, %162 : vector<1x8x32xf32>
    %164 = vector.shape_cast %9 : vector<1x32xf32> to vector<1x1x32xf32>
    %165 = vector.broadcast %164 : vector<1x1x32xf32> to vector<1x8x32xf32>
    %166 = arith.addf %163, %165 : vector<1x8x32xf32>
    %167 = vector.shape_cast %166 : vector<1x8x32xf32> to vector<8x32xf32>
    %168 = arith.truncf %167 : vector<8x32xf32> to vector<8x32xbf16>
    %cst_49 = arith.constant dense<0.000000e+00> : vector<8x96xf32>
    %169 = tpu.matmul %168, %0, %cst_49 {dimension_numbers = #tpu.dot_dimension_numbers<[1], [0], [0], [1], [0, 0, 1, 1], [], []>} : vector<8x32xbf16>, vector<32x96xbf16>, vector<8x96xf32> -> vector<8x96xf32>
    %170 = vector.broadcast %1 : vector<1x96xf32> to vector<8x96xf32>
    %171 = arith.addf %169, %170 : vector<8x96xf32>
    %172 = vector.extract_strided_slice %171 {offsets = [0, 0], sizes = [8, 32], strides = [1, 1]} : vector<8x96xf32> to vector<8x32xf32>
    %173 = vector.extract_strided_slice %172 {offsets = [0, 0], sizes = [8, 8], strides = [1, 1]} : vector<8x32xf32> to vector<8x8xf32>
    %174 = vector.extract_strided_slice %172 {offsets = [0, 8], sizes = [8, 8], strides = [1, 1]} : vector<8x32xf32> to vector<8x8xf32>
    %175 = vector.extract_strided_slice %172 {offsets = [0, 16], sizes = [8, 8], strides = [1, 1]} : vector<8x32xf32> to vector<8x8xf32>
    %176 = vector.extract_strided_slice %172 {offsets = [0, 24], sizes = [8, 8], strides = [1, 1]} : vector<8x32xf32> to vector<8x8xf32>
    %177 = vector.shape_cast %173 : vector<8x8xf32> to vector<1x8x8xf32>
    %178 = vector.shape_cast %174 : vector<8x8xf32> to vector<1x8x8xf32>
    %179 = vector.shape_cast %175 : vector<8x8xf32> to vector<1x8x8xf32>
    %180 = vector.shape_cast %176 : vector<8x8xf32> to vector<1x8x8xf32>
    %181 = tpu.concatenate %177, %178, %179, %180 in 0 : vector<1x8x8xf32>, vector<1x8x8xf32>, vector<1x8x8xf32>, vector<1x8x8xf32> -> vector<4x8x8xf32>
    %182 = arith.truncf %181 : vector<4x8x8xf32> to vector<4x8x8xbf16>
    %183 = vector.extract_strided_slice %171 {offsets = [0, 32], sizes = [8, 32], strides = [1, 1]} : vector<8x96xf32> to vector<8x32xf32>
    %184 = vector.extract_strided_slice %183 {offsets = [0, 0], sizes = [8, 8], strides = [1, 1]} : vector<8x32xf32> to vector<8x8xf32>
    %185 = vector.extract_strided_slice %183 {offsets = [0, 8], sizes = [8, 8], strides = [1, 1]} : vector<8x32xf32> to vector<8x8xf32>
    %186 = vector.extract_strided_slice %183 {offsets = [0, 16], sizes = [8, 8], strides = [1, 1]} : vector<8x32xf32> to vector<8x8xf32>
    %187 = vector.extract_strided_slice %183 {offsets = [0, 24], sizes = [8, 8], strides = [1, 1]} : vector<8x32xf32> to vector<8x8xf32>
    %188 = vector.shape_cast %184 : vector<8x8xf32> to vector<1x8x8xf32>
    %189 = vector.shape_cast %185 : vector<8x8xf32> to vector<1x8x8xf32>
    %190 = vector.shape_cast %186 : vector<8x8xf32> to vector<1x8x8xf32>
    %191 = vector.shape_cast %187 : vector<8x8xf32> to vector<1x8x8xf32>
    %192 = tpu.concatenate %188, %189, %190, %191 in 0 : vector<1x8x8xf32>, vector<1x8x8xf32>, vector<1x8x8xf32>, vector<1x8x8xf32> -> vector<4x8x8xf32>
    %193 = arith.truncf %192 : vector<4x8x8xf32> to vector<4x8x8xbf16>
    %194 = vector.extract_strided_slice %171 {offsets = [0, 64], sizes = [8, 32], strides = [1, 1]} : vector<8x96xf32> to vector<8x32xf32>
    %195 = vector.extract_strided_slice %194 {offsets = [0, 0], sizes = [8, 8], strides = [1, 1]} : vector<8x32xf32> to vector<8x8xf32>
    %196 = vector.extract_strided_slice %194 {offsets = [0, 8], sizes = [8, 8], strides = [1, 1]} : vector<8x32xf32> to vector<8x8xf32>
    %197 = vector.extract_strided_slice %194 {offsets = [0, 16], sizes = [8, 8], strides = [1, 1]} : vector<8x32xf32> to vector<8x8xf32>
    %198 = vector.extract_strided_slice %194 {offsets = [0, 24], sizes = [8, 8], strides = [1, 1]} : vector<8x32xf32> to vector<8x8xf32>
    %199 = vector.shape_cast %195 : vector<8x8xf32> to vector<1x8x8xf32>
    %200 = vector.shape_cast %196 : vector<8x8xf32> to vector<1x8x8xf32>
    %201 = vector.shape_cast %197 : vector<8x8xf32> to vector<1x8x8xf32>
    %202 = vector.shape_cast %198 : vector<8x8xf32> to vector<1x8x8xf32>
    %203 = tpu.concatenate %199, %200, %201, %202 in 0 : vector<1x8x8xf32>, vector<1x8x8xf32>, vector<1x8x8xf32>, vector<1x8x8xf32> -> vector<4x8x8xf32>
    %204 = arith.truncf %203 : vector<4x8x8xf32> to vector<4x8x8xbf16>
    "tpu.trace_start"() <{level = 10 : i32, message = "hqf,hkf->hqk"}> : () -> ()
    %cst_50 = arith.constant dense<0.000000e+00> : vector<4x8x8xf32>
    %205 = tpu.matmul %182, %193, %cst_50 {dimension_numbers = #tpu.dot_dimension_numbers<[2], [2], [1], [1], [0, 0, 0, 1, 1, 1], [0], [0]>} : vector<4x8x8xbf16>, vector<4x8x8xbf16>, vector<4x8x8xf32> -> vector<4x8x8xf32>
    "tpu.trace_stop"() : () -> ()
    %cst_51 = arith.constant dense<0xFF800000> : vector<4x8xf32>
    %206 = vector.multi_reduction <maximumf>, %205, %cst_51 [2] : vector<4x8x8xf32> to vector<4x8xf32>
    %207 = vector.shape_cast %206 : vector<4x8xf32> to vector<4x8x1xf32>
    %208 = vector.broadcast %207 : vector<4x8x1xf32> to vector<4x8x8xf32>
    %209 = arith.subf %205, %208 : vector<4x8x8xf32>
    %210 = math.exp %209 : vector<4x8x8xf32>
    %cst_52 = arith.constant dense<0.000000e+00> : vector<4x8xf32>
    %211 = vector.multi_reduction <add>, %210, %cst_52 [2] : vector<4x8x8xf32> to vector<4x8xf32>
    %212 = vector.shape_cast %211 : vector<4x8xf32> to vector<4x8x1xf32>
    %213 = tpu.reciprocal %212 {approx = true} : vector<4x8x1xf32> -> vector<4x8x1xf32>
    %214 = vector.broadcast %213 : vector<4x8x1xf32> to vector<4x8x8xf32>
    %215 = arith.mulf %210, %214 : vector<4x8x8xf32>
    %216 = arith.truncf %215 : vector<4x8x8xf32> to vector<4x8x8xbf16>
    "tpu.trace_start"() <{level = 10 : i32, message = "hqk,hkf->hqf"}> : () -> ()
    %cst_53 = arith.constant dense<0.000000e+00> : vector<4x8x8xf32>
    %217 = tpu.matmul %216, %204, %cst_53 {dimension_numbers = #tpu.dot_dimension_numbers<[2], [1], [1], [2], [0, 0, 0, 1, 1, 2], [0], [0]>} : vector<4x8x8xbf16>, vector<4x8x8xbf16>, vector<4x8x8xf32> -> vector<4x8x8xf32>
    "tpu.trace_stop"() : () -> ()
    %218 = vector.extract_strided_slice %217 {offsets = [0, 0, 0], sizes = [1, 8, 8], strides = [1, 1, 1]} : vector<4x8x8xf32> to vector<1x8x8xf32>
    %219 = vector.shape_cast %218 : vector<1x8x8xf32> to vector<8x8xf32>
    %220 = vector.extract_strided_slice %217 {offsets = [1, 0, 0], sizes = [1, 8, 8], strides = [1, 1, 1]} : vector<4x8x8xf32> to vector<1x8x8xf32>
    %221 = vector.shape_cast %220 : vector<1x8x8xf32> to vector<8x8xf32>
    %222 = vector.extract_strided_slice %217 {offsets = [2, 0, 0], sizes = [1, 8, 8], strides = [1, 1, 1]} : vector<4x8x8xf32> to vector<1x8x8xf32>
    %223 = vector.shape_cast %222 : vector<1x8x8xf32> to vector<8x8xf32>
    %224 = vector.extract_strided_slice %217 {offsets = [3, 0, 0], sizes = [1, 8, 8], strides = [1, 1, 1]} : vector<4x8x8xf32> to vector<1x8x8xf32>
    %225 = vector.shape_cast %224 : vector<1x8x8xf32> to vector<8x8xf32>
    %226 = tpu.concatenate %219, %221, %223, %225 in 1 : vector<8x8xf32>, vector<8x8xf32>, vector<8x8xf32>, vector<8x8xf32> -> vector<8x32xf32>
    %227 = arith.truncf %226 : vector<8x32xf32> to vector<8x32xbf16>
    %cst_54 = arith.constant dense<0.000000e+00> : vector<8x32xf32>
    %228 = tpu.matmul %227, %2, %cst_54 {dimension_numbers = #tpu.dot_dimension_numbers<[1], [0], [0], [1], [0, 0, 1, 1], [], []>} : vector<8x32xbf16>, vector<32x32xbf16>, vector<8x32xf32> -> vector<8x32xf32>
    %229 = vector.broadcast %3 : vector<1x32xf32> to vector<8x32xf32>
    %230 = arith.addf %228, %229 : vector<8x32xf32>
    %231 = vector.shape_cast %230 : vector<8x32xf32> to vector<1x8x32xf32>
    %232 = arith.addf %141, %231 : vector<1x8x32xf32>
    %cst_55 = arith.constant dense<0.000000e+00> : vector<1x8xf32>
    %233 = vector.multi_reduction <add>, %232, %cst_55 [2] : vector<1x8x32xf32> to vector<1x8xf32>
    %234 = vector.shape_cast %233 : vector<1x8xf32> to vector<1x8x1xf32>
    %cst_56 = arith.constant 3.200000e+01 : f32
    %235 = vector.broadcast %cst_56 : f32 to vector<1x8x1xf32>
    %236 = arith.divf %234, %235 : vector<1x8x1xf32>
    %237 = vector.broadcast %236 : vector<1x8x1xf32> to vector<1x8x32xf32>
    %238 = arith.subf %232, %237 : vector<1x8x32xf32>
    %239 = arith.mulf %238, %238 : vector<1x8x32xf32>
    %cst_57 = arith.constant dense<0.000000e+00> : vector<1x8xf32>
    %240 = vector.multi_reduction <add>, %239, %cst_57 [2] : vector<1x8x32xf32> to vector<1x8xf32>
    %241 = vector.shape_cast %240 : vector<1x8xf32> to vector<1x8x1xf32>
    %cst_58 = arith.constant 0.0322580636 : f32
    %242 = vector.broadcast %cst_58 : f32 to vector<1x8x1xf32>
    %243 = arith.mulf %241, %242 : vector<1x8x1xf32>
    %244 = math.sqrt %243 : vector<1x8x1xf32>
    %cst_59 = arith.constant 9.99999997E-7 : f32
    %245 = vector.broadcast %cst_59 : f32 to vector<1x8x1xf32>
    %246 = arith.addf %244, %245 : vector<1x8x1xf32>
    %247 = tpu.reciprocal %246 {approx = true} : vector<1x8x1xf32> -> vector<1x8x1xf32>
    %248 = vector.broadcast %236 : vector<1x8x1xf32> to vector<1x8x32xf32>
    %249 = arith.subf %232, %248 : vector<1x8x32xf32>
    %250 = vector.shape_cast %10 : vector<1x32xf32> to vector<1x1x32xf32>
    %251 = vector.broadcast %250 : vector<1x1x32xf32> to vector<1x8x32xf32>
    %252 = arith.mulf %251, %249 : vector<1x8x32xf32>
    %253 = vector.broadcast %247 : vector<1x8x1xf32> to vector<1x8x32xf32>
    %254 = arith.mulf %252, %253 : vector<1x8x32xf32>
    %255 = vector.shape_cast %11 : vector<1x32xf32> to vector<1x1x32xf32>
    %256 = vector.broadcast %255 : vector<1x1x32xf32> to vector<1x8x32xf32>
    %257 = arith.addf %254, %256 : vector<1x8x32xf32>
    %258 = vector.shape_cast %257 : vector<1x8x32xf32> to vector<8x32xf32>
    %259 = arith.truncf %258 : vector<8x32xf32> to vector<8x32xbf16>
    %cst_60 = arith.constant dense<0.000000e+00> : vector<8x64xf32>
    %260 = tpu.matmul %259, %4, %cst_60 {dimension_numbers = #tpu.dot_dimension_numbers<[1], [0], [0], [1], [0, 0, 1, 1], [], []>} : vector<8x32xbf16>, vector<32x64xbf16>, vector<8x64xf32> -> vector<8x64xf32>
    %261 = vector.broadcast %5 : vector<1x64xf32> to vector<8x64xf32>
    %262 = arith.addf %260, %261 : vector<8x64xf32>
    %cst_61 = arith.constant 0.000000e+00 : f32
    %263 = vector.broadcast %cst_61 : f32 to vector<8x64xf32>
    %264 = arith.maximumf %262, %263 : vector<8x64xf32>
    %265 = arith.truncf %264 : vector<8x64xf32> to vector<8x64xbf16>
    %cst_62 = arith.constant dense<0.000000e+00> : vector<8x32xf32>
    %266 = tpu.matmul %265, %6, %cst_62 {dimension_numbers = #tpu.dot_dimension_numbers<[1], [0], [0], [1], [0, 0, 1, 1], [], []>} : vector<8x64xbf16>, vector<64x32xbf16>, vector<8x32xf32> -> vector<8x32xf32>
    %267 = vector.broadcast %7 : vector<1x32xf32> to vector<8x32xf32>
    %268 = arith.addf %266, %267 : vector<8x32xf32>
    %269 = vector.shape_cast %268 : vector<8x32xf32> to vector<1x8x32xf32>
    %270 = arith.addf %232, %269 : vector<1x8x32xf32>
    %c0_63 = arith.constant 0 : index
    %c0_64 = arith.constant 0 : index
    %271 = vector.load %arg14[%c0_63, %c0_64] : memref<1x32xf32, #tpu.memory_space<vmem>>, vector<1x32xf32>
    %c0_65 = arith.constant 0 : index
    %c0_66 = arith.constant 0 : index
    %272 = vector.load %arg15[%c0_65, %c0_66] : memref<1x32xf32, #tpu.memory_space<vmem>>, vector<1x32xf32>
    %cst_67 = arith.constant dense<0.000000e+00> : vector<1x8xf32>
    %273 = vector.multi_reduction <add>, %270, %cst_67 [2] : vector<1x8x32xf32> to vector<1x8xf32>
    %274 = vector.shape_cast %273 : vector<1x8xf32> to vector<1x8x1xf32>
    %cst_68 = arith.constant 3.200000e+01 : f32
    %275 = vector.broadcast %cst_68 : f32 to vector<1x8x1xf32>
    %276 = arith.divf %274, %275 : vector<1x8x1xf32>
    %277 = vector.broadcast %276 : vector<1x8x1xf32> to vector<1x8x32xf32>
    %278 = arith.subf %270, %277 : vector<1x8x32xf32>
    %279 = arith.mulf %278, %278 : vector<1x8x32xf32>
    %cst_69 = arith.constant dense<0.000000e+00> : vector<1x8xf32>
    %280 = vector.multi_reduction <add>, %279, %cst_69 [2] : vector<1x8x32xf32> to vector<1x8xf32>
    %281 = vector.shape_cast %280 : vector<1x8xf32> to vector<1x8x1xf32>
    %cst_70 = arith.constant 0.0322580636 : f32
    %282 = vector.broadcast %cst_70 : f32 to vector<1x8x1xf32>
    %283 = arith.mulf %281, %282 : vector<1x8x1xf32>
    %284 = math.sqrt %283 : vector<1x8x1xf32>
    %cst_71 = arith.constant 9.99999997E-7 : f32
    %285 = vector.broadcast %cst_71 : f32 to vector<1x8x1xf32>
    %286 = arith.addf %284, %285 : vector<1x8x1xf32>
    %287 = tpu.reciprocal %286 {approx = true} : vector<1x8x1xf32> -> vector<1x8x1xf32>
    %288 = vector.broadcast %276 : vector<1x8x1xf32> to vector<1x8x32xf32>
    %289 = arith.subf %270, %288 : vector<1x8x32xf32>
    %290 = vector.shape_cast %271 : vector<1x32xf32> to vector<1x1x32xf32>
    %291 = vector.broadcast %290 : vector<1x1x32xf32> to vector<1x8x32xf32>
    %292 = arith.mulf %291, %289 : vector<1x8x32xf32>
    %293 = vector.broadcast %287 : vector<1x8x1xf32> to vector<1x8x32xf32>
    %294 = arith.mulf %292, %293 : vector<1x8x32xf32>
    %295 = vector.shape_cast %272 : vector<1x32xf32> to vector<1x1x32xf32>
    %296 = vector.broadcast %295 : vector<1x1x32xf32> to vector<1x8x32xf32>
    %297 = arith.addf %294, %296 : vector<1x8x32xf32>
    %c0_72 = arith.constant 0 : index
    %c0_73 = arith.constant 0 : index
    %c0_74 = arith.constant 0 : index
    %298 = vector.load %arg16[%c0_72, %c0_73, %c0_74] : memref<1x8x32xf32, #tpu.memory_space<vmem>>, vector<1x8x32xf32>
    tpu.vector_store %arg16[%c0_72, %c0_73, %c0_74], %297 {strides = array<i32>} : memref<1x8x32xf32, #tpu.memory_space<vmem>>, vector<1x8x32xf32>,
    return
  }
  func.func @transform_0(%arg0: i32) -> (i32, i32, i32) {
    %c0_i32 = arith.constant 0 : i32
    %c0_i32_0 = arith.constant 0 : i32
    %c0_i32_1 = arith.constant 0 : i32
    return %arg0, %c0_i32, %c0_i32_0 : i32, i32, i32
  }
  func.func @transform_1(%arg0: i32) -> (i32, i32) {
    %c0_i32 = arith.constant 0 : i32
    %c0_i32_0 = arith.constant 0 : i32
    %c0_i32_1 = arith.constant 0 : i32
    return %c0_i32, %c0_i32_0 : i32, i32
  }
  func.func @transform_2(%arg0: i32) -> (i32, i32) {
    %c0_i32 = arith.constant 0 : i32
    %c0_i32_0 = arith.constant 0 : i32
    %c0_i32_1 = arith.constant 0 : i32
    return %c0_i32, %c0_i32_0 : i32, i32
  }
  func.func @transform_3(%arg0: i32) -> (i32, i32) {
    %c0_i32 = arith.constant 0 : i32
    %c0_i32_0 = arith.constant 0 : i32
    %c0_i32_1 = arith.constant 0 : i32
    return %c0_i32, %c0_i32_0 : i32, i32
  }
  func.func @transform_4(%arg0: i32) -> (i32, i32) {
    %c0_i32 = arith.constant 0 : i32
    %c0_i32_0 = arith.constant 0 : i32
    %c0_i32_1 = arith.constant 0 : i32
    return %c0_i32, %c0_i32_0 : i32, i32
  }
  func.func @transform_5(%arg0: i32) -> (i32, i32) {
    %c0_i32 = arith.constant 0 : i32
    %c0_i32_0 = arith.constant 0 : i32
    %c0_i32_1 = arith.constant 0 : i32
    return %c0_i32, %c0_i32_0 : i32, i32
  }
  func.func @transform_6(%arg0: i32) -> (i32, i32) {
    %c0_i32 = arith.constant 0 : i32
    %c0_i32_0 = arith.constant 0 : i32
    %c0_i32_1 = arith.constant 0 : i32
    return %c0_i32, %c0_i32_0 : i32, i32
  }
  func.func @transform_7(%arg0: i32) -> (i32, i32) {
    %c0_i32 = arith.constant 0 : i32
    %c0_i32_0 = arith.constant 0 : i32
    %c0_i32_1 = arith.constant 0 : i32
    return %c0_i32, %c0_i32_0 : i32, i32
  }
  func.func @transform_8(%arg0: i32) -> (i32, i32) {
    %c0_i32 = arith.constant 0 : i32
    %c0_i32_0 = arith.constant 0 : i32
    %c0_i32_1 = arith.constant 0 : i32
    return %c0_i32, %c0_i32_0 : i32, i32
  }
  func.func @transform_9(%arg0: i32) -> (i32, i32) {
    %c0_i32 = arith.constant 0 : i32
    %c0_i32_0 = arith.constant 0 : i32
    %c0_i32_1 = arith.constant 0 : i32
    return %c0_i32, %c0_i32_0 : i32, i32
  }
  func.func @transform_10(%arg0: i32) -> (i32, i32) {
    %c0_i32 = arith.constant 0 : i32
    %c0_i32_0 = arith.constant 0 : i32
    %c0_i32_1 = arith.constant 0 : i32
    return %c0_i32, %c0_i32_0 : i32, i32
  }
  func.func @transform_11(%arg0: i32) -> (i32, i32) {
    %c0_i32 = arith.constant 0 : i32
    %c0_i32_0 = arith.constant 0 : i32
    %c0_i32_1 = arith.constant 0 : i32
    return %c0_i32, %c0_i32_0 : i32, i32
  }
  func.func @transform_12(%arg0: i32) -> (i32, i32) {
    %c0_i32 = arith.constant 0 : i32
    %c0_i32_0 = arith.constant 0 : i32
    %c0_i32_1 = arith.constant 0 : i32
    return %c0_i32, %c0_i32_0 : i32, i32
  }
  func.func @transform_13(%arg0: i32) -> (i32, i32) {
    %c0_i32 = arith.constant 0 : i32
    %c0_i32_0 = arith.constant 0 : i32
    %c0_i32_1 = arith.constant 0 : i32
    return %c0_i32, %c0_i32_0 : i32, i32
  }
  func.func @transform_14(%arg0: i32) -> (i32, i32) {
    %c0_i32 = arith.constant 0 : i32
    %c0_i32_0 = arith.constant 0 : i32
    %c0_i32_1 = arith.constant 0 : i32
    return %c0_i32, %c0_i32_0 : i32, i32
  }
  func.func @transform_15(%arg0: i32) -> (i32, i32, i32) {
    %c0_i32 = arith.constant 0 : i32
    %c0_i32_0 = arith.constant 0 : i32
    %c0_i32_1 = arith.constant 0 : i32
    return %arg0, %c0_i32, %c0_i32_0 : i32, i32, i32
  }
}

module attributes {stable_mosaic.version = 11 : i64} {
  func.func @encoder_kernel(%arg0: i32, %arg1: memref<1x8x32xf32, #tpu.memory_space<vmem>>, %arg2: memref<32x96xbf16, #tpu.memory_space<vmem>>, %arg3: memref<1x96xf32, #tpu.memory_space<vmem>>, %arg4: memref<32x32xbf16, #tpu.memory_space<vmem>>, %arg5: memref<1x32xf32, #tpu.memory_space<vmem>>, %arg6: memref<32x64xbf16, #tpu.memory_space<vmem>>, %arg7: memref<1x64xf32, #tpu.memory_space<vmem>>, %arg8: memref<64x32xbf16, #tpu.memory_space<vmem>>, %arg9: memref<1x32xf32, #tpu.memory_space<vmem>>, %arg10: memref<1x32xf32, #tpu.memory_space<vmem>>, %arg11: memref<1x32xf32, #tpu.memory_space<vmem>>, %arg12: memref<1x32xf32, #tpu.memory_space<vmem>>, %arg13: memref<1x32xf32, #tpu.memory_space<vmem>>, %arg14: memref<1x32xf32, #tpu.memory_space<vmem>>, %arg15: memref<1x32xf32, #tpu.memory_space<vmem>>, %arg16: memref<1x8x32xf32, #tpu.memory_space<vmem>>) attributes {dimension_semantics = [#tpu.dimension_semantics<parallel>], iteration_bounds = array<i64: 2>, scalar_prefetch = 0 : i64, scratch_operands = 0 : i64, tpu.core_type = #tpu.core_type<tc>, window_params = [{transform_indices = @transform_0, window_bounds = array<i64: 1, 8, 32>}, {pipeline_mode = #tpu.pipeline_mode<synchronous>, transform_indices = @transform_1, window_bounds = array<i64: 32, 96>}, {pipeline_mode = #tpu.pipeline_mode<synchronous>, transform_indices = @transform_2, window_bounds = array<i64: 1, 96>}, {pipeline_mode = #tpu.pipeline_mode<synchronous>, transform_indices = @transform_3, window_bounds = array<i64: 32, 32>}, {pipeline_mode = #tpu.pipeline_mode<synchronous>, transform_indices = @transform_4, window_bounds = array<i64: 1, 32>}, {pipeline_mode = #tpu.pipeline_mode<synchronous>, transform_indices = @transform_5, window_bounds = array<i64: 32, 64>}, {pipeline_mode = #tpu.pipeline_mode<synchronous>, transform_indices = @transform_6, window_bounds = array<i64: 1, 64>}, {pipeline_mode = #tpu.pipeline_mode<synchronous>, transform_indices = @transform_7, window_bounds = array<i64: 64, 32>}, {pipeline_mode = #tpu.pipeline_mode<synchronous>, transform_indices = @transform_8, window_bounds = array<i64: 1, 32>}, {pipeline_mode = #tpu.pipeline_mode<synchronous>, transform_indices = @transform_9, window_bounds = array<i64: 1, 32>}, {pipeline_mode = #tpu.pipeline_mode<synchronous>, transform_indices = @transform_10, window_bounds = array<i64: 1, 32>}, {pipeline_mode = #tpu.pipeline_mode<synchronous>, transform_indices = @transform_11, window_bounds = array<i64: 1, 32>}, {pipeline_mode = #tpu.pipeline_mode<synchronous>, transform_indices = @transform_12, window_bounds = array<i64: 1, 32>}, {pipeline_mode = #tpu.pipeline_mode<synchronous>, transform_indices = @transform_13, window_bounds = array<i64: 1, 32>}, {pipeline_mode = #tpu.pipeline_mode<synchronous>, transform_indices = @transform_14, window_bounds = array<i64: 1, 32>}, {transform_indices = @transform_15, window_bounds = array<i64: 1, 8, 32>}]} {
    %c0 = arith.constant 0 : index
    %c0_0 = arith.constant 0 : index
    %0 = vector.load %arg2[%c0, %c0_0] : memref<32x96xbf16, #tpu.memory_space<vmem>>, vector<32x96xbf16>
    %c0_1 = arith.constant 0 : index
    %c0_2 = arith.constant 0 : index
    %1 = vector.load %arg3[%c0_1, %c0_2] : memref<1x96xf32, #tpu.memory_space<vmem>>, vector<1x96xf32>
    %c0_3 = arith.constant 0 : index
    %c0_4 = arith.constant 0 : index
    %2 = vector.load %arg4[%c0_3, %c0_4] : memref<32x32xbf16, #tpu.memory_space<vmem>>, vector<32x32xbf16>
    %c0_5 = arith.constant 0 : index
    %c0_6 = arith.constant 0 : index
    %3 = vector.load %arg5[%c0_5, %c0_6] : memref<1x32xf32, #tpu.memory_space<vmem>>, vector<1x32xf32>
    %c0_7 = arith.constant 0 : index
    %c0_8 = arith.constant 0 : index
    %4 = vector.load %arg6[%c0_7, %c0_8] : memref<32x64xbf16, #tpu.memory_space<vmem>>, vector<32x64xbf16>
    %c0_9 = arith.constant 0 : index
    %c0_10 = arith.constant 0 : index
    %5 = vector.load %arg7[%c0_9, %c0_10] : memref<1x64xf32, #tpu.memory_space<vmem>>, vector<1x64xf32>
    %c0_11 = arith.constant 0 : index
    %c0_12 = arith.constant 0 : index
    %6 = vector.load %arg8[%c0_11, %c0_12] : memref<64x32xbf16, #tpu.memory_space<vmem>>, vector<64x32xbf16>
    %c0_13 = arith.constant 0 : index
    %c0_14 = arith.constant 0 : index
    %7 = vector.load %arg9[%c0_13, %c0_14] : memref<1x32xf32, #tpu.memory_space<vmem>>, vector<1x32xf32>
    %c0_15 = arith.constant 0 : index
    %c0_16 = arith.constant 0 : index
    %8 = vector.load %arg10[%c0_15, %c0_16] : memref<1x32xf32, #tpu.memory_space<vmem>>, vector<1x32xf32>
    %c0_17 = arith.constant 0 : index
    %c0_18 = arith.constant 0 : index
    %9 = vector.load %arg11[%c0_17, %c0_18] : memref<1x32xf32, #tpu.memory_space<vmem>>, vector<1x32xf32>
    %c0_19 = arith.constant 0 : index
    %c0_20 = arith.constant 0 : index
    %10 = vector.load %arg12[%c0_19, %c0_20] : memref<1x32xf32, #tpu.memory_space<vmem>>, vector<1x32xf32>
    %c0_21 = arith.constant 0 : index
    %c0_22 = arith.constant 0 : index
    %11 = vector.load %arg13[%c0_21, %c0_22] : memref<1x32xf32, #tpu.memory_space<vmem>>, vector<1x32xf32>
    %c0_23 = arith.constant 0 : index
    %c0_24 = arith.constant 0 : index
    %c0_25 = arith.constant 0 : index
    %12 = vector.load %arg1[%c0_23, %c0_24, %c0_25] : memref<1x8x32xf32, #tpu.memory_space<vmem>>, vector<1x8x32xf32>
    %cst = arith.constant dense<0.000000e+00> : vector<1x8xf32>
    %13 = vector.multi_reduction <add>, %12, %cst [2] : vector<1x8x32xf32> to vector<1x8xf32>
    %14 = vector.shape_cast %13 : vector<1x8xf32> to vector<1x8x1xf32>
    %cst_26 = arith.constant 3.200000e+01 : f32
    %15 = vector.broadcast %cst_26 : f32 to vector<1x8x1xf32>
    %16 = arith.divf %14, %15 : vector<1x8x1xf32>
    %17 = vector.broadcast %16 : vector<1x8x1xf32> to vector<1x8x32xf32>
    %18 = arith.subf %12, %17 : vector<1x8x32xf32>
    %19 = arith.mulf %18, %18 : vector<1x8x32xf32>
    %cst_27 = arith.constant dense<0.000000e+00> : vector<1x8xf32>
    %20 = vector.multi_reduction <add>, %19, %cst_27 [2] : vector<1x8x32xf32> to vector<1x8xf32>
    %21 = vector.shape_cast %20 : vector<1x8xf32> to vector<1x8x1xf32>
    %cst_28 = arith.constant 0.0322580636 : f32
    %22 = vector.broadcast %cst_28 : f32 to vector<1x8x1xf32>
    %23 = arith.mulf %21, %22 : vector<1x8x1xf32>
    %24 = math.sqrt %23 : vector<1x8x1xf32>
    %cst_29 = arith.constant 9.99999997E-7 : f32
    %25 = vector.broadcast %cst_29 : f32 to vector<1x8x1xf32>
    %26 = arith.addf %24, %25 : vector<1x8x1xf32>
    %27 = tpu.reciprocal %26 {approx = true} : vector<1x8x1xf32> -> vector<1x8x1xf32>
    %28 = vector.broadcast %16 : vector<1x8x1xf32> to vector<1x8x32xf32>
    %29 = arith.subf %12, %28 : vector<1x8x32xf32>
    %30 = vector.shape_cast %8 : vector<1x32xf32> to vector<1x1x32xf32>
    %31 = vector.broadcast %30 : vector<1x1x32xf32> to vector<1x8x32xf32>
    %32 = arith.mulf %31, %29 : vector<1x8x32xf32>
    %33 = vector.broadcast %27 : vector<1x8x1xf32> to vector<1x8x32xf32>
    %34 = arith.mulf %32, %33 : vector<1x8x32xf32>
    %35 = vector.shape_cast %9 : vector<1x32xf32> to vector<1x1x32xf32>
    %36 = vector.broadcast %35 : vector<1x1x32xf32> to vector<1x8x32xf32>
    %37 = arith.addf %34, %36 : vector<1x8x32xf32>
    %38 = vector.shape_cast %37 : vector<1x8x32xf32> to vector<8x32xf32>
    %39 = arith.truncf %38 : vector<8x32xf32> to vector<8x32xbf16>
    %cst_30 = arith.constant dense<0.000000e+00> : vector<8x96xf32>
    %40 = tpu.matmul %39, %0, %cst_30 {dimension_numbers = #tpu.dot_dimension_numbers<[1], [0], [0], [1], [0, 0, 1, 1], [], []>} : vector<8x32xbf16>, vector<32x96xbf16>, vector<8x96xf32> -> vector<8x96xf32>
    %41 = vector.broadcast %1 : vector<1x96xf32> to vector<8x96xf32>
    %42 = arith.addf %40, %41 : vector<8x96xf32>
    %43 = vector.extract_strided_slice %42 {offsets = [0, 0], sizes = [8, 32], strides = [1, 1]} : vector<8x96xf32> to vector<8x32xf32>
    %44 = vector.extract_strided_slice %43 {offsets = [0, 0], sizes = [8, 8], strides = [1, 1]} : vector<8x32xf32> to vector<8x8xf32>
    %45 = vector.extract_strided_slice %43 {offsets = [0, 8], sizes = [8, 8], strides = [1, 1]} : vector<8x32xf32> to vector<8x8xf32>
    %46 = vector.extract_strided_slice %43 {offsets = [0, 16], sizes = [8, 8], strides = [1, 1]} : vector<8x32xf32> to vector<8x8xf32>
    %47 = vector.extract_strided_slice %43 {offsets = [0, 24], sizes = [8, 8], strides = [1, 1]} : vector<8x32xf32> to vector<8x8xf32>
    %48 = vector.shape_cast %44 : vector<8x8xf32> to vector<1x8x8xf32>
    %49 = vector.shape_cast %45 : vector<8x8xf32> to vector<1x8x8xf32>
    %50 = vector.shape_cast %46 : vector<8x8xf32> to vector<1x8x8xf32>
    %51 = vector.shape_cast %47 : vector<8x8xf32> to vector<1x8x8xf32>
    %52 = tpu.concatenate %48, %49, %50, %51 in 0 : vector<1x8x8xf32>, vector<1x8x8xf32>, vector<1x8x8xf32>, vector<1x8x8xf32> -> vector<4x8x8xf32>
    %53 = arith.truncf %52 : vector<4x8x8xf32> to vector<4x8x8xbf16>
    %54 = vector.extract_strided_slice %42 {offsets = [0, 32], sizes = [8, 32], strides = [1, 1]} : vector<8x96xf32> to vector<8x32xf32>
    %55 = vector.extract_strided_slice %54 {offsets = [0, 0], sizes = [8, 8], strides = [1, 1]} : vector<8x32xf32> to vector<8x8xf32>
    %56 = vector.extract_strided_slice %54 {offsets = [0, 8], sizes = [8, 8], strides = [1, 1]} : vector<8x32xf32> to vector<8x8xf32>
    %57 = vector.extract_strided_slice %54 {offsets = [0, 16], sizes = [8, 8], strides = [1, 1]} : vector<8x32xf32> to vector<8x8xf32>
    %58 = vector.extract_strided_slice %54 {offsets = [0, 24], sizes = [8, 8], strides = [1, 1]} : vector<8x32xf32> to vector<8x8xf32>
    %59 = vector.shape_cast %55 : vector<8x8xf32> to vector<1x8x8xf32>
    %60 = vector.shape_cast %56 : vector<8x8xf32> to vector<1x8x8xf32>
    %61 = vector.shape_cast %57 : vector<8x8xf32> to vector<1x8x8xf32>
    %62 = vector.shape_cast %58 : vector<8x8xf32> to vector<1x8x8xf32>
    %63 = tpu.concatenate %59, %60, %61, %62 in 0 : vector<1x8x8xf32>, vector<1x8x8xf32>, vector<1x8x8xf32>, vector<1x8x8xf32> -> vector<4x8x8xf32>
    %64 = arith.truncf %63 : vector<4x8x8xf32> to vector<4x8x8xbf16>
    %65 = vector.extract_strided_slice %42 {offsets = [0, 64], sizes = [8, 32], strides = [1, 1]} : vector<8x96xf32> to vector<8x32xf32>
    %66 = vector.extract_strided_slice %65 {offsets = [0, 0], sizes = [8, 8], strides = [1, 1]} : vector<8x32xf32> to vector<8x8xf32>
    %67 = vector.extract_strided_slice %65 {offsets = [0, 8], sizes = [8, 8], strides = [1, 1]} : vector<8x32xf32> to vector<8x8xf32>
    %68 = vector.extract_strided_slice %65 {offsets = [0, 16], sizes = [8, 8], strides = [1, 1]} : vector<8x32xf32> to vector<8x8xf32>
    %69 = vector.extract_strided_slice %65 {offsets = [0, 24], sizes = [8, 8], strides = [1, 1]} : vector<8x32xf32> to vector<8x8xf32>
    %70 = vector.shape_cast %66 : vector<8x8xf32> to vector<1x8x8xf32>
    %71 = vector.shape_cast %67 : vector<8x8xf32> to vector<1x8x8xf32>
    %72 = vector.shape_cast %68 : vector<8x8xf32> to vector<1x8x8xf32>
    %73 = vector.shape_cast %69 : vector<8x8xf32> to vector<1x8x8xf32>
    %74 = tpu.concatenate %70, %71, %72, %73 in 0 : vector<1x8x8xf32>, vector<1x8x8xf32>, vector<1x8x8xf32>, vector<1x8x8xf32> -> vector<4x8x8xf32>
    %75 = arith.truncf %74 : vector<4x8x8xf32> to vector<4x8x8xbf16>
    "tpu.trace_start"() <{level = 10 : i32, message = "hqf,hkf->hqk"}> : () -> ()
    %cst_31 = arith.constant dense<0.000000e+00> : vector<4x8x8xf32>
    %76 = tpu.matmul %53, %64, %cst_31 {dimension_numbers = #tpu.dot_dimension_numbers<[2], [2], [1], [1], [0, 0, 0, 1, 1, 1], [0], [0]>} : vector<4x8x8xbf16>, vector<4x8x8xbf16>, vector<4x8x8xf32> -> vector<4x8x8xf32>
    "tpu.trace_stop"() : () -> ()
    %cst_32 = arith.constant dense<0xFF800000> : vector<4x8xf32>
    %77 = vector.multi_reduction <maximumf>, %76, %cst_32 [2] : vector<4x8x8xf32> to vector<4x8xf32>
    %78 = vector.shape_cast %77 : vector<4x8xf32> to vector<4x8x1xf32>
    %79 = vector.broadcast %78 : vector<4x8x1xf32> to vector<4x8x8xf32>
    %80 = arith.subf %76, %79 : vector<4x8x8xf32>
    %81 = math.exp %80 : vector<4x8x8xf32>
    %cst_33 = arith.constant dense<0.000000e+00> : vector<4x8xf32>
    %82 = vector.multi_reduction <add>, %81, %cst_33 [2] : vector<4x8x8xf32> to vector<4x8xf32>
    %83 = vector.shape_cast %82 : vector<4x8xf32> to vector<4x8x1xf32>
    %84 = tpu.reciprocal %83 {approx = true} : vector<4x8x1xf32> -> vector<4x8x1xf32>
    %85 = vector.broadcast %84 : vector<4x8x1xf32> to vector<4x8x8xf32>
    %86 = arith.mulf %81, %85 : vector<4x8x8xf32>
    %87 = arith.truncf %86 : vector<4x8x8xf32> to vector<4x8x8xbf16>
    "tpu.trace_start"() <{level = 10 : i32, message = "hqk,hkf->hqf"}> : () -> ()
    %cst_34 = arith.constant dense<0.000000e+00> : vector<4x8x8xf32>
    %88 = tpu.matmul %87, %75, %cst_34 {dimension_numbers = #tpu.dot_dimension_numbers<[2], [1], [1], [2], [0, 0, 0, 1, 1, 2], [0], [0]>} : vector<4x8x8xbf16>, vector<4x8x8xbf16>, vector<4x8x8xf32> -> vector<4x8x8xf32>
    "tpu.trace_stop"() : () -> ()
    %89 = vector.extract_strided_slice %88 {offsets = [0, 0, 0], sizes = [1, 8, 8], strides = [1, 1, 1]} : vector<4x8x8xf32> to vector<1x8x8xf32>
    %90 = vector.shape_cast %89 : vector<1x8x8xf32> to vector<8x8xf32>
    %91 = vector.extract_strided_slice %88 {offsets = [1, 0, 0], sizes = [1, 8, 8], strides = [1, 1, 1]} : vector<4x8x8xf32> to vector<1x8x8xf32>
    %92 = vector.shape_cast %91 : vector<1x8x8xf32> to vector<8x8xf32>
    %93 = vector.extract_strided_slice %88 {offsets = [2, 0, 0], sizes = [1, 8, 8], strides = [1, 1, 1]} : vector<4x8x8xf32> to vector<1x8x8xf32>
    %94 = vector.shape_cast %93 : vector<1x8x8xf32> to vector<8x8xf32>
    %95 = vector.extract_strided_slice %88 {offsets = [3, 0, 0], sizes = [1, 8, 8], strides = [1, 1, 1]} : vector<4x8x8xf32> to vector<1x8x8xf32>
    %96 = vector.shape_cast %95 : vector<1x8x8xf32> to vector<8x8xf32>
    %97 = tpu.concatenate %90, %92, %94, %96 in 1 : vector<8x8xf32>, vector<8x8xf32>, vector<8x8xf32>, vector<8x8xf32> -> vector<8x32xf32>
    %98 = arith.truncf %97 : vector<8x32xf32> to vector<8x32xbf16>
    %cst_35 = arith.constant dense<0.000000e+00> : vector<8x32xf32>
    %99 = tpu.matmul %98, %2, %cst_35 {dimension_numbers = #tpu.dot_dimension_numbers<[1], [0], [0], [1], [0, 0, 1, 1], [], []>} : vector<8x32xbf16>, vector<32x32xbf16>, vector<8x32xf32> -> vector<8x32xf32>
    %100 = vector.broadcast %3 : vector<1x32xf32> to vector<8x32xf32>
    %101 = arith.addf %99, %100 : vector<8x32xf32>
    %102 = vector.shape_cast %101 : vector<8x32xf32> to vector<1x8x32xf32>
    %103 = arith.addf %12, %102 : vector<1x8x32xf32>
    %cst_36 = arith.constant dense<0.000000e+00> : vector<1x8xf32>
    %104 = vector.multi_reduction <add>, %103, %cst_36 [2] : vector<1x8x32xf32> to vector<1x8xf32>
    %105 = vector.shape_cast %104 : vector<1x8xf32> to vector<1x8x1xf32>
    %cst_37 = arith.constant 3.200000e+01 : f32
    %106 = vector.broadcast %cst_37 : f32 to vector<1x8x1xf32>
    %107 = arith.divf %105, %106 : vector<1x8x1xf32>
    %108 = vector.broadcast %107 : vector<1x8x1xf32> to vector<1x8x32xf32>
    %109 = arith.subf %103, %108 : vector<1x8x32xf32>
    %110 = arith.mulf %109, %109 : vector<1x8x32xf32>
    %cst_38 = arith.constant dense<0.000000e+00> : vector<1x8xf32>
    %111 = vector.multi_reduction <add>, %110, %cst_38 [2] : vector<1x8x32xf32> to vector<1x8xf32>
    %112 = vector.shape_cast %111 : vector<1x8xf32> to vector<1x8x1xf32>
    %cst_39 = arith.constant 0.0322580636 : f32
    %113 = vector.broadcast %cst_39 : f32 to vector<1x8x1xf32>
    %114 = arith.mulf %112, %113 : vector<1x8x1xf32>
    %115 = math.sqrt %114 : vector<1x8x1xf32>
    %cst_40 = arith.constant 9.99999997E-7 : f32
    %116 = vector.broadcast %cst_40 : f32 to vector<1x8x1xf32>
    %117 = arith.addf %115, %116 : vector<1x8x1xf32>
    %118 = tpu.reciprocal %117 {approx = true} : vector<1x8x1xf32> -> vector<1x8x1xf32>
    %119 = vector.broadcast %107 : vector<1x8x1xf32> to vector<1x8x32xf32>
    %120 = arith.subf %103, %119 : vector<1x8x32xf32>
    %121 = vector.shape_cast %10 : vector<1x32xf32> to vector<1x1x32xf32>
    %122 = vector.broadcast %121 : vector<1x1x32xf32> to vector<1x8x32xf32>
    %123 = arith.mulf %122, %120 : vector<1x8x32xf32>
    %124 = vector.broadcast %118 : vector<1x8x1xf32> to vector<1x8x32xf32>
    %125 = arith.mulf %123, %124 : vector<1x8x32xf32>
    %126 = vector.shape_cast %11 : vector<1x32xf32> to vector<1x1x32xf32>
    %127 = vector.broadcast %126 : vector<1x1x32xf32> to vector<1x8x32xf32>
    %128 = arith.addf %125, %127 : vector<1x8x32xf32>
    %129 = vector.shape_cast %128 : vector<1x8x32xf32> to vector<8x32xf32>
    %130 = arith.truncf %129 : vector<8x32xf32> to vector<8x32xbf16>
    %cst_41 = arith.constant dense<0.000000e+00> : vector<8x64xf32>
    %131 = tpu.matmul %130, %4, %cst_41 {dimension_numbers = #tpu.dot_dimension_numbers<[1], [0], [0], [1], [0, 0, 1, 1], [], []>} : vector<8x32xbf16>, vector<32x64xbf16>, vector<8x64xf32> -> vector<8x64xf32>
    %132 = vector.broadcast %5 : vector<1x64xf32> to vector<8x64xf32>
    %133 = arith.addf %131, %132 : vector<8x64xf32>
    %cst_42 = arith.constant 0.000000e+00 : f32
    %134 = vector.broadcast %cst_42 : f32 to vector<8x64xf32>
    %135 = arith.maximumf %133, %134 : vector<8x64xf32>
    %136 = arith.truncf %135 : vector<8x64xf32> to vector<8x64xbf16>
    %cst_43 = arith.constant dense<0.000000e+00> : vector<8x32xf32>
    %137 = tpu.matmul %136, %6, %cst_43 {dimension_numbers = #tpu.dot_dimension_numbers<[1], [0], [0], [1], [0, 0, 1, 1], [], []>} : vector<8x64xbf16>, vector<64x32xbf16>, vector<8x32xf32> -> vector<8x32xf32>
    %138 = vector.broadcast %7 : vector<1x32xf32> to vector<8x32xf32>
    %139 = arith.addf %137, %138 : vector<8x32xf32>
    %140 = vector.shape_cast %139 : vector<8x32xf32> to vector<1x8x32xf32>
    %141 = arith.addf %103, %140 : vector<1x8x32xf32>
    %cst_44 = arith.constant dense<0.000000e+00> : vector<1x8xf32>
    %142 = vector.multi_reduction <add>, %141, %cst_44 [2] : vector<1x8x32xf32> to vector<1x8xf32>
    %143 = vector.shape_cast %142 : vector<1x8xf32> to vector<1x8x1xf32>
    %cst_45 = arith.constant 3.200000e+01 : f32
    %144 = vector.broadcast %cst_45 : f32 to vector<1x8x1xf32>
    %145 = arith.divf %143, %144 : vector<1x8x1xf32>
    %146 = vector.broadcast %145 : vector<1x8x1xf32> to vector<1x8x32xf32>
    %147 = arith.subf %141, %146 : vector<1x8x32xf32>
    %148 = arith.mulf %147, %147 : vector<1x8x32xf32>
    %cst_46 = arith.constant dense<0.000000e+00> : vector<1x8xf32>
    %149 = vector.multi_reduction <add>, %148, %cst_46 [2] : vector<1x8x32xf32> to vector<1x8xf32>
    %150 = vector.shape_cast %149 : vector<1x8xf32> to vector<1x8x1xf32>
    %cst_47 = arith.constant 0.0322580636 : f32
    %151 = vector.broadcast %cst_47 : f32 to vector<1x8x1xf32>
    %152 = arith.mulf %150, %151 : vector<1x8x1xf32>
    %153 = math.sqrt %152 : vector<1x8x1xf32>
    %cst_48 = arith.constant 9.99999997E-7 : f32
    %154 = vector.broadcast %cst_48 : f32 to vector<1x8x1xf32>
    %155 = arith.addf %153, %154 : vector<1x8x1xf32>
    %156 = tpu.reciprocal %155 {approx = true} : vector<1x8x1xf32> -> vector<1x8x1xf32>
    %157 = vector.broadcast %145 : vector<1x8x1xf32> to vector<1x8x32xf32>
    %158 = arith.subf %141, %157 : vector<1x8x32xf32>
    %159 = vector.shape_cast %8 : vector<1x32xf32> to vector<1x1x32xf32>
    %160 = vector.broadcast %159 : vector<1x1x32xf32> to vector<1x8x32xf32>
    %161 = arith.mulf %160, %158 : vector<1x8x32xf32>
    %162 = vector.broadcast %156 : vector<1x8x1xf32> to vector<1x8x32xf32>
    %163 = arith.mulf %161, %162 : vector<1x8x32xf32>
    %164 = vector.shape_cast %9 : vector<1x32xf32> to vector<1x1x32xf32>
    %165 = vector.broadcast %164 : vector<1x1x32xf32> to vector<1x8x32xf32>
    %166 = arith.addf %163, %165 : vector<1x8x32xf32>
    %167 = vector.shape_cast %166 : vector<1x8x32xf32> to vector<8x32xf32>
    %168 = arith.truncf %167 : vector<8x32xf32> to vector<8x32xbf16>
    %cst_49 = arith.constant dense<0.000000e+00> : vector<8x96xf32>
    %169 = tpu.matmul %168, %0, %cst_49 {dimension_numbers = #tpu.dot_dimension_numbers<[1], [0], [0], [1], [0, 0, 1, 1], [], []>} : vector<8x32xbf16>, vector<32x96xbf16>, vector<8x96xf32> -> vector<8x96xf32>
    %170 = vector.broadcast %1 : vector<1x96xf32> to vector<8x96xf32>
    %171 = arith.addf %169, %170 : vector<8x96xf32>
    %172 = vector.extract_strided_slice %171 {offsets = [0, 0], sizes = [8, 32], strides = [1, 1]} : vector<8x96xf32> to vector<8x32xf32>
    %173 = vector.extract_strided_slice %172 {offsets = [0, 0], sizes = [8, 8], strides = [1, 1]} : vector<8x32xf32> to vector<8x8xf32>
    %174 = vector.extract_strided_slice %172 {offsets = [0, 8], sizes = [8, 8], strides = [1, 1]} : vector<8x32xf32> to vector<8x8xf32>
    %175 = vector.extract_strided_slice %172 {offsets = [0, 16], sizes = [8, 8], strides = [1, 1]} : vector<8x32xf32> to vector<8x8xf32>
    %176 = vector.extract_strided_slice %172 {offsets = [0, 24], sizes = [8, 8], strides = [1, 1]} : vector<8x32xf32> to vector<8x8xf32>
    %177 = vector.shape_cast %173 : vector<8x8xf32> to vector<1x8x8xf32>
    %178 = vector.shape_cast %174 : vector<8x8xf32> to vector<1x8x8xf32>
    %179 = vector.shape_cast %175 : vector<8x8xf32> to vector<1x8x8xf32>
    %180 = vector.shape_cast %176 : vector<8x8xf32> to vector<1x8x8xf32>
    %181 = tpu.concatenate %177, %178, %179, %180 in 0 : vector<1x8x8xf32>, vector<1x8x8xf32>, vector<1x8x8xf32>, vector<1x8x8xf32> -> vector<4x8x8xf32>
    %182 = arith.truncf %181 : vector<4x8x8xf32> to vector<4x8x8xbf16>
    %183 = vector.extract_strided_slice %171 {offsets = [0, 32], sizes = [8, 32], strides = [1, 1]} : vector<8x96xf32> to vector<8x32xf32>
    %184 = vector.extract_strided_slice %183 {offsets = [0, 0], sizes = [8, 8], strides = [1, 1]} : vector<8x32xf32> to vector<8x8xf32>
    %185 = vector.extract_strided_slice %183 {offsets = [0, 8], sizes = [8, 8], strides = [1, 1]} : vector<8x32xf32> to vector<8x8xf32>
    %186 = vector.extract_strided_slice %183 {offsets = [0, 16], sizes = [8, 8], strides = [1, 1]} : vector<8x32xf32> to vector<8x8xf32>
    %187 = vector.extract_strided_slice %183 {offsets = [0, 24], sizes = [8, 8], strides = [1, 1]} : vector<8x32xf32> to vector<8x8xf32>
    %188 = vector.shape_cast %184 : vector<8x8xf32> to vector<1x8x8xf32>
    %189 = vector.shape_cast %185 : vector<8x8xf32> to vector<1x8x8xf32>
    %190 = vector.shape_cast %186 : vector<8x8xf32> to vector<1x8x8xf32>
    %191 = vector.shape_cast %187 : vector<8x8xf32> to vector<1x8x8xf32>
    %192 = tpu.concatenate %188, %189, %190, %191 in 0 : vector<1x8x8xf32>, vector<1x8x8xf32>, vector<1x8x8xf32>, vector<1x8x8xf32> -> vector<4x8x8xf32>
    %193 = arith.truncf %192 : vector<4x8x8xf32> to vector<4x8x8xbf16>
    %194 = vector.extract_strided_slice %171 {offsets = [0, 64], sizes = [8, 32], strides = [1, 1]} : vector<8x96xf32> to vector<8x32xf32>
    %195 = vector.extract_strided_slice %194 {offsets = [0, 0], sizes = [8, 8], strides = [1, 1]} : vector<8x32xf32> to vector<8x8xf32>
    %196 = vector.extract_strided_slice %194 {offsets = [0, 8], sizes = [8, 8], strides = [1, 1]} : vector<8x32xf32> to vector<8x8xf32>
    %197 = vector.extract_strided_slice %194 {offsets = [0, 16], sizes = [8, 8], strides = [1, 1]} : vector<8x32xf32> to vector<8x8xf32>
    %198 = vector.extract_strided_slice %194 {offsets = [0, 24], sizes = [8, 8], strides = [1, 1]} : vector<8x32xf32> to vector<8x8xf32>
    %199 = vector.shape_cast %195 : vector<8x8xf32> to vector<1x8x8xf32>
    %200 = vector.shape_cast %196 : vector<8x8xf32> to vector<1x8x8xf32>
    %201 = vector.shape_cast %197 : vector<8x8xf32> to vector<1x8x8xf32>
    %202 = vector.shape_cast %198 : vector<8x8xf32> to vector<1x8x8xf32>
    %203 = tpu.concatenate %199, %200, %201, %202 in 0 : vector<1x8x8xf32>, vector<1x8x8xf32>, vector<1x8x8xf32>, vector<1x8x8xf32> -> vector<4x8x8xf32>
    %204 = arith.truncf %203 : vector<4x8x8xf32> to vector<4x8x8xbf16>
    "tpu.trace_start"() <{level = 10 : i32, message = "hqf,hkf->hqk"}> : () -> ()
    %cst_50 = arith.constant dense<0.000000e+00> : vector<4x8x8xf32>
    %205 = tpu.matmul %182, %193, %cst_50 {dimension_numbers = #tpu.dot_dimension_numbers<[2], [2], [1], [1], [0, 0, 0, 1, 1, 1], [0], [0]>} : vector<4x8x8xbf16>, vector<4x8x8xbf16>, vector<4x8x8xf32> -> vector<4x8x8xf32>
    "tpu.trace_stop"() : () -> ()
    %cst_51 = arith.constant dense<0xFF800000> : vector<4x8xf32>
    %206 = vector.multi_reduction <maximumf>, %205, %cst_51 [2] : vector<4x8x8xf32> to vector<4x8xf32>
    %207 = vector.shape_cast %206 : vector<4x8xf32> to vector<4x8x1xf32>
    %208 = vector.broadcast %207 : vector<4x8x1xf32> to vector<4x8x8xf32>
    %209 = arith.subf %205, %208 : vector<4x8x8xf32>
    %210 = math.exp %209 : vector<4x8x8xf32>
    %cst_52 = arith.constant dense<0.000000e+00> : vector<4x8xf32>
    %211 = vector.multi_reduction <add>, %210, %cst_52 [2] : vector<4x8x8xf32> to vector<4x8xf32>
    %212 = vector.shape_cast %211 : vector<4x8xf32> to vector<4x8x1xf32>
    %213 = tpu.reciprocal %212 {approx = true} : vector<4x8x1xf32> -> vector<4x8x1xf32>
    %214 = vector.broadcast %213 : vector<4x8x1xf32> to vector<4x8x8xf32>
    %215 = arith.mulf %210, %214 : vector<4x8x8xf32>
    %216 = arith.truncf %215 : vector<4x8x8xf32> to vector<4x8x8xbf16>
    "tpu.trace_start"() <{level = 10 : i32, message = "hqk,hkf->hqf"}> : () -> ()
    %cst_53 = arith.constant dense<0.000000e+00> : vector<4x8x8xf32>
    %217 = tpu.matmul %216, %204, %cst_53 {dimension_numbers = #tpu.dot_dimension_numbers<[2], [1], [1], [2], [0, 0, 0, 1, 1, 2], [0], [0]>} : vector<4x8x8xbf16>, vector<4x8x8xbf16>, vector<4x8x8xf32> -> vector<4x8x8xf32>
    "tpu.trace_stop"() : () -> ()
    %218 = vector.extract_strided_slice %217 {offsets = [0, 0, 0], sizes = [1, 8, 8], strides = [1, 1, 1]} : vector<4x8x8xf32> to vector<1x8x8xf32>
    %219 = vector.shape_cast %218 : vector<1x8x8xf32> to vector<8x8xf32>
    %220 = vector.extract_strided_slice %217 {offsets = [1, 0, 0], sizes = [1, 8, 8], strides = [1, 1, 1]} : vector<4x8x8xf32> to vector<1x8x8xf32>
    %221 = vector.shape_cast %220 : vector<1x8x8xf32> to vector<8x8xf32>
    %222 = vector.extract_strided_slice %217 {offsets = [2, 0, 0], sizes = [1, 8, 8], strides = [1, 1, 1]} : vector<4x8x8xf32> to vector<1x8x8xf32>
    %223 = vector.shape_cast %222 : vector<1x8x8xf32> to vector<8x8xf32>
    %224 = vector.extract_strided_slice %217 {offsets = [3, 0, 0], sizes = [1, 8, 8], strides = [1, 1, 1]} : vector<4x8x8xf32> to vector<1x8x8xf32>
    %225 = vector.shape_cast %224 : vector<1x8x8xf32> to vector<8x8xf32>
    %226 = tpu.concatenate %219, %221, %223, %225 in 1 : vector<8x8xf32>, vector<8x8xf32>, vector<8x8xf32>, vector<8x8xf32> -> vector<8x32xf32>
    %227 = arith.truncf %226 : vector<8x32xf32> to vector<8x32xbf16>
    %cst_54 = arith.constant dense<0.000000e+00> : vector<8x32xf32>
    %228 = tpu.matmul %227, %2, %cst_54 {dimension_numbers = #tpu.dot_dimension_numbers<[1], [0], [0], [1], [0, 0, 1, 1], [], []>} : vector<8x32xbf16>, vector<32x32xbf16>, vector<8x32xf32> -> vector<8x32xf32>
    %229 = vector.broadcast %3 : vector<1x32xf32> to vector<8x32xf32>
    %230 = arith.addf %228, %229 : vector<8x32xf32>
    %231 = vector.shape_cast %230 : vector<8x32xf32> to vector<1x8x32xf32>
    %232 = arith.addf %141, %231 : vector<1x8x32xf32>
    %cst_55 = arith.constant dense<0.000000e+00> : vector<1x8xf32>
    %233 = vector.multi_reduction <add>, %232, %cst_55 [2] : vector<1x8x32xf32> to vector<1x8xf32>
    %234 = vector.shape_cast %233 : vector<1x8xf32> to vector<1x8x1xf32>
    %cst_56 = arith.constant 3.200000e+01 : f32
    %235 = vector.broadcast %cst_56 : f32 to vector<1x8x1xf32>
    %236 = arith.divf %234, %235 : vector<1x8x1xf32>
    %237 = vector.broadcast %236 : vector<1x8x1xf32> to vector<1x8x32xf32>
    %238 = arith.subf %232, %237 : vector<1x8x32xf32>
    %239 = arith.mulf %238, %238 : vector<1x8x32xf32>
    %cst_57 = arith.constant dense<0.000000e+00> : vector<1x8xf32>
    %240 = vector.multi_reduction <add>, %239, %cst_57 [2] : vector<1x8x32xf32> to vector<1x8xf32>
    %241 = vector.shape_cast %240 : vector<1x8xf32> to vector<1x8x1xf32>
    %cst_58 = arith.constant 0.0322580636 : f32
    %242 = vector.broadcast %cst_58 : f32 to vector<1x8x1xf32>
    %243 = arith.mulf %241, %242 : vector<1x8x1xf32>
    %244 = math.sqrt %243 : vector<1x8x1xf32>
    %cst_59 = arith.constant 9.99999997E-7 : f32
    %245 = vector.broadcast %cst_59 : f32 to vector<1x8x1xf32>
    %246 = arith.addf %244, %245 : vector<1x8x1xf32>
    %247 = tpu.reciprocal %246 {approx = true} : vector<1x8x1xf32> -> vector<1x8x1xf32>
    %248 = vector.broadcast %236 : vector<1x8x1xf32> to vector<1x8x32xf32>
    %249 = arith.subf %232, %248 : vector<1x8x32xf32>
    %250 = vector.shape_cast %10 : vector<1x32xf32> to vector<1x1x32xf32>
    %251 = vector.broadcast %250 : vector<1x1x32xf32> to vector<1x8x32xf32>
    %252 = arith.mulf %251, %249 : vector<1x8x32xf32>
    %253 = vector.broadcast %247 : vector<1x8x1xf32> to vector<1x8x32xf32>
    %254 = arith.mulf %252, %253 : vector<1x8x32xf32>
    %255 = vector.shape_cast %11 : vector<1x32xf32> to vector<1x1x32xf32>
    %256 = vector.broadcast %255 : vector<1x1x32xf32> to vector<1x8x32xf32>
    %257 = arith.addf %254, %256 : vector<1x8x32xf32>
    %258 = vector.shape_cast %257 : vector<1x8x32xf32> to vector<8x32xf32>
    %259 = arith.truncf %258 : vector<8x32xf32> to vector<8x32xbf16>
    %cst_60 = arith.constant dense<0.000000e+00> : vector<8x64xf32>
    %260 = tpu.matmul %259, %4, %cst_60 {dimension_numbers = #tpu.dot_dimension_numbers<[1], [0], [0], [1], [0, 0, 1, 1], [], []>} : vector<8x32xbf16>, vector<32x64xbf16>, vector<8x64xf32> -> vector<8x64xf32>
    %261 = vector.broadcast %5 : vector<1x64xf32> to vector<8x64xf32>
    %262 = arith.addf %260, %261 : vector<8x64xf32>
    %cst_61 = arith.constant 0.000000e+00 : f32
    %263 = vector.broadcast %cst_61 : f32 to vector<8x64xf32>
    %264 = arith.maximumf %262, %263 : vector<8x64xf32>
    %265 = arith.truncf %264 : vector<8x64xf32> to vector<8x64xbf16>
    %cst_62 = arith.constant dense<0.000000e+00> : vector<8x32xf32>
    %266 = tpu.matmul %265, %6, %cst_62 {dimension_numbers = #tpu.dot_dimension_numbers<[1], [0], [0], [1], [0, 0, 1, 1], [], []>} : vector<8x64xbf16>, vector<64x32xbf16>, vector<8x32xf32> -> vector<8x32xf32>
    %267 = vector.broadcast %7 : vector<1x32xf32> to vector<8x32xf32>
    %268 = arith.addf %266, %267 : vector<8x32xf32>
    %269 = vector.shape_cast %268 : vector<8x32xf32> to vector<1x8x32xf32>
    %270 = arith.addf %232, %269 : vector<1x8x32xf32>
    %c0_63 = arith.constant 0 : index
    %c0_64 = arith.constant 0 : index
    %271 = vector.load %arg14[%c0_63, %c0_64] : memref<1x32xf32, #tpu.memory_space<vmem>>, vector<1x32xf32>
    %c0_65 = arith.constant 0 : index
    %c0_66 = arith.constant 0 : index
    %272 = vector.load %arg15[%c0_65, %c0_66] : memref<1x32xf32, #tpu.memory_space<vmem>>, vector<1x32xf32>
    %cst_67 = arith.constant dense<0.000000e+00> : vector<1x8xf32>
    %273 = vector.multi_reduction <add>, %270, %cst_67 [2] : vector<1x8x32xf32> to vector<1x8xf32>
    %274 = vector.shape_cast %273 : vector<1x8xf32> to vector<1x8x1xf32>
    %cst_68 = arith.constant 3.200000e+01 : f32
    %275 = vector.broadcast %cst_68 : f32 to vector<1x8x1xf32>
    %276 = arith.divf %274, %275 : vector<1x8x1xf32>
    %277 = vector.broadcast %276 : vector<1x8x1xf32> to vector<1x8x32xf32>
    %278 = arith.subf %270, %277 : vector<1x8x32xf32>
    %279 = arith.mulf %278, %278 : vector<1x8x32xf32>
    %cst_69 = arith.constant dense<0.000000e+00> : vector<1x8xf32>
    %280 = vector.multi_reduction <add>, %279, %cst_69 [2] : vector<1x8x32xf32> to vector<1x8xf32>
    %281 = vector.shape_cast %280 : vector<1x8xf32> to vector<1x8x1xf32>
    %cst_70 = arith.constant 0.0322580636 : f32
    %282 = vector.broadcast %cst_70 : f32 to vector<1x8x1xf32>
    %283 = arith.mulf %281, %282 : vector<1x8x1xf32>
    %284 = math.sqrt %283 : vector<1x8x1xf32>
    %cst_71 = arith.constant 9.99999997E-7 : f32
    %285 = vector.broadcast %cst_71 : f32 to vector<1x8x1xf32>
    %286 = arith.addf %284, %285 : vector<1x8x1xf32>
    %287 = tpu.reciprocal %286 {approx = true} : vector<1x8x1xf32> -> vector<1x8x1xf32>
    %288 = vector.broadcast %276 : vector<1x8x1xf32> to vector<1x8x32xf32>
    %289 = arith.subf %270, %288 : vector<1x8x32xf32>
    %290 = vector.shape_cast %271 : vector<1x32xf32> to vector<1x1x32xf32>
    %291 = vector.broadcast %290 : vector<1x1x32xf32> to vector<1x8x32xf32>
    %292 = arith.mulf %291, %289 : vector<1x8x32xf32>
    %293 = vector.broadcast %287 : vector<1x8x1xf32> to vector<1x8x32xf32>
    %294 = arith.mulf %292, %293 : vector<1x8x32xf32>
    %295 = vector.shape_cast %272 : vector<1x32xf32> to vector<1x1x32xf32>
    %296 = vector.broadcast %295 : vector<1x1x32xf32> to vector<1x8x32xf32>
    %297 = arith.addf %294, %296 : vector<1x8x32xf32>
    %c0_72 = arith.constant 0 : index
    %c0_73 = arith.constant 0 : index
    %c0_74 = arith.constant 0 : index
    %298 = vector.load %arg16[%c0_72, %c0_73, %c0_74] : memref<1x8x32xf32, #tpu.memory_space<vmem>>, vector<1x8x32xf32>
    tpu.vector_store %arg16[%c0_72, %c0_73, %c0_74], %297 {strides = array<i32>} : memref<1x8x32xf32, #tpu.memory_space<vmem>>, vector<1x8x32xf32>,
    return
  }
  func.func @transform_0(%arg0: i32) -> (i32, i32, i32) {
    %c0_i32 = arith.constant 0 : i32
    %c0_i32_0 = arith.constant 0 : i32
    %c0_i32_1 = arith.constant 0 : i32
    return %arg0, %c0_i32, %c0_i32_0 : i32, i32, i32
  }
  func.func @transform_1(%arg0: i32) -> (i32, i32) {
    %c0_i32 = arith.constant 0 : i32
    %c0_i32_0 = arith.constant 0 : i32
    %c0_i32_1 = arith.constant 0 : i32
    return %c0_i32, %c0_i32_0 : i32, i32
  }
  func.func @transform_2(%arg0: i32) -> (i32, i32) {
    %c0_i32 = arith.constant 0 : i32
    %c0_i32_0 = arith.constant 0 : i32
    %c0_i32_1 = arith.constant 0 : i32
    return %c0_i32, %c0_i32_0 : i32, i32
  }
  func.func @transform_3(%arg0: i32) -> (i32, i32) {
    %c0_i32 = arith.constant 0 : i32
    %c0_i32_0 = arith.constant 0 : i32
    %c0_i32_1 = arith.constant 0 : i32
    return %c0_i32, %c0_i32_0 : i32, i32
  }
  func.func @transform_4(%arg0: i32) -> (i32, i32) {
    %c0_i32 = arith.constant 0 : i32
    %c0_i32_0 = arith.constant 0 : i32
    %c0_i32_1 = arith.constant 0 : i32
    return %c0_i32, %c0_i32_0 : i32, i32
  }
  func.func @transform_5(%arg0: i32) -> (i32, i32) {
    %c0_i32 = arith.constant 0 : i32
    %c0_i32_0 = arith.constant 0 : i32
    %c0_i32_1 = arith.constant 0 : i32
    return %c0_i32, %c0_i32_0 : i32, i32
  }
  func.func @transform_6(%arg0: i32) -> (i32, i32) {
    %c0_i32 = arith.constant 0 : i32
    %c0_i32_0 = arith.constant 0 : i32
    %c0_i32_1 = arith.constant 0 : i32
    return %c0_i32, %c0_i32_0 : i32, i32
  }
  func.func @transform_7(%arg0: i32) -> (i32, i32) {
    %c0_i32 = arith.constant 0 : i32
    %c0_i32_0 = arith.constant 0 : i32
    %c0_i32_1 = arith.constant 0 : i32
    return %c0_i32, %c0_i32_0 : i32, i32
  }
  func.func @transform_8(%arg0: i32) -> (i32, i32) {
    %c0_i32 = arith.constant 0 : i32
    %c0_i32_0 = arith.constant 0 : i32
    %c0_i32_1 = arith.constant 0 : i32
    return %c0_i32, %c0_i32_0 : i32, i32
  }
  func.func @transform_9(%arg0: i32) -> (i32, i32) {
    %c0_i32 = arith.constant 0 : i32
    %c0_i32_0 = arith.constant 0 : i32
    %c0_i32_1 = arith.constant 0 : i32
    return %c0_i32, %c0_i32_0 : i32, i32
  }
  func.func @transform_10(%arg0: i32) -> (i32, i32) {
    %c0_i32 = arith.constant 0 : i32
    %c0_i32_0 = arith.constant 0 : i32
    %c0_i32_1 = arith.constant 0 : i32
    return %c0_i32, %c0_i32_0 : i32, i32
  }
  func.func @transform_11(%arg0: i32) -> (i32, i32) {
    %c0_i32 = arith.constant 0 : i32
    %c0_i32_0 = arith.constant 0 : i32
    %c0_i32_1 = arith.constant 0 : i32
    return %c0_i32, %c0_i32_0 : i32, i32
  }
  func.func @transform_12(%arg0: i32) -> (i32, i32) {
    %c0_i32 = arith.constant 0 : i32
    %c0_i32_0 = arith.constant 0 : i32
    %c0_i32_1 = arith.constant 0 : i32
    return %c0_i32, %c0_i32_0 : i32, i32
  }
  func.func @transform_13(%arg0: i32) -> (i32, i32) {
    %c0_i32 = arith.constant 0 : i32
    %c0_i32_0 = arith.constant 0 : i32
    %c0_i32_1 = arith.constant 0 : i32
    return %c0_i32, %c0_i32_0 : i32, i32
  }
  func.func @transform_14(%arg0: i32) -> (i32, i32) {
    %c0_i32 = arith.constant 0 : i32
    %c0_i32_0 = arith.constant 0 : i32
    %c0_i32_1 = arith.constant 0 : i32
    return %c0_i32, %c0_i32_0 : i32, i32
  }
  func.func @transform_15(%arg0: i32) -> (i32, i32, i32) {
    %c0_i32 = arith.constant 0 : i32
    %c0_i32_0 = arith.constant 0 : i32
    %c0_i32_1 = arith.constant 0 : i32
    return %arg0, %c0_i32, %c0_i32_0 : i32, i32, i32
  }
}

</mosaic_0001>

<bundles_post_ra>
// kernel: tpu_custom_call.1
= control target key start
LH: loop header
LB: loop body
LE: loop exit
PB: predicated region body
PF: predicated region fallthrough
CT: control target
= control target key end

     0   :  { %s3237_s0 = inlined_call_operand.vmem [shape: f32[2,8,32], index: 0, kind: input, shape index: {}]   ;;  %s3238_s1 = inlined_call_operand.vmem [shape: bf16[32,96], index: 1, kind: input, shape index: {}]   ;;  %s3239_s2 = inlined_call_operand.vmem [shape: f32[1,96], index: 2, kind: input, shape index: {}]   ;;  %s3240_s3 = inlined_call_operand.vmem [shape: bf16[32,32], index: 3, kind: input, shape index: {}]   ;;  %s3241_s4 = inlined_call_operand.vmem [shape: f32[1,32], index: 4, kind: input, shape index: {}]   ;;  %s3242_s5 = inlined_call_operand.hbm [shape: bf16[32,64], index: 5, kind: input, shape index: {}]   ;;  %s3243_s6 = inlined_call_operand.vmem [shape: f32[1,64], index: 6, kind: input, shape index: {}]   ;;  %s3244_s7 = inlined_call_operand.vmem [shape: bf16[64,32], index: 7, kind: input, shape index: {}]   ;;  %s3245_s8 = inlined_call_operand.vmem [shape: f32[1,32], index: 8, kind: input, shape index: {}]   ;;  %s3246_s9 = inlined_call_operand.vmem [shape: f32[1,32], index: 9, kind: input, shape index: {}]   ;;  %s3247_s10 = inlined_call_operand.vmem [shape: f32[1,32], index: 10, kind: input, shape index: {}]   ;;  %s3248_s11 = inlined_call_operand.vmem [shape: f32[1,32], index: 11, kind: input, shape index: {}]   ;;  %s3249_s12 = inlined_call_operand.vmem [shape: f32[1,32], index: 12, kind: input, shape index: {}]   ;;  %s3250_s13 = inlined_call_operand.vmem [shape: f32[1,32], index: 13, kind: input, shape index: {}]   ;;  %s3251_s14 = inlined_call_operand.vmem [shape: f32[1,32], index: 14, kind: input, shape index: {}]   ;;  %s3252_s15 = inlined_call_operand.hbm [shape: f32[2,8,32], index: 15, kind: output, shape index: {}]  }
   0x1   :  { %3264 = sst [smem:[#allocation13_spill]] %s3237_s0 }
   0x2   :  { %20 = vsyncpa [#allocation3], 0 }
   0x3   :  { %21 = vsyncpa [#allocation4], 0 }
   0x4   :  { %23 = vsyncpa [#allocation4 + $0x1], 0  ;;  %s2746_s18 = smov 0   ;;  %s2748_s19 = smov 0  }
   0x5   :  { %s2750_s20 = smov 0   ;;  %s2752_s21 = smov 0  }
   0x6 LB: > { %3265 = sst [smem:[#allocation8_spill]] %s2638_s18  ;;  %s2767_s22 = sadd.s32 4294967295, %s2650_s21   ;;  %s2650_s21 = sphi %s2752_s21, %s3285_s21   ;;  %s2646_s20 = sphi %s2750_s20, %s3290_s20   ;;  %s2642_s19 = sphi %s2748_s19, %s3289_s19   ;;  %s2638_s18 = sphi %s2746_s18, %s3288_s18  }
   0x7   : > { %3266 = sst [smem:[#allocation9_spill]] %s2646_s20  ;;  %s2148_s23 = sadd.s32 4294967294, %s2650_s21  }
   0x8   : > { %s2771_s24 = sadd.s32 1, %s2650_s21   ;;  %s356_s25 = sadd.s32 1, %s2646_s20 }
   0x9   : > { %3267 = sst [smem:[#allocation10_spill]] %s2771_s24  ;;  %s353_s26 = ssub.s32 %s2650_s21, %s2771_s24 }
   0xa   : > { %p366_p0 = scmp.ne.s32.totalorder %s2646_s20, %s2642_s19  ;;  %p354_p1 = scmp.eq.s32.totalorder %s353_s26, 0 }
   0xb   : > { %p367_p2 = scmp.eq.s32.totalorder %s2767_s22, 1  ;;  %p372_p3 = scmp.ne.s32.totalorder %s2642_s19, %s2638_s18 }
   0xc   : > { %p373_p4 = scmp.eq.s32.totalorder %s2148_s23, 1  ;;  %p2149_p7 = scmp.ge.s32.totalorder %s2650_s21, 1 }
   0xd   : > { %s2782_s27 = scalar_select %p354_p1, %s2646_s20, %s356_s25  }
   0xe   : > { %p2784_p5 = por %p367_p2, %p366_p0  ;;  %p2788_p6 = por %p373_p4, %p372_p3 }
   0xf   : > { %3268 = sst [smem:[#allocation11_spill]] %s2782_s27  ;;  %p380_p8 = scmp.lt.s32.totalorder %s2650_s21, 3 }
  0x10   : > { %s3269_s28 = scalar_select %p2784_p5, 1, 0 }
  0x11   : > { %s3270_s29 = scalar_select %p2788_p6, 1, 0 }
  0x12   : > { %p3258_p9 = scmp.eq.s32.totalorder %s2767_s22, 0  ;;  %p2795_p10 = pnand %p2149_p7, %p380_p8 }
  0x13   : > { %3271 = sst [smem:[#allocation12_spill]] %s3270_s29  ;;  %s2652_s16 = smov [#allocation2]  }
  0x14   : > { %s3272_s30 = scalar_select %p2795_p10, 1, 0 }
  0x15   : > { %s404_s17 = sshll.u32 %s2652_s16, 4  ;;  %p2438_p11 = pneg %p2795_p10  ;;  %s405_s17 = int_to_ptr.vmem [resolvable:$true] %s404_s17 }
  0x16   : > { %s2556_s27 = scalar_lea.hbm %s3242_s5, 256 }
  0x17   : > { %p2803_p12 = pnand %p3258_p9, %p2438_p11  ;;  %p2557_p13 = scmp.ne.s32.totalorder %s3242_s5, %s2556_s27 }
  0x18   : > { %p2563_p3 = scmp.lt.u32.totalorder %s2556_s27, %s3242_s5 }
  0x19   : > { %p2558_p0 = pneg %p2803_p12 }
  0x1b   : > { %p2559_p1 = pnand %p2558_p0, %p2557_p13 }
  0x1d   : > { %p2560_p2 = pneg %p2559_p1 }
  0x1f   : > { %p2565_p4 = pnand %p2563_p3, %p2560_p2 }
  0x21   : > { %2568 = shalt.err (!%p2565_p4)
}
  0x22   : > { %s2569_s18 = scalar_lea.vmem %s405_s17, 256  ;;  %p2577_p9 = scmp.lt.s32.totalorder %s405_s17, %s405_s17 }
  0x23   : > { %p2570_p7 = scmp.ne.s32.totalorder %s405_s17, %s2569_s18  ;;  %p2578_p6 = scmp.lt.s32.totalorder %s2569_s18, %s2569_s18 }
  0x25   : > { %p2572_p8 = pnand %p2570_p7, %p2558_p0  ;;  %p2579_p5 = por %p2578_p6, %p2577_p9 }
  0x27   : > { %p2573_p11 = pneg %p2572_p8 }
  0x29   : > { %p2580_p10 = pnand %p2579_p5, %p2573_p11 }
  0x2b   : > { %2583 = shalt.err (!%p2580_p10)
}
  0x2c   : > { %s2653_s20 = smov 64   ;;  %s2654_s24 = smov 4  }
  0x2d   : > { %2441 = dma.hbm_to_vmem [thread:$0]  (!%p2803_p12), %s3242_s5, 256, %s405_s17, [#allocation3], %s2653_s20, %s2653_s20, %s2654_s24  }
  0x2e   : > { %p3274_p13 = scmp.ne.s32.totalorder %s3272_s30, 0 }
  0x2f   : > { %p3275_p1 = scmp.eq.s32.totalorder (!%p3274_p13), %s2767_s22, 0 }
  0x30   : > { %454 = sbr.rel (%p3274_p13) target bundleno = 5658 (0x161a), region = 80 }
  0x37   : > { %2629 = dma.done.wait (%p3275_p1), [#allocation3], 256   ;;  %p3276_p0 = pmov %p3275_p1 }
  0x38   : > { %p501_p5 = scmp.lt.s32.totalorder %s2767_s22, 1  ;;  %s3277_s0 = sld [smem:[#allocation13_spill]]  ;;  %vm535_vm0 = vcmask 261120   ;;  %v2843_v7 = vld [vmem:[%s3238_s1] sm:$0xff]   ;;  %v2655_v8 = vmov 0.0   ;;  %vm2656_vm1 = vmmov 0  }
  0x39   : > { %2631 = vsyncadd (%p3276_p0), [#allocation3], 4294967040  ;;  %2264 = vmatprep.subr.bf16.mxu1 %v2655_v8  ;;  %2268 = vmatprep.mubr.msk.bf16.mxu1 %vm2656_vm1, %v2655_v8  ;;  %v2852_v9 = vld [vmem:[%s3238_s1 + $0x8] sm:$0xff]   ;;  %v2863_v18 = vld [vmem:[%s3246_s9] ss:$0 sm:$0xff]  ;;  %s2658_s30 = smov 120  }
  0x3a   : > { %s502_s18 = scalar_select %p501_p5, %s2767_s22, 1  ;;  %2265 = vmatpush3.bf16.msra.mxu1 %v2843_v7  ;;  %2278 = vmatprep.subr.bf16.mxu0 %v2655_v8  ;;  %v2869_v21 = vld [vmem:[%s3247_s10] ss:$0 sm:$0xff]  ;;  %vm650_vm4 = vcmask 64512   ;;  %vm897_vm5 = vcmask 1043456   ;;  %vm1098_vm6 = vcmask 130048  }
  0x3b   : > { %2266 = vmatprep.subr.bf16.mxu1 %v2655_v8  ;;  %2280 = vmatprep.mubr.msk.bf16.mxu0 %vm2656_vm1, %v2655_v8  ;;  %v2878_v25 = vld [vmem:[%s3239_s2] ss:$0 sm:$0xff]  ;;  %s2659_s17 = smov 112   ;;  %s2660_s20 = smov 96   ;;  %vm1100_vm7 = vcmask 195584   ;;  %vm1293_vm10 = vcmask 523264  }
  0x3c   : > { %s2155_s27 = sshll.u32 %s502_s18, 3  ;;  %s2661_s24 = smov 64  }
  0x3d   : > { %s3262_s29 = smov 8   ;;  %s3263_s23 = smov 16  }
  0x3e   : > { %s504_s16 = scalar_lea.vmem %s3277_s0, %s2155_s27  ;;  %2267 = vmatpush3.bf16.msra.mxu1 %v2852_v9  ;;  %s3261_s25 = smov 24  }
  0x3f   : > { %v2834_v0 = vld [vmem:[%s504_s16] sm:$0xff]  ;;  %2272 = vmatprep.subr.bf16.mxu1 %v2655_v8  ;;  %s2657_s16 = smov 104   ;;  %p3281_p9 = scmp.ne.s32.totalorder %s3269_s28, 0 }
  0x40   : > { %v536_v1 = vsel %vm535_vm0, %v2834_v0, 0.0 }
  0x41   : > { %537 = vadd.xlane.f32.xlu0 %v536_v1 }
  0xce   : > { %v538_v2 = vpop.xlane.xlu0 %537 }
  0xcf   : > { %v540_v3 = vmul.f32 0.03125, %v538_v2 }
  0xd1   : > { %v541_v4 = vsub.f32 %v2834_v0, %v540_v3 }
  0xd3   : > { %v542_v5 = vmul.f32 %v541_v4, %v541_v4  ;;  %v562_v19 = vmul.f32 %v2863_v18, %v541_v4 }
  0xd5   : > { %v543_v6 = vsel %vm535_vm0, %v542_v5, 0.0 }
  0xd6   : > { %544 = vadd.xlane.f32.xlu0 %v543_v6 }
 0x163   : > { %v545_v10 = vpop.xlane.xlu0 %544 }
 0x164   : > { %v546_v11 = vmul.f32 0.032258064, %v545_v10 }
 0x166   : > { %2504 = vrsqrt.f32 %v546_v11  ;;  %vm549_vm2 = vcmp.eq.f32.partialorder %v546_v11, inf  ;;  %v552_v14 = vand.u32 2147483648, %v546_v11  ;;  %vm551_vm3 = vcmp.eq.f32.partialorder %v546_v11, 0.0 }
 0x170   : > { %v2505_v12 = vpop.eup %2504 }
 0x171   : > { %v548_v13 = vmul.f32 %v2505_v12, %v546_v11 }
 0x173   : > { %v550_v15 = vsel %vm549_vm2, %v546_v11, %v548_v13 }
 0x174   : > { %v553_v16 = vsel %vm551_vm3, %v552_v14, %v550_v15 }
 0x175   : > { %v554_v17 = vadd.f32 1e-06, %v553_v16 }
 0x177   : > { %2506 = vrcp.f32 %v554_v17 }
 0x181   : > { %v2507_v20 = vpop.eup %2506 }
 0x182   : > { %v563_v22 = vmul.f32 %v2507_v20, %v562_v19 }
 0x184   : > { %v570_v23 = vadd.f32 %v2869_v21, %v563_v22 }
 0x186   : > { %v571_v24 = vpack.c.bf16 %v570_v23, %v570_v23 }
 0x188   : > { %2269 = vmatmul.mubr.msk.bf16.vlgmr.msra.gmra.mrb[0].mxu1 %vm535_vm0, %v571_v24 }
 0x189   : > { %2274 = vmatprep.mubr.msk.bf16.mxu1 %vm2656_vm1, %v2655_v8 }
 0x25b   : > { %v627_v26 = vpop.f32.mrb[0].mxu1 }
 0x25c   : > { %v628_v27 = vadd.f32 %v2878_v25, %v627_v26  ;;  %v2270_v28 = vpop.f32.mrb[1].mxu1 }
 0x25d   : > { %v630_v29 = vpop.f32.mrb[2].mxu1 }
 0x25e   : > { %640 = vrot.lane.b32.xlu0 %v628_v27, %s2657_s16  ;;  %634 = vrot.lane.b32.xlu1 %v628_v27, %s2658_s30  ;;  %v2271_v30 = vpop.f32.mrb[3].mxu1  ;;  %v643_v31 = vpack.c.bf16 %v628_v27, %v628_v27 }
 0x262   : > { %637 = vrot.lane.b32.xlu1 %v628_v27, %s2659_s17 }
 0x266   : > { %648 = vrot.lane.b32.xlu1 %v643_v31, %s2660_s20 }
 0x2d0   : > { %v635_v32 = vpop.permute.xlu1 %634  ;;  %v641_v36 = vpop.permute.xlu0 %640 }
 0x2d1   : > { %v2885_v33 = vpack.c.bf16 %v635_v32, %v635_v32  ;;  %v2893_v38 = vpack.c.bf16 %v641_v36, %v641_v36 }
 0x2d3   : > { %698 = vrot.lane.b32.xlu1 %v2885_v33, %s2660_s20 }
 0x2d4   : > { %v638_v34 = vpop.permute.xlu1 %637 }
 0x2d5   : > { %v2889_v35 = vpack.c.bf16 %v638_v34, %v638_v34 }
 0x2d7   : > { %747 = vrot.lane.b32.xlu1 %v2889_v35, %s2660_s20 }
 0x2d8   : > { %v649_v37 = vpop.permute.xlu1 %648 }
 0x2d9   : > { %v655_v39 = vsel %vm650_vm4, %v649_v37, 0 }
 0x2da   : > { %2273 = vmatpush3.bf16.xpose.msra.mxu1 %v655_v39 }
 0x2db   : > { %796 = vrot.lane.b32.xlu1 %v2893_v38, %s2660_s20  ;;  %2284 = vmatprep.subr.bf16.mxu1 %v2655_v8 }
 0x2e1   : > { %2275 = vmatmul.mubr.msk.bf16.vlgmr.msra.gmra.mrb[4].mxu1 %vm650_vm4, %v643_v31 }
 0x2e2   : > { %2286 = vmatprep.mubr.msk.bf16.mxu1 %vm2656_vm1, %v2655_v8 }
 0x345   : > { %v699_v40 = vpop.permute.xlu1 %698 }
 0x346   : > { %v704_v41 = vsel %vm650_vm4, %v699_v40, 0 }
 0x347   : > { %2279 = vmatpush3.bf16.xpose.msra.mxu0 %v704_v41 }
 0x348   : > { %2290 = vmatprep.subr.bf16.mxu0 %v2655_v8 }
 0x349   : > { %v748_v42 = vpop.permute.xlu1 %747 }
 0x34a   : > { %v753_v43 = vsel %vm650_vm4, %v748_v42, 0 }
 0x34b   : > { %2285 = vmatpush3.bf16.xpose.msra.mxu1 %v753_v43 }
 0x34c   : > { %2296 = vmatprep.subr.bf16.mxu1 %v2655_v8 }
 0x34d   : > { %v797_v44 = vpop.permute.xlu1 %796 }
 0x34e   : > { %v802_v45 = vsel %vm650_vm4, %v797_v44, 0  ;;  %2281 = vmatmul.mubr.msk.bf16.vlgmr.msra.gmra.mrb[0].mxu0 %vm650_vm4, %v2885_v33 }
 0x34f   : > { %2291 = vmatpush3.bf16.xpose.msra.mxu0 %v802_v45  ;;  %2292 = vmatprep.mubr.msk.bf16.mxu0 %vm2656_vm1, %v2655_v8 }
 0x350   : > { %2302 = vmatprep.subr.bf16.mxu0 %v2655_v8 }
 0x352   : > { %2287 = vmatmul.mubr.msk.bf16.vlgmr.msra.gmra.mrb[8].mxu1 %vm650_vm4, %v2889_v35 }
 0x353   : > { %2298 = vmatprep.mubr.msk.bf16.mxu1 %vm2656_vm1, %v2655_v8 }
 0x356   : > { %2293 = vmatmul.mubr.msk.bf16.vlgmr.msra.gmra.mrb[4].mxu0 %vm650_vm4, %v2893_v38 }
 0x357   : > { %2304 = vmatprep.mubr.msk.bf16.mxu0 %vm2656_vm1, %v2655_v8 }
 0x3b4   : > { %v691_v46 = vpop.f32.mrb[4].mxu1 }
 0x3b5   : > { %v2276_v47 = vpop.f32.mrb[5].mxu1  ;;  %v844_v48 = vsel %vm650_vm4, %v691_v46, -inf }
 0x3b6   : > { %845 = vmax.xlane.f32.xlu1 %v844_v48  ;;  %v694_v49 = vpop.f32.mrb[6].mxu1 }
 0x3b7   : > { %v2277_v50 = vpop.f32.mrb[7].mxu1 }
 0x421   : > { %v740_v51 = vpop.f32.mrb[0].mxu0 }
 0x422   : > { %v2282_v52 = vpop.f32.mrb[1].mxu0  ;;  %v847_v53 = vsel %vm650_vm4, %v740_v51, -inf }
 0x423   : > { %848 = vmax.xlane.f32.xlu0 %v847_v53  ;;  %v743_v54 = vpop.f32.mrb[2].mxu0 }
 0x424   : > { %v2283_v55 = vpop.f32.mrb[3].mxu0 }
 0x425   : > { %v789_v56 = vpop.f32.mrb[8].mxu1 }
 0x426   : > { %v2288_v57 = vpop.f32.mrb[9].mxu1  ;;  %v850_v58 = vsel %vm650_vm4, %v789_v56, -inf }
 0x427   : > { %851 = vmax.xlane.f32.xlu1 %v850_v58  ;;  %v792_v59 = vpop.f32.mrb[10].mxu1  ;;  %v2958_v57 = vld [vmem:[%s3240_s3] sm:$0xff]   ;;  %v2965_v58 = vld [vmem:[%s3240_s3 + $0x8] sm:$0xff]  }
 0x428   : > { %v2289_v60 = vpop.f32.mrb[11].mxu1 }
 0x429   : > { %v838_v61 = vpop.f32.mrb[4].mxu0 }
 0x42a   : > { %v2294_v62 = vpop.f32.mrb[5].mxu0  ;;  %v853_v63 = vsel %vm650_vm4, %v838_v61, -inf }
 0x42b   : > { %854 = vmax.xlane.f32.xlu0 %v853_v63  ;;  %v841_v1 = vpop.f32.mrb[6].mxu0 }
 0x42c   : > { %v2295_v2 = vpop.f32.mrb[7].mxu0 }
 0x438   : > { %892 = vrot.lane.b32.xlu1 %v643_v31, %s2661_s24 }
 0x443   : > { %v846_v3 = vpop.xlane.xlu1 %845 }
 0x444   : > { %v856_v4 = vsub.f32 %v691_v46, %v846_v3 }
 0x446   : > { %v860_v5 = vmul.f32 1.442695, %v856_v4 }
 0x448   : > { %2508 = vpow2.f32 %v860_v5 }
 0x452   : > { %v2509_v6 = vpop.eup %2508 }
 0x453   : > { %v868_v10 = vsel %vm650_vm4, %v2509_v6, 0.0 }
 0x45c   : > { %869 = vadd.xlane.f32.xlu1 %v868_v10 }
 0x4b0   : > { %v849_v11 = vpop.xlane.xlu0 %848 }
 0x4b1   : > { %v857_v12 = vsub.f32 %v740_v51, %v849_v11 }
 0x4b3   : > { %v862_v13 = vmul.f32 1.442695, %v857_v12 }
 0x4b4   : > { %v852_v14 = vpop.xlane.xlu1 %851 }
 0x4b5   : > { %2510 = vpow2.f32 %v862_v13  ;;  %v858_v15 = vsub.f32 %v789_v56, %v852_v14 }
 0x4b7   : > { %v864_v16 = vmul.f32 1.442695, %v858_v15 }
 0x4b8   : > { %v855_v17 = vpop.xlane.xlu0 %854  ;;  %v893_v19 = vpop.permute.xlu1 %892 }
 0x4b9   : > { %2512 = vpow2.f32 %v864_v16  ;;  %v859_v20 = vsub.f32 %v838_v61, %v855_v17  ;;  %v899_v22 = vsel %vm897_vm5, %v893_v19, 0  ;;  %v2981_v19 = vld [vmem:[%s3241_s4] ss:$0 sm:$0xff] }
 0x4ba   : > { %2297 = vmatpush3.bf16.msra.mxu1 %v899_v22 }
 0x4bb   : > { %v866_v23 = vmul.f32 1.442695, %v859_v20  ;;  %2308 = vmatprep.subr.bf16.mxu1 %v2655_v8 }
 0x4bd   : > { %2514 = vpow2.f32 %v866_v23 }
 0x4bf   : > { %v2511_v24 = vpop.eup %2510 }
 0x4c0   : > { %v871_v26 = vsel %vm650_vm4, %v2511_v24, 0.0 }
 0x4c1   : > { %872 = vadd.xlane.f32.xlu0 %v871_v26 }
 0x4c3   : > { %v2513_v27 = vpop.eup %2512 }
 0x4c4   : > { %v874_v28 = vsel %vm650_vm4, %v2513_v27, 0.0 }
 0x4c5   : > { %875 = vadd.xlane.f32.xlu1 %v874_v28 }
 0x4c7   : > { %v2515_v29 = vpop.eup %2514 }
 0x4c8   : > { %v877_v30 = vsel %vm650_vm4, %v2515_v29, 0.0 }
 0x4c9   : > { %878 = vadd.xlane.f32.xlu0 %v877_v30 }
 0x4d6   : > { %989 = vrot.lane.b32.xlu1 %v2889_v35, %s2661_s24 }
 0x4da   : > { %1037 = vrot.lane.b32.xlu1 %v2893_v38, %s2661_s24 }
 0x4df   : > { %941 = vrot.lane.b32.xlu0 %v2885_v33, %s2661_s24 }
 0x4e9   : > { %v870_v31 = vpop.xlane.xlu1 %869 }
 0x4ea   : > { %2516 = vrcp.f32 %v870_v31 }
 0x4f4   : > { %v2517_v32 = vpop.eup %2516 }
 0x4f5   : > { %v884_v34 = vmul.f32 %v2517_v32, %v2509_v6 }
 0x4f7   : > { %v888_v36 = vpack.c.bf16 %v884_v34, %v884_v34 }
 0x4f9   : > { %2299 = vmatmul.mubr.msk.bf16.vlgmr.msra.gmra.mrb[12].mxu1 %vm650_vm4, %v888_v36  ;;  %v2991_v36 = vld [vmem:[#allocation2] sm:$0xff]  }
 0x4fa   : > { %2310 = vmatprep.mubr.msk.bf16.mxu1 %vm2656_vm1, %v2655_v8 }
 0x54e   : > { %v873_v37 = vpop.xlane.xlu0 %872 }
 0x54f   : > { %2518 = vrcp.f32 %v873_v37  ;;  %v2994_v37 = vld [vmem:[#allocation2 + $0x8] sm:$0xff]  }
 0x552   : > { %v876_v39 = vpop.xlane.xlu1 %875 }
 0x553   : > { %2520 = vrcp.f32 %v876_v39  ;;  %v3008_v39 = vld [vmem:[%s3244_s7 + $0x8] sm:$0xff]  }
 0x556   : > { %v879_v35 = vpop.xlane.xlu0 %878  ;;  %v990_v40 = vpop.permute.xlu1 %989 }
 0x557   : > { %2522 = vrcp.f32 %v879_v35  ;;  %v995_v38 = vsel %vm897_vm5, %v990_v40, 0 }
 0x558   : > { %2309 = vmatpush3.bf16.msra.mxu1 %v995_v38 }
 0x559   : > { %v2519_v33 = vpop.eup %2518  ;;  %2320 = vmatprep.subr.bf16.mxu1 %v2655_v8 }
 0x55a   : > { %v885_v41 = vmul.f32 %v2519_v33, %v2511_v24  ;;  %v942_v42 = vpop.permute.xlu0 %941  ;;  %v1038_v44 = vpop.permute.xlu1 %1037 }
 0x55b   : > { %v947_v43 = vsel %vm897_vm5, %v942_v42, 0  ;;  %v1043_v48 = vsel %vm897_vm5, %v1038_v44, 0 }
 0x55c   : > { %2303 = vmatpush3.bf16.msra.mxu0 %v947_v43  ;;  %v889_v45 = vpack.c.bf16 %v885_v41, %v885_v41 }
 0x55d   : > { %v2521_v46 = vpop.eup %2520  ;;  %2314 = vmatprep.subr.bf16.mxu0 %v2655_v8 }
 0x55e   : > { %v886_v47 = vmul.f32 %v2521_v46, %v2513_v27 }
 0x55f   : > { %2305 = vmatmul.mubr.msk.bf16.vlgmr.msra.gmra.mrb[8].mxu0 %vm650_vm4, %v889_v45  ;;  %v3016_v45 = vld [vmem:[%s3248_s11] ss:$0 sm:$0xff] }
 0x560   : > { %2315 = vmatpush3.bf16.msra.mxu0 %v1043_v48  ;;  %v890_v49 = vpack.c.bf16 %v886_v47, %v886_v47  ;;  %2316 = vmatprep.mubr.msk.bf16.mxu0 %vm2656_vm1, %v2655_v8  ;;  %v3022_v48 = vld [vmem:[%s3249_s12] ss:$0 sm:$0xff] }
 0x561   : > { %v2523_v50 = vpop.eup %2522  ;;  %2328 = vmatprep.subr.bf16.mxu0 %v2655_v8 }
 0x562   : > { %v887_v51 = vmul.f32 %v2523_v50, %v2515_v29  ;;  %2311 = vmatmul.mubr.msk.bf16.vlgmr.msra.gmra.mrb[16].mxu1 %vm650_vm4, %v890_v49 }
 0x563   : > { %2324 = vmatprep.mubr.msk.bf16.mxu1 %vm2656_vm1, %v2655_v8  ;;  %2321 = vmatpush3.bf16.msra.mxu1 %v2958_v57 }
 0x564   : > { %v891_v52 = vpack.c.bf16 %v887_v51, %v887_v51  ;;  %2322 = vmatprep.subr.bf16.mxu1 %v2655_v8 }
 0x567   : > { %2317 = vmatmul.mubr.msk.bf16.vlgmr.msra.gmra.mrb[12].mxu0 %vm650_vm4, %v891_v52  ;;  %2323 = vmatpush3.bf16.msra.mxu1 %v2965_v58  ;;  %v3035_v52 = vld [vmem:[%s3244_s7 + $0x10] sm:$0xff]  }
 0x568   : > { %2332 = vmatprep.mubr.msk.bf16.mxu0 %vm2656_vm1, %v2655_v8  ;;  %2336 = vmatprep.subr.bf16.mxu1 %v2655_v8 }
 0x569   : > { %2329 = vmatpush3.bf16.msra.mxu0 %v2991_v36 }
 0x56a   : > { %2330 = vmatprep.subr.bf16.mxu0 %v2655_v8 }
 0x56d   : > { %2331 = vmatpush3.bf16.msra.mxu0 %v2994_v37 }
 0x56e   : > { %2348 = vmatprep.subr.bf16.mxu0 %v2655_v8 }
 0x5cc   : > { %v935_v53 = vpop.f32.mrb[12].mxu1 }
 0x5cd   : > { %v2300_v54 = vpop.f32.mrb[13].mxu1 }
 0x5ce   : > { %v938_v55 = vpop.f32.mrb[14].mxu1 }
 0x5cf   : > { %v2301_v56 = vpop.f32.mrb[15].mxu1 }
 0x632   : > { %v983_v59 = vpop.f32.mrb[8].mxu0 }
 0x633   : > { %1086 = vrot.lane.b32.xlu0 %v983_v59, %s3262_s29  ;;  %v2306_v60 = vpop.f32.mrb[9].mxu0 }
 0x634   : > { %v986_v61 = vpop.f32.mrb[10].mxu0 }
 0x635   : > { %v2307_v62 = vpop.f32.mrb[11].mxu0  ;;  %v1031_v63 = vpop.f32.mrb[16].mxu1 }
 0x636   : > { %1090 = vrot.lane.b32.xlu1 %v1031_v63, %s3263_s23  ;;  %v2312_v1 = vpop.f32.mrb[17].mxu1  ;;  %v3058_v62 = vld [vmem:[%s3245_s8] ss:$0 sm:$0xff] }
 0x637   : > { %v1034_v2 = vpop.f32.mrb[18].mxu1 }
 0x638   : > { %v2313_v3 = vpop.f32.mrb[19].mxu1 }
 0x63a   : > { %v1079_v4 = vpop.f32.mrb[12].mxu0 }
 0x63b   : > { %1094 = vrot.lane.b32.xlu0 %v1079_v4, %s3261_s25  ;;  %v2318_v5 = vpop.f32.mrb[13].mxu0  ;;  %s2201_s25 = sshll.u32 %s2767_s22, 7  ;;  %s2665_s22 = smov [#allocation5]  }
 0x63c   : > { %v1082_v6 = vpop.f32.mrb[14].mxu0  ;;  %s3194_s0 = scalar_lea.hbm %s3252_s15, %s2201_s25 }
 0x63d   : > { %v2319_v10 = vpop.f32.mrb[15].mxu0 }
 0x6a5   : > { %v1087_v11 = vpop.permute.xlu0 %1086 }
 0x6a6   : > { %v1097_v13 = vsel %vm650_vm4, %v935_v53, %v1087_v11 }
 0x6a8   : > { %v1091_v12 = vpop.permute.xlu1 %1090 }
 0x6a9   : > { %v1099_v14 = vsel %vm1098_vm6, %v1097_v13, %v1091_v12 }
 0x6ad   : > { %v1095_v15 = vpop.permute.xlu0 %1094 }
 0x6ae   : > { %v1101_v16 = vsel %vm1100_vm7, %v1099_v14, %v1095_v15 }
 0x6af   : > { %v1102_v17 = vpack.c.bf16 %v1101_v16, %v1101_v16 }
 0x6b1   : > { %2325 = vmatmul.mubr.msk.bf16.vlgmr.msra.gmra.mrb[20].mxu1 %vm535_vm0, %v1102_v17 }
 0x6b2   : > { %2344 = vmatprep.mubr.msk.bf16.mxu1 %vm2656_vm1, %v2655_v8 }
 0x784   : > { %v1158_v20 = vpop.f32.mrb[20].mxu1 }
 0x785   : > { %v1159_v22 = vadd.f32 %v2981_v19, %v1158_v20  ;;  %v2326_v23 = vpop.f32.mrb[21].mxu1 }
 0x786   : > { %v1161_v24 = vpop.f32.mrb[22].mxu1 }
 0x787   : > { %v2985_v26 = vadd.f32 %v1159_v22, %v2834_v0  ;;  %v2327_v27 = vpop.f32.mrb[23].mxu1  ;;  %v3002_v0 = vld [vmem:[%s3244_s7] sm:$0xff]  }
 0x788   : > { %2337 = vmatpush3.bf16.msra.mxu1 %v3002_v0 }
 0x789   : > { %v1165_v28 = vsel %vm535_vm0, %v2985_v26, 0.0  ;;  %2338 = vmatprep.subr.bf16.mxu1 %v2655_v8 }
 0x78a   : > { %1166 = vadd.xlane.f32.xlu1 %v1165_v28 }
 0x78c   : > { %2339 = vmatpush3.bf16.msra.mxu1 %v3008_v39 }
 0x78d   : > { %2340 = vmatprep.subr.bf16.mxu1 %v2655_v8 }
 0x790   : > { %2341 = vmatpush3.bf16.msra.mxu1 %v3035_v52 }
 0x791   : > { %2342 = vmatprep.subr.bf16.mxu1 %v2655_v8 }
 0x817   : > { %v1167_v29 = vpop.xlane.xlu1 %1166 }
 0x818   : > { %v1168_v30 = vmul.f32 0.03125, %v1167_v29 }
 0x81a   : > { %v1169_v31 = vsub.f32 %v2985_v26, %v1168_v30 }
 0x81c   : > { %v1170_v32 = vmul.f32 %v1169_v31, %v1169_v31  ;;  %v1190_v46 = vmul.f32 %v3016_v45, %v1169_v31 }
 0x81e   : > { %v1171_v34 = vsel %vm535_vm0, %v1170_v32, 0.0 }
 0x81f   : > { %1172 = vadd.xlane.f32.xlu0 %v1171_v34 }
 0x8ac   : > { %v1173_v35 = vpop.xlane.xlu0 %1172 }
 0x8ad   : > { %v1174_v40 = vmul.f32 0.032258064, %v1173_v35 }
 0x8af   : > { %2524 = vrsqrt.f32 %v1174_v40  ;;  %vm1177_vm8 = vcmp.eq.f32.partialorder %v1174_v40, inf  ;;  %v1180_v41 = vand.u32 2147483648, %v1174_v40  ;;  %vm1179_vm9 = vcmp.eq.f32.partialorder %v1174_v40, 0.0 }
 0x8b9   : > { %v2525_v38 = vpop.eup %2524 }
 0x8ba   : > { %v1176_v33 = vmul.f32 %v2525_v38, %v1174_v40 }
 0x8bc   : > { %v1178_v42 = vsel %vm1177_vm8, %v1174_v40, %v1176_v33 }
 0x8bd   : > { %v1181_v43 = vsel %vm1179_vm9, %v1180_v41, %v1178_v42 }
 0x8be   : > { %v1182_v44 = vadd.f32 1e-06, %v1181_v43 }
 0x8c0   : > { %2526 = vrcp.f32 %v1182_v44 }
 0x8ca   : > { %v2527_v47 = vpop.eup %2526 }
 0x8cb   : > { %v1191_v49 = vmul.f32 %v2527_v47, %v1190_v46 }
 0x8cd   : > { %v1198_v50 = vadd.f32 %v3022_v48, %v1191_v49 }
 0x8cf   : > { %v1199_v51 = vpack.c.bf16 %v1198_v50, %v1198_v50 }
 0x8d1   : > { %2333 = vmatmul.mubr.msk.bf16.vlgmr.msra.gmra.mrb[16].mxu0 %vm535_vm0, %v1199_v51 }
 0x8d2   : > { %2349 = vmatpush3.bf16.msra.mxu0 %v2843_v7  ;;  %2352 = vmatprep.mubr.msk.bf16.mxu0 %vm2656_vm1, %v2655_v8  ;;  %v3042_v7 = vld [vmem:[%s3244_s7 + $0x18] sm:$0xff]  }
 0x8d3   : > { %2350 = vmatprep.subr.bf16.mxu0 %v2655_v8  ;;  %2343 = vmatpush3.bf16.msra.mxu1 %v3042_v7 }
 0x8d4   : > { %2362 = vmatprep.subr.bf16.mxu1 %v2655_v8 }
 0x8d6   : > { %2351 = vmatpush3.bf16.msra.mxu0 %v2852_v9  ;;  %v3049_v9 = vld [vmem:[%s3243_s6] ss:$0 sm:$0xff] }
 0x8d7   : > { %2356 = vmatprep.subr.bf16.mxu0 %v2655_v8 }
 0x9a4   : > { %v1255_v53 = vpop.f32.mrb[16].mxu0 }
 0x9a5   : > { %v1256_v54 = vadd.f32 %v3049_v9, %v1255_v53  ;;  %v2334_v55 = vpop.f32.mrb[17].mxu0 }
 0x9a6   : > { %v1258_v56 = vpop.f32.mrb[18].mxu0 }
 0x9a7   : > { %v1261_v59 = vmax.f32 %v1256_v54, 0.0  ;;  %v2335_v60 = vpop.f32.mrb[19].mxu0 }
 0x9a9   : > { %v1262_v61 = vpack.c.bf16 %v1261_v59, %v1261_v59 }
 0x9ab   : > { %2345 = vmatmul.mubr.msk.bf16.vlgmr.msra.gmra.mrb[24].mxu1 %vm1293_vm10, %v1262_v61 }
 0x9ac   : > { %2364 = vmatprep.mubr.msk.bf16.mxu1 %vm2656_vm1, %v2655_v8 }
 0xa7e   : > { %v1331_v63 = vpop.f32.mrb[24].mxu1 }
 0xa7f   : > { %v1332_v1 = vadd.f32 %v3058_v62, %v1331_v63  ;;  %v2346_v2 = vpop.f32.mrb[25].mxu1 }
 0xa80   : > { %v1334_v3 = vpop.f32.mrb[26].mxu1 }
 0xa81   : > { %v3062_v4 = vadd.f32 %v1332_v1, %v2985_v26  ;;  %v2347_v5 = vpop.f32.mrb[27].mxu1 }
 0xa83   : > { %v1338_v6 = vsel %vm535_vm0, %v3062_v4, 0.0 }
 0xa84   : > { %1339 = vadd.xlane.f32.xlu0 %v1338_v6 }
 0xb11   : > { %v1340_v10 = vpop.xlane.xlu0 %1339 }
 0xb12   : > { %v1341_v11 = vmul.f32 0.03125, %v1340_v10 }
 0xb14   : > { %v1342_v12 = vsub.f32 %v3062_v4, %v1341_v11 }
 0xb16   : > { %v1343_v13 = vmul.f32 %v1342_v12, %v1342_v12  ;;  %v1357_v27 = vmul.f32 %v2863_v18, %v1342_v12 }
 0xb18   : > { %v1344_v14 = vsel %vm535_vm0, %v1343_v13, 0.0 }
 0xb19   : > { %1345 = vadd.xlane.f32.xlu1 %v1344_v14 }
 0xba6   : > { %v1346_v15 = vpop.xlane.xlu1 %1345 }
 0xba7   : > { %v1347_v16 = vmul.f32 0.032258064, %v1346_v15 }
 0xba9   : > { %2528 = vrsqrt.f32 %v1347_v16  ;;  %vm1350_vm11 = vcmp.eq.f32.partialorder %v1347_v16, inf  ;;  %v1353_v22 = vand.u32 2147483648, %v1347_v16  ;;  %vm1352_vm12 = vcmp.eq.f32.partialorder %v1347_v16, 0.0 }
 0xbb3   : > { %v2529_v17 = vpop.eup %2528 }
 0xbb4   : > { %v1349_v20 = vmul.f32 %v2529_v17, %v1347_v16 }
 0xbb6   : > { %v1351_v23 = vsel %vm1350_vm11, %v1347_v16, %v1349_v20 }
 0xbb7   : > { %v1354_v24 = vsel %vm1352_vm12, %v1353_v22, %v1351_v23 }
 0xbb8   : > { %v1355_v26 = vadd.f32 1e-06, %v1354_v24 }
 0xbba   : > { %2530 = vrcp.f32 %v1355_v26 }
 0xbc4   : > { %v2531_v28 = vpop.eup %2530 }
 0xbc5   : > { %v1358_v29 = vmul.f32 %v2531_v28, %v1357_v27 }
 0xbc7   : > { %v1359_v30 = vadd.f32 %v2869_v21, %v1358_v29 }
 0xbc9   : > { %v1360_v31 = vpack.c.bf16 %v1359_v30, %v1359_v30 }
 0xbcb   : > { %2353 = vmatmul.mubr.msk.bf16.vlgmr.msra.gmra.mrb[20].mxu0 %vm535_vm0, %v1360_v31 }
 0xbcc   : > { %2358 = vmatprep.mubr.msk.bf16.mxu0 %vm2656_vm1, %v2655_v8 }
 0xc9e   : > { %v1398_v32 = vpop.f32.mrb[20].mxu0 }
 0xc9f   : > { %v1399_v34 = vadd.f32 %v2878_v25, %v1398_v32  ;;  %v2354_v35 = vpop.f32.mrb[21].mxu0 }
 0xca0   : > { %v1401_v40 = vpop.f32.mrb[22].mxu0 }
 0xca1   : > { %1408 = vrot.lane.b32.xlu1 %v1399_v34, %s2659_s17  ;;  %1405 = vrot.lane.b32.xlu0 %v1399_v34, %s2658_s30  ;;  %v2355_v18 = vpop.f32.mrb[23].mxu0  ;;  %v1414_v38 = vpack.c.bf16 %v1399_v34, %v1399_v34  ;;  %s3279_s30 = smov 8   ;;  %s3280_s17 = smov 24  }
 0xca5   : > { %1411 = vrot.lane.b32.xlu1 %v1399_v34, %s2657_s16  ;;  %1419 = vrot.lane.b32.xlu0 %v1414_v38, %s2660_s20  ;;  %s3278_s16 = smov 16  }
 0xd13   : > { %v1409_v21 = vpop.permute.xlu1 %1408  ;;  %v1406_v33 = vpop.permute.xlu0 %1405 }
 0xd14   : > { %v3078_v41 = vpack.c.bf16 %v1409_v21, %v1409_v21  ;;  %v3080_v42 = vpack.c.bf16 %v1406_v33, %v1406_v33 }
 0xd16   : > { %1468 = vrot.lane.b32.xlu1 %v3080_v42, %s2660_s20  ;;  %1517 = vrot.lane.b32.xlu0 %v3078_v41, %s2660_s20 }
 0xd17   : > { %v1412_v25 = vpop.permute.xlu1 %1411  ;;  %v1420_v43 = vpop.permute.xlu0 %1419 }
 0xd18   : > { %v3086_v44 = vpack.c.bf16 %v1412_v25, %v1412_v25  ;;  %v1425_v46 = vsel %vm650_vm4, %v1420_v43, 0 }
 0xd19   : > { %2357 = vmatpush3.bf16.xpose.msra.mxu0 %v1425_v46 }
 0xd1a   : > { %1566 = vrot.lane.b32.xlu1 %v3086_v44, %s2660_s20  ;;  %2368 = vmatprep.subr.bf16.mxu0 %v2655_v8  ;;  %s498_s20 = sand.u32 1, %s2642_s19  }
 0xd1b   : > { %s2064_s29 = scalar_lea.sflag [#allocation4], %s498_s20 }
 0xd20   : > { %2359 = vmatmul.mubr.msk.bf16.vlgmr.msra.gmra.mrb[24].mxu0 %vm650_vm4, %v1414_v38 }
 0xd21   : > { %2370 = vmatprep.mubr.msk.bf16.mxu0 %vm2656_vm1, %v2655_v8 }
 0xd88   : > { %v1469_v47 = vpop.permute.xlu1 %1468  ;;  %v1518_v49 = vpop.permute.xlu0 %1517 }
 0xd89   : > { %v1474_v50 = vsel %vm650_vm4, %v1469_v47, 0  ;;  %v1523_v51 = vsel %vm650_vm4, %v1518_v49, 0 }
 0xd8a   : > { %2363 = vmatpush3.bf16.xpose.msra.mxu1 %v1474_v50  ;;  %2369 = vmatpush3.bf16.xpose.msra.mxu0 %v1523_v51 }
 0xd8b   : > { %2374 = vmatprep.subr.bf16.mxu1 %v2655_v8  ;;  %2380 = vmatprep.subr.bf16.mxu0 %v2655_v8 }
 0xd8c   : > { %v1567_v53 = vpop.permute.xlu1 %1566 }
 0xd8d   : > { %v1572_v54 = vsel %vm650_vm4, %v1567_v53, 0 }
 0xd91   : > { %2365 = vmatmul.mubr.msk.bf16.vlgmr.msra.gmra.mrb[28].mxu1 %vm650_vm4, %v3080_v42  ;;  %2371 = vmatmul.mubr.msk.bf16.vlgmr.msra.gmra.mrb[28].mxu0 %vm650_vm4, %v3078_v41 }
 0xd92   : > { %2375 = vmatpush3.bf16.xpose.msra.mxu1 %v1572_v54  ;;  %2376 = vmatprep.mubr.msk.bf16.mxu1 %vm2656_vm1, %v2655_v8 }
 0xd93   : > { %2382 = vmatprep.mubr.msk.bf16.mxu0 %vm2656_vm1, %v2655_v8  ;;  %2386 = vmatprep.subr.bf16.mxu1 %v2655_v8 }
 0xd99   : > { %2377 = vmatmul.mubr.msk.bf16.vlgmr.msra.gmra.mrb[32].mxu1 %vm650_vm4, %v3086_v44 }
 0xd9a   : > { %2388 = vmatprep.mubr.msk.bf16.mxu1 %vm2656_vm1, %v2655_v8 }
 0xdf3   : > { %v1461_v55 = vpop.f32.mrb[24].mxu0 }
 0xdf4   : > { %v2360_v56 = vpop.f32.mrb[25].mxu0  ;;  %v1614_v59 = vsel %vm650_vm4, %v1461_v55, -inf }
 0xdf5   : > { %1615 = vmax.xlane.f32.xlu0 %v1614_v59  ;;  %v1464_v60 = vpop.f32.mrb[26].mxu0 }
 0xdf6   : > { %v2361_v61 = vpop.f32.mrb[27].mxu0 }
 0xe64   : > { %v1510_v63 = vpop.f32.mrb[28].mxu1  ;;  %v1559_v1 = vpop.f32.mrb[28].mxu0 }
 0xe65   : > { %v2366_v2 = vpop.f32.mrb[29].mxu1  ;;  %v2372_v3 = vpop.f32.mrb[29].mxu0  ;;  %v1620_v5 = vsel %vm650_vm4, %v1559_v1, -inf  ;;  %v1617_v6 = vsel %vm650_vm4, %v1510_v63, -inf }
 0xe66   : > { %1621 = vmax.xlane.f32.xlu0 %v1620_v5  ;;  %v1562_v10 = vpop.f32.mrb[30].mxu0  ;;  %1618 = vmax.xlane.f32.xlu1 %v1617_v6  ;;  %v1513_v11 = vpop.f32.mrb[30].mxu1 }
 0xe67   : > { %v2367_v12 = vpop.f32.mrb[31].mxu1  ;;  %v2373_v13 = vpop.f32.mrb[31].mxu0 }
 0xe6c   : > { %v1608_v14 = vpop.f32.mrb[32].mxu1 }
 0xe6d   : > { %v2378_v15 = vpop.f32.mrb[33].mxu1  ;;  %v1623_v16 = vsel %vm650_vm4, %v1608_v14, -inf }
 0xe6e   : > { %1624 = vmax.xlane.f32.xlu0 %v1623_v16  ;;  %v1611_v17 = vpop.f32.mrb[34].mxu1 }
 0xe6f   : > { %v2379_v20 = vpop.f32.mrb[35].mxu1 }
 0xe77   : > { %1662 = vrot.lane.b32.xlu1 %v1414_v38, %s2661_s24 }
 0xe82   : > { %v1616_v22 = vpop.xlane.xlu0 %1615 }
 0xe83   : > { %v1626_v23 = vsub.f32 %v1461_v55, %v1616_v22 }
 0xe85   : > { %v1630_v24 = vmul.f32 1.442695, %v1626_v23 }
 0xe87   : > { %2532 = vpow2.f32 %v1630_v24 }
 0xe91   : > { %v2533_v26 = vpop.eup %2532 }
 0xe92   : > { %v1638_v27 = vsel %vm650_vm4, %v2533_v26, 0.0 }
 0xe9b   : > { %1639 = vadd.xlane.f32.xlu1 %v1638_v27 }
 0xef3   : > { %v1622_v28 = vpop.xlane.xlu0 %1621  ;;  %v1619_v29 = vpop.xlane.xlu1 %1618 }
 0xef4   : > { %v1628_v30 = vsub.f32 %v1559_v1, %v1622_v28  ;;  %v1627_v31 = vsub.f32 %v1510_v63, %v1619_v29 }
 0xef6   : > { %v1634_v32 = vmul.f32 1.442695, %v1628_v30  ;;  %v1632_v34 = vmul.f32 1.442695, %v1627_v31 }
 0xef7   : > { %v1663_v35 = vpop.permute.xlu1 %1662 }
 0xef8   : > { %2534 = vpow2.f32 %v1634_v32  ;;  %v1668_v40 = vsel %vm897_vm5, %v1663_v35, 0 }
 0xef9   : > { %2536 = vpow2.f32 %v1632_v34  ;;  %2381 = vmatpush3.bf16.msra.mxu0 %v1668_v40 }
 0xefa   : > { %2392 = vmatprep.subr.bf16.mxu0 %v2655_v8 }
 0xefb   : > { %v1625_v18 = vpop.xlane.xlu0 %1624 }
 0xefc   : > { %v1629_v38 = vsub.f32 %v1608_v14, %v1625_v18 }
 0xefe   : > { %v1636_v21 = vmul.f32 1.442695, %v1629_v38 }
 0xf00   : > { %2538 = vpow2.f32 %v1636_v21 }
 0xf02   : > { %v2535_v33 = vpop.eup %2534 }
 0xf03   : > { %v2537_v25 = vpop.eup %2536  ;;  %v1644_v43 = vsel %vm650_vm4, %v2535_v33, 0.0 }
 0xf04   : > { %1645 = vadd.xlane.f32.xlu1 %v1644_v43  ;;  %v1641_v46 = vsel %vm650_vm4, %v2537_v25, 0.0 }
 0xf05   : > { %1642 = vadd.xlane.f32.xlu0 %v1641_v46 }
 0xf0a   : > { %v2539_v47 = vpop.eup %2538 }
 0xf0b   : > { %v1647_v49 = vsel %vm650_vm4, %v2539_v47, 0.0 }
 0xf0c   : > { %1648 = vadd.xlane.f32.xlu0 %v1647_v49 }
 0xf15   : > { %1758 = vrot.lane.b32.xlu1 %v3078_v41, %s2661_s24 }
 0xf19   : > { %1806 = vrot.lane.b32.xlu1 %v3086_v44, %s2661_s24 }
 0xf22   : > { %1710 = vrot.lane.b32.xlu0 %v3080_v42, %s2661_s24  ;;  %s2154_s24 = sshll.u32 %s498_s20, 3 }
 0xf23   : > { %s500_s27 = scalar_lea.vmem [#allocation5], %s2154_s24  ;;  %s2588_s24 = sshll.u32 %s2665_s22, 4  ;;  %s2589_s24 = int_to_ptr.vmem [resolvable:$false] %s2588_s24 }
 0xf24   : > { %s2590_s26 = scalar_lea.vmem %s2589_s24, 256 }
 0xf28   : > { %v1640_v50 = vpop.xlane.xlu1 %1639 }
 0xf29   : > { %2540 = vrcp.f32 %v1640_v50 }
 0xf33   : > { %v2541_v51 = vpop.eup %2540 }
 0xf34   : > { %v1654_v53 = vmul.f32 %v2541_v51, %v2533_v26 }
 0xf36   : > { %v1658_v54 = vpack.c.bf16 %v1654_v53, %v1654_v53 }
 0xf38   : > { %2383 = vmatmul.mubr.msk.bf16.vlgmr.msra.gmra.mrb[32].mxu0 %vm650_vm4, %v1658_v54 }
 0xf39   : > { %2394 = vmatprep.mubr.msk.bf16.mxu0 %vm2656_vm1, %v2655_v8 }
 0xf91   : > { %v1646_v55 = vpop.xlane.xlu1 %1645 }
 0xf92   : > { %2542 = vrcp.f32 %v1646_v55  ;;  %v1643_v56 = vpop.xlane.xlu0 %1642 }
 0xf93   : > { %2544 = vrcp.f32 %v1643_v56 }
 0xf95   : > { %v1759_v41 = vpop.permute.xlu1 %1758 }
 0xf96   : > { %v1764_v44 = vsel %vm897_vm5, %v1759_v41, 0 }
 0xf97   : > { %2393 = vmatpush3.bf16.msra.mxu0 %v1764_v44 }
 0xf98   : > { %2404 = vmatprep.subr.bf16.mxu0 %v2655_v8 }
 0xf99   : > { %v1649_v42 = vpop.xlane.xlu0 %1648  ;;  %v1807_v3 = vpop.permute.xlu1 %1806 }
 0xf9a   : > { %2546 = vrcp.f32 %v1649_v42  ;;  %v1812_v10 = vsel %vm897_vm5, %v1807_v3, 0 }
 0xf9c   : > { %v2543_v59 = vpop.eup %2542 }
 0xf9d   : > { %v2545_v60 = vpop.eup %2544  ;;  %v1656_v61 = vmul.f32 %v2543_v59, %v2535_v33  ;;  %v1711_v63 = vpop.permute.xlu0 %1710 }
 0xf9e   : > { %v1655_v1 = vmul.f32 %v2545_v60, %v2537_v25  ;;  %v1716_v2 = vsel %vm897_vm5, %v1711_v63, 0 }
 0xf9f   : > { %2387 = vmatpush3.bf16.msra.mxu1 %v1716_v2  ;;  %v1660_v5 = vpack.c.bf16 %v1656_v61, %v1656_v61 }
 0xfa0   : > { %v1659_v6 = vpack.c.bf16 %v1655_v1, %v1655_v1  ;;  %2398 = vmatprep.subr.bf16.mxu1 %v2655_v8 }
 0xfa1   : > { %2395 = vmatmul.mubr.msk.bf16.vlgmr.msra.gmra.mrb[36].mxu0 %vm650_vm4, %v1660_v5 }
 0xfa2   : > { %2389 = vmatmul.mubr.msk.bf16.vlgmr.msra.gmra.mrb[36].mxu1 %vm650_vm4, %v1659_v6  ;;  %2405 = vmatpush3.bf16.msra.mxu0 %v2958_v57 }
 0xfa3   : > { %2399 = vmatpush3.bf16.msra.mxu1 %v1812_v10  ;;  %2400 = vmatprep.mubr.msk.bf16.mxu1 %vm2656_vm1, %v2655_v8 }
 0xfa4   : > { %v2547_v11 = vpop.eup %2546  ;;  %2406 = vmatprep.subr.bf16.mxu0 %v2655_v8  ;;  %2408 = vmatprep.mubr.msk.bf16.mxu0 %vm2656_vm1, %v2655_v8 }
 0xfa5   : > { %v1657_v12 = vmul.f32 %v2547_v11, %v2539_v47  ;;  %2412 = vmatprep.subr.bf16.mxu1 %v2655_v8 }
 0xfa6   : > { %2407 = vmatpush3.bf16.msra.mxu0 %v2965_v58 }
 0xfa7   : > { %v1661_v13 = vpack.c.bf16 %v1657_v12, %v1657_v12  ;;  %2420 = vmatprep.subr.bf16.mxu0 %v2655_v8 }
 0xfaa   : > { %2401 = vmatmul.mubr.msk.bf16.vlgmr.msra.gmra.mrb[40].mxu1 %vm650_vm4, %v1661_v13 }
 0xfab   : > { %2413 = vmatpush3.bf16.msra.mxu1 %v2991_v36  ;;  %2416 = vmatprep.mubr.msk.bf16.mxu1 %vm2656_vm1, %v2655_v8 }
 0xfac   : > { %2414 = vmatprep.subr.bf16.mxu1 %v2655_v8 }
 0xfaf   : > { %2415 = vmatpush3.bf16.msra.mxu1 %v2994_v37 }
0x100b   : > { %v1704_v57 = vpop.f32.mrb[32].mxu0 }
0x100c   : > { %v2384_v14 = vpop.f32.mrb[33].mxu0 }
0x100d   : > { %v1707_v15 = vpop.f32.mrb[34].mxu0 }
0x100e   : > { %v2385_v16 = vpop.f32.mrb[35].mxu0 }
0x1074   : > { %v1800_v17 = vpop.f32.mrb[36].mxu0 }
0x1075   : > { %1859 = vrot.lane.b32.xlu1 %v1800_v17, %s3278_s16  ;;  %v1752_v58 = vpop.f32.mrb[36].mxu1  ;;  %v2396_v20 = vpop.f32.mrb[37].mxu0  ;;  %s2077_s16 = sshll.u32 %s500_s27, 4  ;;  %s3196_s16 = int_to_ptr.vmem [resolvable:$true] %s2077_s16 }
0x1076   : > { %v1803_v22 = vpop.f32.mrb[38].mxu0  ;;  %1855 = vrot.lane.b32.xlu0 %v1752_v58, %s3279_s30  ;;  %v2390_v36 = vpop.f32.mrb[37].mxu1  ;;  %s2584_s23 = scalar_lea.vmem %s3196_s16, 128  ;;  %p2591_p2 = scmp.lt.s32.totalorder %s3196_s16, %s2589_s24 }
0x1077   : > { %v1755_v23 = vpop.f32.mrb[38].mxu1  ;;  %v2397_v24 = vpop.f32.mrb[39].mxu0  ;;  %p2585_p6 = scmp.ne.s32.totalorder %s3196_s16, %s2584_s23  ;;  %p2592_p3 = scmp.lt.s32.totalorder %s2590_s26, %s2584_s23 }
0x1078   : > { %v2391_v26 = vpop.f32.mrb[39].mxu1 }
0x1079   : > { %v2198_v26 = vld [vmem:[%s3250_s13] ss:$0 sm:$0xff]  ;;  %p2586_p10 = pnand %p2585_p6, %p3281_p9  ;;  %p2593_p4 = por %p2592_p3, %p2591_p2 }
0x107b   : > { %p2587_p12 = pneg %p2586_p10 }
0x107d   : > { %v1848_v27 = vpop.f32.mrb[40].mxu1  ;;  %p2594_p7 = pnand %p2593_p4, %p2587_p12 }
0x107e   : > { %1863 = vrot.lane.b32.xlu0 %v1848_v27, %s3280_s17  ;;  %v2402_v37 = vpop.f32.mrb[41].mxu1 }
0x107f   : > { %v1851_v28 = vpop.f32.mrb[42].mxu1 }
0x1080   : > { %v2403_v29 = vpop.f32.mrb[43].mxu1  ;;  %v2199_v28 = vld [vmem:[%s3251_s14] ss:$0 sm:$0xff] }
0x10e7   : > { %v1860_v32 = vpop.permute.xlu1 %1859 }
0x10e8   : > { %v1856_v30 = vpop.permute.xlu0 %1855 }
0x10e9   : > { %v1866_v31 = vsel %vm650_vm4, %v1704_v57, %v1856_v30 }
0x10ea   : > { %v1867_v34 = vsel %vm1098_vm6, %v1866_v31, %v1860_v32 }
0x10f0   : > { %v1864_v35 = vpop.permute.xlu0 %1863 }
0x10f1   : > { %v1868_v40 = vsel %vm1100_vm7, %v1867_v34, %v1864_v35 }
0x10f2   : > { %v1869_v18 = vpack.c.bf16 %v1868_v40, %v1868_v40 }
0x10f4   : > { %2409 = vmatmul.mubr.msk.bf16.vlgmr.msra.gmra.mrb[40].mxu0 %vm535_vm0, %v1869_v18 }
0x10f5   : > { %2421 = vmatpush3.bf16.msra.mxu0 %v3002_v0  ;;  %2428 = vmatprep.mubr.msk.bf16.mxu0 %vm2656_vm1, %v2655_v8 }
0x10f6   : > { %2422 = vmatprep.subr.bf16.mxu0 %v2655_v8 }
0x10f9   : > { %2423 = vmatpush3.bf16.msra.mxu0 %v3008_v39 }
0x10fa   : > { %2424 = vmatprep.subr.bf16.mxu0 %v2655_v8 }
0x10fd   : > { %2425 = vmatpush3.bf16.msra.mxu0 %v3035_v52 }
0x10fe   : > { %2426 = vmatprep.subr.bf16.mxu0 %v2655_v8 }
0x1101   : > { %2427 = vmatpush3.bf16.msra.mxu0 %v3042_v7 }
0x11c7   : > { %v1907_v38 = vpop.f32.mrb[40].mxu0 }
0x11c8   : > { %v1908_v21 = vadd.f32 %v2981_v19, %v1907_v38  ;;  %v2410_v33 = vpop.f32.mrb[41].mxu0 }
0x11c9   : > { %v1910_v0 = vpop.f32.mrb[42].mxu0 }
0x11ca   : > { %v1913_v25 = vadd.f32 %v1908_v21, %v3062_v4  ;;  %v2411_v43 = vpop.f32.mrb[43].mxu0 }
0x11cc   : > { %v1914_v46 = vsel %vm535_vm0, %v1913_v25, 0.0 }
0x11cd   : > { %1915 = vadd.xlane.f32.xlu1 %v1914_v46 }
0x125a   : > { %v1916_v39 = vpop.xlane.xlu1 %1915 }
0x125b   : > { %v1917_v47 = vmul.f32 0.03125, %v1916_v39 }
0x125d   : > { %v1918_v49 = vsub.f32 %v1913_v25, %v1917_v47 }
0x125f   : > { %v1919_v50 = vmul.f32 %v1918_v49, %v1918_v49  ;;  %v1933_v56 = vmul.f32 %v3016_v45, %v1918_v49 }
0x1261   : > { %v1920_v52 = vsel %vm535_vm0, %v1919_v50, 0.0 }
0x1262   : > { %1921 = vadd.xlane.f32.xlu0 %v1920_v52 }
0x12ef   : > { %v1922_v8 = vpop.xlane.xlu0 %1921 }
0x12f0   : > { %v1923_v7 = vmul.f32 0.032258064, %v1922_v8 }
0x12f2   : > { %2548 = vrsqrt.f32 %v1923_v7  ;;  %vm1926_vm13 = vcmp.eq.f32.partialorder %v1923_v7, inf  ;;  %v1929_v53 = vand.u32 2147483648, %v1923_v7  ;;  %vm1928_vm14 = vcmp.eq.f32.partialorder %v1923_v7, 0.0 }
0x12fc   : > { %v2549_v51 = vpop.eup %2548 }
0x12fd   : > { %v1925_v19 = vmul.f32 %v2549_v51, %v1923_v7 }
0x12ff   : > { %v1927_v54 = vsel %vm1926_vm13, %v1923_v7, %v1925_v19 }
0x1300   : > { %v1930_v4 = vsel %vm1928_vm14, %v1929_v53, %v1927_v54 }
0x1301   : > { %v1931_v55 = vadd.f32 1e-06, %v1930_v4 }
0x1303   : > { %2550 = vrcp.f32 %v1931_v55 }
0x130d   : > { %v2551_v41 = vpop.eup %2550 }
0x130e   : > { %v1934_v44 = vmul.f32 %v2551_v41, %v1933_v56 }
0x1310   : > { %v1935_v42 = vadd.f32 %v3022_v48, %v1934_v44 }
0x1312   : > { %v1936_v59 = vpack.c.bf16 %v1935_v42, %v1935_v42 }
0x1314   : > { %2417 = vmatmul.mubr.msk.bf16.vlgmr.msra.gmra.mrb[44].mxu1 %vm535_vm0, %v1936_v59 }
0x13e7   : > { %v1974_v60 = vpop.f32.mrb[44].mxu1 }
0x13e8   : > { %v1975_v61 = vadd.f32 %v3049_v9, %v1974_v60  ;;  %v2418_v63 = vpop.f32.mrb[45].mxu1 }
0x13e9   : > { %v1977_v1 = vpop.f32.mrb[46].mxu1 }
0x13ea   : > { %v1980_v2 = vmax.f32 %v1975_v61, 0.0  ;;  %v2419_v3 = vpop.f32.mrb[47].mxu1 }
0x13ec   : > { %v1981_v5 = vpack.c.bf16 %v1980_v2, %v1980_v2 }
0x13ee   : > { %2429 = vmatmul.mubr.msk.bf16.vlgmr.msra.gmra.mrb[44].mxu0 %vm1293_vm10, %v1981_v5 }
0x14c1   : > { %v2019_v6 = vpop.f32.mrb[44].mxu0 }
0x14c2   : > { %v2020_v45 = vadd.f32 %v3058_v62, %v2019_v6  ;;  %v2430_v10 = vpop.f32.mrb[45].mxu0 }
0x14c3   : > { %v2022_v11 = vpop.f32.mrb[46].mxu0 }
0x14c4   : > { %v2431_v12 = vpop.f32.mrb[47].mxu0  ;;  %v2025_v48 = vadd.f32 %v2020_v45, %v1913_v25 }
0x14c6   : > { %v2028_v13 = vsel %vm535_vm0, %v2025_v48, 0.0 }
0x14c7   : > { %2029 = vadd.xlane.f32.xlu0 %v2028_v13 }
0x1554   : > { %v2030_v57 = vpop.xlane.xlu0 %2029 }
0x1555   : > { %v2031_v14 = vmul.f32 0.03125, %v2030_v57 }
0x1557   : > { %v2032_v9 = vsub.f32 %v2025_v48, %v2031_v14 }
0x1559   : > { %v2033_v15 = vmul.f32 %v2032_v9, %v2032_v9  ;;  %v2053_v27 = vmul.f32 %v2198_v26, %v2032_v9 }
0x155b   : > { %v2034_v16 = vsel %vm535_vm0, %v2033_v15, 0.0 }
0x155c   : > { %2035 = vadd.xlane.f32.xlu1 %v2034_v16 }
0x15e9   : > { %v2036_v17 = vpop.xlane.xlu1 %2035 }
0x15ea   : > { %v2037_v58 = vmul.f32 0.032258064, %v2036_v17 }
0x15ec   : > { %2552 = vrsqrt.f32 %v2037_v58  ;;  %vm2040_vm15 = vcmp.eq.f32.partialorder %v2037_v58, inf  ;;  %v2043_v22 = vand.u32 2147483648, %v2037_v58  ;;  %vm2042_vm1 = vcmp.eq.f32.partialorder %v2037_v58, 0.0 }
0x15f6   : > { %v2553_v62 = vpop.eup %2552 }
0x15f7   : > { %v2039_v20 = vmul.f32 %v2553_v62, %v2037_v58 }
0x15f9   : > { %v2041_v36 = vsel %vm2040_vm15, %v2037_v58, %v2039_v20 }
0x15fa   : > { %v2044_v23 = vsel %vm2042_vm1, %v2043_v22, %v2041_v36 }
0x15fb   : > { %v2045_v24 = vadd.f32 1e-06, %v2044_v23 }
0x15fd   : > { %2554 = vrcp.f32 %v2045_v24 }
0x1607   : > { %v2555_v37 = vpop.eup %2554 }
0x1608   : > { %v2054_v29 = vmul.f32 %v2555_v37, %v2053_v27 }
0x160a   : > { %v2061_v30 = vadd.f32 %v2199_v28, %v2054_v29 }
0x160c   : > { %2062 = vst.msk [vmem:[%s500_s27] sm:$0xff] %vm535_vm0, %v2061_v30 }
0x160d   : > { %2597 = shalt.err (!%p2594_p7)
}
0x160e   : > { %s2598_s20 = scalar_lea.hbm %s3194_s0, 128  ;;  %s2602_s27 = scalar_lea.hbm %s3252_s15, 256 }
0x160f   : > { %p2599_p8 = scmp.ne.s32.totalorder %s3194_s0, %s2598_s20  ;;  %p2603_p1 = scmp.lt.u32.totalorder %s3194_s0, %s3252_s15 }
0x1610   : > { %p2604_p0 = scmp.lt.u32.totalorder %s2602_s27, %s2598_s20  ;;  %p2606_p6 = scmp.lt.u32.totalorder %s2598_s20, %s3194_s0 }
0x1611   : > { %p2600_p11 = pnand %p2599_p8, %p3281_p9 }
0x1612   : > { %p2605_p5 = por %p2604_p0, %p2603_p1 }
0x1613   : > { %p2601_p13 = pneg %p2600_p11 }
0x1614   : > { %p2607_p10 = por %p2606_p6, %p2605_p5 }
0x1616   : > { %p2608_p12 = pnand %p2607_p10, %p2601_p13 }
0x1618   : > { %2611 = shalt.err (!%p2608_p12)
}
0x1619   : > { %2436 = dma.vmem_to_hbm [thread:$0]  (%p3281_p9), %s3196_s16, 128, %s3194_s0, %s2064_s29  }
0x161a PF: > { %s3282_s23 = sld [smem:[#allocation8_spill]]  ;;  %s3283_s22 = sld [smem:[#allocation12_spill]] }
0x161b   : > { %p2448_p2 = scmp.ge.s32.totalorder %s2650_s21, 2 }
0x1620   : > { %s2089_s24 = sand.u32 1, %s3282_s23   ;;  %p3284_p3 = scmp.ne.s32.totalorder %s3283_s22, 0 }
0x1621   : > { %s2090_s26 = scalar_lea.sflag [#allocation4], %s2089_s24 }
0x1622   : > { %p2443_p4 = pnand %p2448_p2, %p3284_p3 }
0x1624   : > { %2633 = dma.done.wait (!%p2443_p4), %s2090_s26, 128  }
0x1625   : > { %2635 = vsyncadd (!%p2443_p4), %s2090_s26, 4294967168  ;;  %s3285_s21 = sld [smem:[#allocation10_spill]]  ;;  %s3286_s20 = sld [smem:[#allocation9_spill]] }
0x1626   : > { %s3287_s25 = sld [smem:[#allocation11_spill]]  ;;  %s3288_s18 = smov %s2642_s19 }
0x162b   : > { %p26_p7 = scmp.ge.s32.totalorder %s3285_s21, 4   ;;  %s3289_s19 = smov %s3286_s20 }
0x162c   : > { %s3290_s20 = smov %s3287_s25 }
0x162d   :  { %28 = sbr.rel (!%p26_p7) target bundleno = 6 (0x6), region = 120 }
0x1634   :  { %2095 = vsyncpa [#allocation3], 1 }
0x1635   :  { %2097 = vsyncpa [#allocation3 + $0x1], 1 }
0x1636   :  { %2098 = vsyncpa [#allocation4], 1 }
0x1637   :  { %2100 = vsyncpa [#allocation4 + $0x1], 1 }

// kernel: tpu_custom_call.1
= control target key start
LH: loop header
LB: loop body
LE: loop exit
PB: predicated region body
PF: predicated region fallthrough
CT: control target
= control target key end

     0   :  { %s3237_s0 = inlined_call_operand.vmem [shape: f32[2,8,32], index: 0, kind: input, shape index: {}]   ;;  %s3238_s1 = inlined_call_operand.vmem [shape: bf16[32,96], index: 1, kind: input, shape index: {}]   ;;  %s3239_s2 = inlined_call_operand.vmem [shape: f32[1,96], index: 2, kind: input, shape index: {}]   ;;  %s3240_s3 = inlined_call_operand.vmem [shape: bf16[32,32], index: 3, kind: input, shape index: {}]   ;;  %s3241_s4 = inlined_call_operand.vmem [shape: f32[1,32], index: 4, kind: input, shape index: {}]   ;;  %s3242_s5 = inlined_call_operand.hbm [shape: bf16[32,64], index: 5, kind: input, shape index: {}]   ;;  %s3243_s6 = inlined_call_operand.vmem [shape: f32[1,64], index: 6, kind: input, shape index: {}]   ;;  %s3244_s7 = inlined_call_operand.vmem [shape: bf16[64,32], index: 7, kind: input, shape index: {}]   ;;  %s3245_s8 = inlined_call_operand.vmem [shape: f32[1,32], index: 8, kind: input, shape index: {}]   ;;  %s3246_s9 = inlined_call_operand.vmem [shape: f32[1,32], index: 9, kind: input, shape index: {}]   ;;  %s3247_s10 = inlined_call_operand.vmem [shape: f32[1,32], index: 10, kind: input, shape index: {}]   ;;  %s3248_s11 = inlined_call_operand.vmem [shape: f32[1,32], index: 11, kind: input, shape index: {}]   ;;  %s3249_s12 = inlined_call_operand.vmem [shape: f32[1,32], index: 12, kind: input, shape index: {}]   ;;  %s3250_s13 = inlined_call_operand.vmem [shape: f32[1,32], index: 13, kind: input, shape index: {}]   ;;  %s3251_s14 = inlined_call_operand.vmem [shape: f32[1,32], index: 14, kind: input, shape index: {}]   ;;  %s3252_s15 = inlined_call_operand.hbm [shape: f32[2,8,32], index: 15, kind: output, shape index: {}]  }
   0x1   :  { %3264 = sst [smem:[#allocation13_spill]] %s3237_s0 }
   0x2   :  { %20 = vsyncpa [#allocation3], 0 }
   0x3   :  { %21 = vsyncpa [#allocation4], 0 }
   0x4   :  { %23 = vsyncpa [#allocation4 + $0x1], 0  ;;  %s2746_s18 = smov 0   ;;  %s2748_s19 = smov 0  }
   0x5   :  { %s2750_s20 = smov 0   ;;  %s2752_s21 = smov 0  }
   0x6 LB: > { %3265 = sst [smem:[#allocation8_spill]] %s2638_s18  ;;  %s2767_s22 = sadd.s32 4294967295, %s2650_s21   ;;  %s2650_s21 = sphi %s2752_s21, %s3285_s21   ;;  %s2646_s20 = sphi %s2750_s20, %s3290_s20   ;;  %s2642_s19 = sphi %s2748_s19, %s3289_s19   ;;  %s2638_s18 = sphi %s2746_s18, %s3288_s18  }
   0x7   : > { %3266 = sst [smem:[#allocation9_spill]] %s2646_s20  ;;  %s2148_s23 = sadd.s32 4294967294, %s2650_s21  }
   0x8   : > { %s2771_s24 = sadd.s32 1, %s2650_s21   ;;  %s356_s25 = sadd.s32 1, %s2646_s20 }
   0x9   : > { %3267 = sst [smem:[#allocation10_spill]] %s2771_s24  ;;  %s353_s26 = ssub.s32 %s2650_s21, %s2771_s24 }
   0xa   : > { %p366_p0 = scmp.ne.s32.totalorder %s2646_s20, %s2642_s19  ;;  %p354_p1 = scmp.eq.s32.totalorder %s353_s26, 0 }
   0xb   : > { %p367_p2 = scmp.eq.s32.totalorder %s2767_s22, 1  ;;  %p372_p3 = scmp.ne.s32.totalorder %s2642_s19, %s2638_s18 }
   0xc   : > { %p373_p4 = scmp.eq.s32.totalorder %s2148_s23, 1  ;;  %p2149_p7 = scmp.ge.s32.totalorder %s2650_s21, 1 }
   0xd   : > { %s2782_s27 = scalar_select %p354_p1, %s2646_s20, %s356_s25  }
   0xe   : > { %p2784_p5 = por %p367_p2, %p366_p0  ;;  %p2788_p6 = por %p373_p4, %p372_p3 }
   0xf   : > { %3268 = sst [smem:[#allocation11_spill]] %s2782_s27  ;;  %p380_p8 = scmp.lt.s32.totalorder %s2650_s21, 3 }
  0x10   : > { %s3269_s28 = scalar_select %p2784_p5, 1, 0 }
  0x11   : > { %s3270_s29 = scalar_select %p2788_p6, 1, 0 }
  0x12   : > { %p3258_p9 = scmp.eq.s32.totalorder %s2767_s22, 0  ;;  %p2795_p10 = pnand %p2149_p7, %p380_p8 }
  0x13   : > { %3271 = sst [smem:[#allocation12_spill]] %s3270_s29  ;;  %s2652_s16 = smov [#allocation2]  }
  0x14   : > { %s3272_s30 = scalar_select %p2795_p10, 1, 0 }
  0x15   : > { %s404_s17 = sshll.u32 %s2652_s16, 4  ;;  %p2438_p11 = pneg %p2795_p10  ;;  %s405_s17 = int_to_ptr.vmem [resolvable:$true] %s404_s17 }
  0x16   : > { %s2556_s27 = scalar_lea.hbm %s3242_s5, 256 }
  0x17   : > { %p2803_p12 = pnand %p3258_p9, %p2438_p11  ;;  %p2557_p13 = scmp.ne.s32.totalorder %s3242_s5, %s2556_s27 }
  0x18   : > { %p2563_p3 = scmp.lt.u32.totalorder %s2556_s27, %s3242_s5 }
  0x19   : > { %p2558_p0 = pneg %p2803_p12 }
  0x1b   : > { %p2559_p1 = pnand %p2558_p0, %p2557_p13 }
  0x1d   : > { %p2560_p2 = pneg %p2559_p1 }
  0x1f   : > { %p2565_p4 = pnand %p2563_p3, %p2560_p2 }
  0x21   : > { %2568 = shalt.err (!%p2565_p4)
}
  0x22   : > { %s2569_s18 = scalar_lea.vmem %s405_s17, 256  ;;  %p2577_p9 = scmp.lt.s32.totalorder %s405_s17, %s405_s17 }
  0x23   : > { %p2570_p7 = scmp.ne.s32.totalorder %s405_s17, %s2569_s18  ;;  %p2578_p6 = scmp.lt.s32.totalorder %s2569_s18, %s2569_s18 }
  0x25   : > { %p2572_p8 = pnand %p2570_p7, %p2558_p0  ;;  %p2579_p5 = por %p2578_p6, %p2577_p9 }
  0x27   : > { %p2573_p11 = pneg %p2572_p8 }
  0x29   : > { %p2580_p10 = pnand %p2579_p5, %p2573_p11 }
  0x2b   : > { %2583 = shalt.err (!%p2580_p10)
}
  0x2c   : > { %s2653_s20 = smov 64   ;;  %s2654_s24 = smov 4  }
  0x2d   : > { %2441 = dma.hbm_to_vmem [thread:$0]  (!%p2803_p12), %s3242_s5, 256, %s405_s17, [#allocation3], %s2653_s20, %s2653_s20, %s2654_s24  }
  0x2e   : > { %p3274_p13 = scmp.ne.s32.totalorder %s3272_s30, 0 }
  0x2f   : > { %p3275_p1 = scmp.eq.s32.totalorder (!%p3274_p13), %s2767_s22, 0 }
  0x30   : > { %454 = sbr.rel (%p3274_p13) target bundleno = 5658 (0x161a), region = 80 }
  0x37   : > { %2629 = dma.done.wait (%p3275_p1), [#allocation3], 256   ;;  %p3276_p0 = pmov %p3275_p1 }
  0x38   : > { %p501_p5 = scmp.lt.s32.totalorder %s2767_s22, 1  ;;  %s3277_s0 = sld [smem:[#allocation13_spill]]  ;;  %vm535_vm0 = vcmask 261120   ;;  %v2843_v7 = vld [vmem:[%s3238_s1] sm:$0xff]   ;;  %v2655_v8 = vmov 0.0   ;;  %vm2656_vm1 = vmmov 0  }
  0x39   : > { %2631 = vsyncadd (%p3276_p0), [#allocation3], 4294967040  ;;  %2264 = vmatprep.subr.bf16.mxu1 %v2655_v8  ;;  %2268 = vmatprep.mubr.msk.bf16.mxu1 %vm2656_vm1, %v2655_v8  ;;  %v2852_v9 = vld [vmem:[%s3238_s1 + $0x8] sm:$0xff]   ;;  %v2863_v18 = vld [vmem:[%s3246_s9] ss:$0 sm:$0xff]  ;;  %s2658_s30 = smov 120  }
  0x3a   : > { %s502_s18 = scalar_select %p501_p5, %s2767_s22, 1  ;;  %2265 = vmatpush3.bf16.msra.mxu1 %v2843_v7  ;;  %2278 = vmatprep.subr.bf16.mxu0 %v2655_v8  ;;  %v2869_v21 = vld [vmem:[%s3247_s10] ss:$0 sm:$0xff]  ;;  %vm650_vm4 = vcmask 64512   ;;  %vm897_vm5 = vcmask 1043456   ;;  %vm1098_vm6 = vcmask 130048  }
  0x3b   : > { %2266 = vmatprep.subr.bf16.mxu1 %v2655_v8  ;;  %2280 = vmatprep.mubr.msk.bf16.mxu0 %vm2656_vm1, %v2655_v8  ;;  %v2878_v25 = vld [vmem:[%s3239_s2] ss:$0 sm:$0xff]  ;;  %s2659_s17 = smov 112   ;;  %s2660_s20 = smov 96   ;;  %vm1100_vm7 = vcmask 195584   ;;  %vm1293_vm10 = vcmask 523264  }
  0x3c   : > { %s2155_s27 = sshll.u32 %s502_s18, 3  ;;  %s2661_s24 = smov 64  }
  0x3d   : > { %s3262_s29 = smov 8   ;;  %s3263_s23 = smov 16  }
  0x3e   : > { %s504_s16 = scalar_lea.vmem %s3277_s0, %s2155_s27  ;;  %2267 = vmatpush3.bf16.msra.mxu1 %v2852_v9  ;;  %s3261_s25 = smov 24  }
  0x3f   : > { %v2834_v0 = vld [vmem:[%s504_s16] sm:$0xff]  ;;  %2272 = vmatprep.subr.bf16.mxu1 %v2655_v8  ;;  %s2657_s16 = smov 104   ;;  %p3281_p9 = scmp.ne.s32.totalorder %s3269_s28, 0 }
  0x40   : > { %v536_v1 = vsel %vm535_vm0, %v2834_v0, 0.0 }
  0x41   : > { %537 = vadd.xlane.f32.xlu0 %v536_v1 }
  0xce   : > { %v538_v2 = vpop.xlane.xlu0 %537 }
  0xcf   : > { %v540_v3 = vmul.f32 0.03125, %v538_v2 }
  0xd1   : > { %v541_v4 = vsub.f32 %v2834_v0, %v540_v3 }
  0xd3   : > { %v542_v5 = vmul.f32 %v541_v4, %v541_v4  ;;  %v562_v19 = vmul.f32 %v2863_v18, %v541_v4 }
  0xd5   : > { %v543_v6 = vsel %vm535_vm0, %v542_v5, 0.0 }
  0xd6   : > { %544 = vadd.xlane.f32.xlu0 %v543_v6 }
 0x163   : > { %v545_v10 = vpop.xlane.xlu0 %544 }
 0x164   : > { %v546_v11 = vmul.f32 0.032258064, %v545_v10 }
 0x166   : > { %2504 = vrsqrt.f32 %v546_v11  ;;  %vm549_vm2 = vcmp.eq.f32.partialorder %v546_v11, inf  ;;  %v552_v14 = vand.u32 2147483648, %v546_v11  ;;  %vm551_vm3 = vcmp.eq.f32.partialorder %v546_v11, 0.0 }
 0x170   : > { %v2505_v12 = vpop.eup %2504 }
 0x171   : > { %v548_v13 = vmul.f32 %v2505_v12, %v546_v11 }
 0x173   : > { %v550_v15 = vsel %vm549_vm2, %v546_v11, %v548_v13 }
 0x174   : > { %v553_v16 = vsel %vm551_vm3, %v552_v14, %v550_v15 }
 0x175   : > { %v554_v17 = vadd.f32 1e-06, %v553_v16 }
 0x177   : > { %2506 = vrcp.f32 %v554_v17 }
 0x181   : > { %v2507_v20 = vpop.eup %2506 }
 0x182   : > { %v563_v22 = vmul.f32 %v2507_v20, %v562_v19 }
 0x184   : > { %v570_v23 = vadd.f32 %v2869_v21, %v563_v22 }
 0x186   : > { %v571_v24 = vpack.c.bf16 %v570_v23, %v570_v23 }
 0x188   : > { %2269 = vmatmul.mubr.msk.bf16.vlgmr.msra.gmra.mrb[0].mxu1 %vm535_vm0, %v571_v24 }
 0x189   : > { %2274 = vmatprep.mubr.msk.bf16.mxu1 %vm2656_vm1, %v2655_v8 }
 0x25b   : > { %v627_v26 = vpop.f32.mrb[0].mxu1 }
 0x25c   : > { %v628_v27 = vadd.f32 %v2878_v25, %v627_v26  ;;  %v2270_v28 = vpop.f32.mrb[1].mxu1 }
 0x25d   : > { %v630_v29 = vpop.f32.mrb[2].mxu1 }
 0x25e   : > { %640 = vrot.lane.b32.xlu0 %v628_v27, %s2657_s16  ;;  %634 = vrot.lane.b32.xlu1 %v628_v27, %s2658_s30  ;;  %v2271_v30 = vpop.f32.mrb[3].mxu1  ;;  %v643_v31 = vpack.c.bf16 %v628_v27, %v628_v27 }
 0x262   : > { %637 = vrot.lane.b32.xlu1 %v628_v27, %s2659_s17 }
 0x266   : > { %648 = vrot.lane.b32.xlu1 %v643_v31, %s2660_s20 }
 0x2d0   : > { %v635_v32 = vpop.permute.xlu1 %634  ;;  %v641_v36 = vpop.permute.xlu0 %640 }
 0x2d1   : > { %v2885_v33 = vpack.c.bf16 %v635_v32, %v635_v32  ;;  %v2893_v38 = vpack.c.bf16 %v641_v36, %v641_v36 }
 0x2d3   : > { %698 = vrot.lane.b32.xlu1 %v2885_v33, %s2660_s20 }
 0x2d4   : > { %v638_v34 = vpop.permute.xlu1 %637 }
 0x2d5   : > { %v2889_v35 = vpack.c.bf16 %v638_v34, %v638_v34 }
 0x2d7   : > { %747 = vrot.lane.b32.xlu1 %v2889_v35, %s2660_s20 }
 0x2d8   : > { %v649_v37 = vpop.permute.xlu1 %648 }
 0x2d9   : > { %v655_v39 = vsel %vm650_vm4, %v649_v37, 0 }
 0x2da   : > { %2273 = vmatpush3.bf16.xpose.msra.mxu1 %v655_v39 }
 0x2db   : > { %796 = vrot.lane.b32.xlu1 %v2893_v38, %s2660_s20  ;;  %2284 = vmatprep.subr.bf16.mxu1 %v2655_v8 }
 0x2e1   : > { %2275 = vmatmul.mubr.msk.bf16.vlgmr.msra.gmra.mrb[4].mxu1 %vm650_vm4, %v643_v31 }
 0x2e2   : > { %2286 = vmatprep.mubr.msk.bf16.mxu1 %vm2656_vm1, %v2655_v8 }
 0x345   : > { %v699_v40 = vpop.permute.xlu1 %698 }
 0x346   : > { %v704_v41 = vsel %vm650_vm4, %v699_v40, 0 }
 0x347   : > { %2279 = vmatpush3.bf16.xpose.msra.mxu0 %v704_v41 }
 0x348   : > { %2290 = vmatprep.subr.bf16.mxu0 %v2655_v8 }
 0x349   : > { %v748_v42 = vpop.permute.xlu1 %747 }
 0x34a   : > { %v753_v43 = vsel %vm650_vm4, %v748_v42, 0 }
 0x34b   : > { %2285 = vmatpush3.bf16.xpose.msra.mxu1 %v753_v43 }
 0x34c   : > { %2296 = vmatprep.subr.bf16.mxu1 %v2655_v8 }
 0x34d   : > { %v797_v44 = vpop.permute.xlu1 %796 }
 0x34e   : > { %v802_v45 = vsel %vm650_vm4, %v797_v44, 0  ;;  %2281 = vmatmul.mubr.msk.bf16.vlgmr.msra.gmra.mrb[0].mxu0 %vm650_vm4, %v2885_v33 }
 0x34f   : > { %2291 = vmatpush3.bf16.xpose.msra.mxu0 %v802_v45  ;;  %2292 = vmatprep.mubr.msk.bf16.mxu0 %vm2656_vm1, %v2655_v8 }
 0x350   : > { %2302 = vmatprep.subr.bf16.mxu0 %v2655_v8 }
 0x352   : > { %2287 = vmatmul.mubr.msk.bf16.vlgmr.msra.gmra.mrb[8].mxu1 %vm650_vm4, %v2889_v35 }
 0x353   : > { %2298 = vmatprep.mubr.msk.bf16.mxu1 %vm2656_vm1, %v2655_v8 }
 0x356   : > { %2293 = vmatmul.mubr.msk.bf16.vlgmr.msra.gmra.mrb[4].mxu0 %vm650_vm4, %v2893_v38 }
 0x357   : > { %2304 = vmatprep.mubr.msk.bf16.mxu0 %vm2656_vm1, %v2655_v8 }
 0x3b4   : > { %v691_v46 = vpop.f32.mrb[4].mxu1 }
 0x3b5   : > { %v2276_v47 = vpop.f32.mrb[5].mxu1  ;;  %v844_v48 = vsel %vm650_vm4, %v691_v46, -inf }
 0x3b6   : > { %845 = vmax.xlane.f32.xlu1 %v844_v48  ;;  %v694_v49 = vpop.f32.mrb[6].mxu1 }
 0x3b7   : > { %v2277_v50 = vpop.f32.mrb[7].mxu1 }
 0x421   : > { %v740_v51 = vpop.f32.mrb[0].mxu0 }
 0x422   : > { %v2282_v52 = vpop.f32.mrb[1].mxu0  ;;  %v847_v53 = vsel %vm650_vm4, %v740_v51, -inf }
 0x423   : > { %848 = vmax.xlane.f32.xlu0 %v847_v53  ;;  %v743_v54 = vpop.f32.mrb[2].mxu0 }
 0x424   : > { %v2283_v55 = vpop.f32.mrb[3].mxu0 }
 0x425   : > { %v789_v56 = vpop.f32.mrb[8].mxu1 }
 0x426   : > { %v2288_v57 = vpop.f32.mrb[9].mxu1  ;;  %v850_v58 = vsel %vm650_vm4, %v789_v56, -inf }
 0x427   : > { %851 = vmax.xlane.f32.xlu1 %v850_v58  ;;  %v792_v59 = vpop.f32.mrb[10].mxu1  ;;  %v2958_v57 = vld [vmem:[%s3240_s3] sm:$0xff]   ;;  %v2965_v58 = vld [vmem:[%s3240_s3 + $0x8] sm:$0xff]  }
 0x428   : > { %v2289_v60 = vpop.f32.mrb[11].mxu1 }
 0x429   : > { %v838_v61 = vpop.f32.mrb[4].mxu0 }
 0x42a   : > { %v2294_v62 = vpop.f32.mrb[5].mxu0  ;;  %v853_v63 = vsel %vm650_vm4, %v838_v61, -inf }
 0x42b   : > { %854 = vmax.xlane.f32.xlu0 %v853_v63  ;;  %v841_v1 = vpop.f32.mrb[6].mxu0 }
 0x42c   : > { %v2295_v2 = vpop.f32.mrb[7].mxu0 }
 0x438   : > { %892 = vrot.lane.b32.xlu1 %v643_v31, %s2661_s24 }
 0x443   : > { %v846_v3 = vpop.xlane.xlu1 %845 }
 0x444   : > { %v856_v4 = vsub.f32 %v691_v46, %v846_v3 }
 0x446   : > { %v860_v5 = vmul.f32 1.442695, %v856_v4 }
 0x448   : > { %2508 = vpow2.f32 %v860_v5 }
 0x452   : > { %v2509_v6 = vpop.eup %2508 }
 0x453   : > { %v868_v10 = vsel %vm650_vm4, %v2509_v6, 0.0 }
 0x45c   : > { %869 = vadd.xlane.f32.xlu1 %v868_v10 }
 0x4b0   : > { %v849_v11 = vpop.xlane.xlu0 %848 }
 0x4b1   : > { %v857_v12 = vsub.f32 %v740_v51, %v849_v11 }
 0x4b3   : > { %v862_v13 = vmul.f32 1.442695, %v857_v12 }
 0x4b4   : > { %v852_v14 = vpop.xlane.xlu1 %851 }
 0x4b5   : > { %2510 = vpow2.f32 %v862_v13  ;;  %v858_v15 = vsub.f32 %v789_v56, %v852_v14 }
 0x4b7   : > { %v864_v16 = vmul.f32 1.442695, %v858_v15 }
 0x4b8   : > { %v855_v17 = vpop.xlane.xlu0 %854  ;;  %v893_v19 = vpop.permute.xlu1 %892 }
 0x4b9   : > { %2512 = vpow2.f32 %v864_v16  ;;  %v859_v20 = vsub.f32 %v838_v61, %v855_v17  ;;  %v899_v22 = vsel %vm897_vm5, %v893_v19, 0  ;;  %v2981_v19 = vld [vmem:[%s3241_s4] ss:$0 sm:$0xff] }
 0x4ba   : > { %2297 = vmatpush3.bf16.msra.mxu1 %v899_v22 }
 0x4bb   : > { %v866_v23 = vmul.f32 1.442695, %v859_v20  ;;  %2308 = vmatprep.subr.bf16.mxu1 %v2655_v8 }
 0x4bd   : > { %2514 = vpow2.f32 %v866_v23 }
 0x4bf   : > { %v2511_v24 = vpop.eup %2510 }
 0x4c0   : > { %v871_v26 = vsel %vm650_vm4, %v2511_v24, 0.0 }
 0x4c1   : > { %872 = vadd.xlane.f32.xlu0 %v871_v26 }
 0x4c3   : > { %v2513_v27 = vpop.eup %2512 }
 0x4c4   : > { %v874_v28 = vsel %vm650_vm4, %v2513_v27, 0.0 }
 0x4c5   : > { %875 = vadd.xlane.f32.xlu1 %v874_v28 }
 0x4c7   : > { %v2515_v29 = vpop.eup %2514 }
 0x4c8   : > { %v877_v30 = vsel %vm650_vm4, %v2515_v29, 0.0 }
 0x4c9   : > { %878 = vadd.xlane.f32.xlu0 %v877_v30 }
 0x4d6   : > { %989 = vrot.lane.b32.xlu1 %v2889_v35, %s2661_s24 }
 0x4da   : > { %1037 = vrot.lane.b32.xlu1 %v2893_v38, %s2661_s24 }
 0x4df   : > { %941 = vrot.lane.b32.xlu0 %v2885_v33, %s2661_s24 }
 0x4e9   : > { %v870_v31 = vpop.xlane.xlu1 %869 }
 0x4ea   : > { %2516 = vrcp.f32 %v870_v31 }
 0x4f4   : > { %v2517_v32 = vpop.eup %2516 }
 0x4f5   : > { %v884_v34 = vmul.f32 %v2517_v32, %v2509_v6 }
 0x4f7   : > { %v888_v36 = vpack.c.bf16 %v884_v34, %v884_v34 }
 0x4f9   : > { %2299 = vmatmul.mubr.msk.bf16.vlgmr.msra.gmra.mrb[12].mxu1 %vm650_vm4, %v888_v36  ;;  %v2991_v36 = vld [vmem:[#allocation2] sm:$0xff]  }
 0x4fa   : > { %2310 = vmatprep.mubr.msk.bf16.mxu1 %vm2656_vm1, %v2655_v8 }
 0x54e   : > { %v873_v37 = vpop.xlane.xlu0 %872 }
 0x54f   : > { %2518 = vrcp.f32 %v873_v37  ;;  %v2994_v37 = vld [vmem:[#allocation2 + $0x8] sm:$0xff]  }
 0x552   : > { %v876_v39 = vpop.xlane.xlu1 %875 }
 0x553   : > { %2520 = vrcp.f32 %v876_v39  ;;  %v3008_v39 = vld [vmem:[%s3244_s7 + $0x8] sm:$0xff]  }
 0x556   : > { %v879_v35 = vpop.xlane.xlu0 %878  ;;  %v990_v40 = vpop.permute.xlu1 %989 }
 0x557   : > { %2522 = vrcp.f32 %v879_v35  ;;  %v995_v38 = vsel %vm897_vm5, %v990_v40, 0 }
 0x558   : > { %2309 = vmatpush3.bf16.msra.mxu1 %v995_v38 }
 0x559   : > { %v2519_v33 = vpop.eup %2518  ;;  %2320 = vmatprep.subr.bf16.mxu1 %v2655_v8 }
 0x55a   : > { %v885_v41 = vmul.f32 %v2519_v33, %v2511_v24  ;;  %v942_v42 = vpop.permute.xlu0 %941  ;;  %v1038_v44 = vpop.permute.xlu1 %1037 }
 0x55b   : > { %v947_v43 = vsel %vm897_vm5, %v942_v42, 0  ;;  %v1043_v48 = vsel %vm897_vm5, %v1038_v44, 0 }
 0x55c   : > { %2303 = vmatpush3.bf16.msra.mxu0 %v947_v43  ;;  %v889_v45 = vpack.c.bf16 %v885_v41, %v885_v41 }
 0x55d   : > { %v2521_v46 = vpop.eup %2520  ;;  %2314 = vmatprep.subr.bf16.mxu0 %v2655_v8 }
 0x55e   : > { %v886_v47 = vmul.f32 %v2521_v46, %v2513_v27 }
 0x55f   : > { %2305 = vmatmul.mubr.msk.bf16.vlgmr.msra.gmra.mrb[8].mxu0 %vm650_vm4, %v889_v45  ;;  %v3016_v45 = vld [vmem:[%s3248_s11] ss:$0 sm:$0xff] }
 0x560   : > { %2315 = vmatpush3.bf16.msra.mxu0 %v1043_v48  ;;  %v890_v49 = vpack.c.bf16 %v886_v47, %v886_v47  ;;  %2316 = vmatprep.mubr.msk.bf16.mxu0 %vm2656_vm1, %v2655_v8  ;;  %v3022_v48 = vld [vmem:[%s3249_s12] ss:$0 sm:$0xff] }
 0x561   : > { %v2523_v50 = vpop.eup %2522  ;;  %2328 = vmatprep.subr.bf16.mxu0 %v2655_v8 }
 0x562   : > { %v887_v51 = vmul.f32 %v2523_v50, %v2515_v29  ;;  %2311 = vmatmul.mubr.msk.bf16.vlgmr.msra.gmra.mrb[16].mxu1 %vm650_vm4, %v890_v49 }
 0x563   : > { %2324 = vmatprep.mubr.msk.bf16.mxu1 %vm2656_vm1, %v2655_v8  ;;  %2321 = vmatpush3.bf16.msra.mxu1 %v2958_v57 }
 0x564   : > { %v891_v52 = vpack.c.bf16 %v887_v51, %v887_v51  ;;  %2322 = vmatprep.subr.bf16.mxu1 %v2655_v8 }
 0x567   : > { %2317 = vmatmul.mubr.msk.bf16.vlgmr.msra.gmra.mrb[12].mxu0 %vm650_vm4, %v891_v52  ;;  %2323 = vmatpush3.bf16.msra.mxu1 %v2965_v58  ;;  %v3035_v52 = vld [vmem:[%s3244_s7 + $0x10] sm:$0xff]  }
 0x568   : > { %2332 = vmatprep.mubr.msk.bf16.mxu0 %vm2656_vm1, %v2655_v8  ;;  %2336 = vmatprep.subr.bf16.mxu1 %v2655_v8 }
 0x569   : > { %2329 = vmatpush3.bf16.msra.mxu0 %v2991_v36 }
 0x56a   : > { %2330 = vmatprep.subr.bf16.mxu0 %v2655_v8 }
 0x56d   : > { %2331 = vmatpush3.bf16.msra.mxu0 %v2994_v37 }
 0x56e   : > { %2348 = vmatprep.subr.bf16.mxu0 %v2655_v8 }
 0x5cc   : > { %v935_v53 = vpop.f32.mrb[12].mxu1 }
 0x5cd   : > { %v2300_v54 = vpop.f32.mrb[13].mxu1 }
 0x5ce   : > { %v938_v55 = vpop.f32.mrb[14].mxu1 }
 0x5cf   : > { %v2301_v56 = vpop.f32.mrb[15].mxu1 }
 0x632   : > { %v983_v59 = vpop.f32.mrb[8].mxu0 }
 0x633   : > { %1086 = vrot.lane.b32.xlu0 %v983_v59, %s3262_s29  ;;  %v2306_v60 = vpop.f32.mrb[9].mxu0 }
 0x634   : > { %v986_v61 = vpop.f32.mrb[10].mxu0 }
 0x635   : > { %v2307_v62 = vpop.f32.mrb[11].mxu0  ;;  %v1031_v63 = vpop.f32.mrb[16].mxu1 }
 0x636   : > { %1090 = vrot.lane.b32.xlu1 %v1031_v63, %s3263_s23  ;;  %v2312_v1 = vpop.f32.mrb[17].mxu1  ;;  %v3058_v62 = vld [vmem:[%s3245_s8] ss:$0 sm:$0xff] }
 0x637   : > { %v1034_v2 = vpop.f32.mrb[18].mxu1 }
 0x638   : > { %v2313_v3 = vpop.f32.mrb[19].mxu1 }
 0x63a   : > { %v1079_v4 = vpop.f32.mrb[12].mxu0 }
 0x63b   : > { %1094 = vrot.lane.b32.xlu0 %v1079_v4, %s3261_s25  ;;  %v2318_v5 = vpop.f32.mrb[13].mxu0  ;;  %s2201_s25 = sshll.u32 %s2767_s22, 7  ;;  %s2665_s22 = smov [#allocation5]  }
 0x63c   : > { %v1082_v6 = vpop.f32.mrb[14].mxu0  ;;  %s3194_s0 = scalar_lea.hbm %s3252_s15, %s2201_s25 }
 0x63d   : > { %v2319_v10 = vpop.f32.mrb[15].mxu0 }
 0x6a5   : > { %v1087_v11 = vpop.permute.xlu0 %1086 }
 0x6a6   : > { %v1097_v13 = vsel %vm650_vm4, %v935_v53, %v1087_v11 }
 0x6a8   : > { %v1091_v12 = vpop.permute.xlu1 %1090 }
 0x6a9   : > { %v1099_v14 = vsel %vm1098_vm6, %v1097_v13, %v1091_v12 }
 0x6ad   : > { %v1095_v15 = vpop.permute.xlu0 %1094 }
 0x6ae   : > { %v1101_v16 = vsel %vm1100_vm7, %v1099_v14, %v1095_v15 }
 0x6af   : > { %v1102_v17 = vpack.c.bf16 %v1101_v16, %v1101_v16 }
 0x6b1   : > { %2325 = vmatmul.mubr.msk.bf16.vlgmr.msra.gmra.mrb[20].mxu1 %vm535_vm0, %v1102_v17 }
 0x6b2   : > { %2344 = vmatprep.mubr.msk.bf16.mxu1 %vm2656_vm1, %v2655_v8 }
 0x784   : > { %v1158_v20 = vpop.f32.mrb[20].mxu1 }
 0x785   : > { %v1159_v22 = vadd.f32 %v2981_v19, %v1158_v20  ;;  %v2326_v23 = vpop.f32.mrb[21].mxu1 }
 0x786   : > { %v1161_v24 = vpop.f32.mrb[22].mxu1 }
 0x787   : > { %v2985_v26 = vadd.f32 %v1159_v22, %v2834_v0  ;;  %v2327_v27 = vpop.f32.mrb[23].mxu1  ;;  %v3002_v0 = vld [vmem:[%s3244_s7] sm:$0xff]  }
 0x788   : > { %2337 = vmatpush3.bf16.msra.mxu1 %v3002_v0 }
 0x789   : > { %v1165_v28 = vsel %vm535_vm0, %v2985_v26, 0.0  ;;  %2338 = vmatprep.subr.bf16.mxu1 %v2655_v8 }
 0x78a   : > { %1166 = vadd.xlane.f32.xlu1 %v1165_v28 }
 0x78c   : > { %2339 = vmatpush3.bf16.msra.mxu1 %v3008_v39 }
 0x78d   : > { %2340 = vmatprep.subr.bf16.mxu1 %v2655_v8 }
 0x790   : > { %2341 = vmatpush3.bf16.msra.mxu1 %v3035_v52 }
 0x791   : > { %2342 = vmatprep.subr.bf16.mxu1 %v2655_v8 }
 0x817   : > { %v1167_v29 = vpop.xlane.xlu1 %1166 }
 0x818   : > { %v1168_v30 = vmul.f32 0.03125, %v1167_v29 }
 0x81a   : > { %v1169_v31 = vsub.f32 %v2985_v26, %v1168_v30 }
 0x81c   : > { %v1170_v32 = vmul.f32 %v1169_v31, %v1169_v31  ;;  %v1190_v46 = vmul.f32 %v3016_v45, %v1169_v31 }
 0x81e   : > { %v1171_v34 = vsel %vm535_vm0, %v1170_v32, 0.0 }
 0x81f   : > { %1172 = vadd.xlane.f32.xlu0 %v1171_v34 }
 0x8ac   : > { %v1173_v35 = vpop.xlane.xlu0 %1172 }
 0x8ad   : > { %v1174_v40 = vmul.f32 0.032258064, %v1173_v35 }
 0x8af   : > { %2524 = vrsqrt.f32 %v1174_v40  ;;  %vm1177_vm8 = vcmp.eq.f32.partialorder %v1174_v40, inf  ;;  %v1180_v41 = vand.u32 2147483648, %v1174_v40  ;;  %vm1179_vm9 = vcmp.eq.f32.partialorder %v1174_v40, 0.0 }
 0x8b9   : > { %v2525_v38 = vpop.eup %2524 }
 0x8ba   : > { %v1176_v33 = vmul.f32 %v2525_v38, %v1174_v40 }
 0x8bc   : > { %v1178_v42 = vsel %vm1177_vm8, %v1174_v40, %v1176_v33 }
 0x8bd   : > { %v1181_v43 = vsel %vm1179_vm9, %v1180_v41, %v1178_v42 }
 0x8be   : > { %v1182_v44 = vadd.f32 1e-06, %v1181_v43 }
 0x8c0   : > { %2526 = vrcp.f32 %v1182_v44 }
 0x8ca   : > { %v2527_v47 = vpop.eup %2526 }
 0x8cb   : > { %v1191_v49 = vmul.f32 %v2527_v47, %v1190_v46 }
 0x8cd   : > { %v1198_v50 = vadd.f32 %v3022_v48, %v1191_v49 }
 0x8cf   : > { %v1199_v51 = vpack.c.bf16 %v1198_v50, %v1198_v50 }
 0x8d1   : > { %2333 = vmatmul.mubr.msk.bf16.vlgmr.msra.gmra.mrb[16].mxu0 %vm535_vm0, %v1199_v51 }
 0x8d2   : > { %2349 = vmatpush3.bf16.msra.mxu0 %v2843_v7  ;;  %2352 = vmatprep.mubr.msk.bf16.mxu0 %vm2656_vm1, %v2655_v8  ;;  %v3042_v7 = vld [vmem:[%s3244_s7 + $0x18] sm:$0xff]  }
 0x8d3   : > { %2350 = vmatprep.subr.bf16.mxu0 %v2655_v8  ;;  %2343 = vmatpush3.bf16.msra.mxu1 %v3042_v7 }
 0x8d4   : > { %2362 = vmatprep.subr.bf16.mxu1 %v2655_v8 }
 0x8d6   : > { %2351 = vmatpush3.bf16.msra.mxu0 %v2852_v9  ;;  %v3049_v9 = vld [vmem:[%s3243_s6] ss:$0 sm:$0xff] }
 0x8d7   : > { %2356 = vmatprep.subr.bf16.mxu0 %v2655_v8 }
 0x9a4   : > { %v1255_v53 = vpop.f32.mrb[16].mxu0 }
 0x9a5   : > { %v1256_v54 = vadd.f32 %v3049_v9, %v1255_v53  ;;  %v2334_v55 = vpop.f32.mrb[17].mxu0 }
 0x9a6   : > { %v1258_v56 = vpop.f32.mrb[18].mxu0 }
 0x9a7   : > { %v1261_v59 = vmax.f32 %v1256_v54, 0.0  ;;  %v2335_v60 = vpop.f32.mrb[19].mxu0 }
 0x9a9   : > { %v1262_v61 = vpack.c.bf16 %v1261_v59, %v1261_v59 }
 0x9ab   : > { %2345 = vmatmul.mubr.msk.bf16.vlgmr.msra.gmra.mrb[24].mxu1 %vm1293_vm10, %v1262_v61 }
 0x9ac   : > { %2364 = vmatprep.mubr.msk.bf16.mxu1 %vm2656_vm1, %v2655_v8 }
 0xa7e   : > { %v1331_v63 = vpop.f32.mrb[24].mxu1 }
 0xa7f   : > { %v1332_v1 = vadd.f32 %v3058_v62, %v1331_v63  ;;  %v2346_v2 = vpop.f32.mrb[25].mxu1 }
 0xa80   : > { %v1334_v3 = vpop.f32.mrb[26].mxu1 }
 0xa81   : > { %v3062_v4 = vadd.f32 %v1332_v1, %v2985_v26  ;;  %v2347_v5 = vpop.f32.mrb[27].mxu1 }
 0xa83   : > { %v1338_v6 = vsel %vm535_vm0, %v3062_v4, 0.0 }
 0xa84   : > { %1339 = vadd.xlane.f32.xlu0 %v1338_v6 }
 0xb11   : > { %v1340_v10 = vpop.xlane.xlu0 %1339 }
 0xb12   : > { %v1341_v11 = vmul.f32 0.03125, %v1340_v10 }
 0xb14   : > { %v1342_v12 = vsub.f32 %v3062_v4, %v1341_v11 }
 0xb16   : > { %v1343_v13 = vmul.f32 %v1342_v12, %v1342_v12  ;;  %v1357_v27 = vmul.f32 %v2863_v18, %v1342_v12 }
 0xb18   : > { %v1344_v14 = vsel %vm535_vm0, %v1343_v13, 0.0 }
 0xb19   : > { %1345 = vadd.xlane.f32.xlu1 %v1344_v14 }
 0xba6   : > { %v1346_v15 = vpop.xlane.xlu1 %1345 }
 0xba7   : > { %v1347_v16 = vmul.f32 0.032258064, %v1346_v15 }
 0xba9   : > { %2528 = vrsqrt.f32 %v1347_v16  ;;  %vm1350_vm11 = vcmp.eq.f32.partialorder %v1347_v16, inf  ;;  %v1353_v22 = vand.u32 2147483648, %v1347_v16  ;;  %vm1352_vm12 = vcmp.eq.f32.partialorder %v1347_v16, 0.0 }
 0xbb3   : > { %v2529_v17 = vpop.eup %2528 }
 0xbb4   : > { %v1349_v20 = vmul.f32 %v2529_v17, %v1347_v16 }
 0xbb6   : > { %v1351_v23 = vsel %vm1350_vm11, %v1347_v16, %v1349_v20 }
 0xbb7   : > { %v1354_v24 = vsel %vm1352_vm12, %v1353_v22, %v1351_v23 }
 0xbb8   : > { %v1355_v26 = vadd.f32 1e-06, %v1354_v24 }
 0xbba   : > { %2530 = vrcp.f32 %v1355_v26 }
 0xbc4   : > { %v2531_v28 = vpop.eup %2530 }
 0xbc5   : > { %v1358_v29 = vmul.f32 %v2531_v28, %v1357_v27 }
 0xbc7   : > { %v1359_v30 = vadd.f32 %v2869_v21, %v1358_v29 }
 0xbc9   : > { %v1360_v31 = vpack.c.bf16 %v1359_v30, %v1359_v30 }
 0xbcb   : > { %2353 = vmatmul.mubr.msk.bf16.vlgmr.msra.gmra.mrb[20].mxu0 %vm535_vm0, %v1360_v31 }
 0xbcc   : > { %2358 = vmatprep.mubr.msk.bf16.mxu0 %vm2656_vm1, %v2655_v8 }
 0xc9e   : > { %v1398_v32 = vpop.f32.mrb[20].mxu0 }
 0xc9f   : > { %v1399_v34 = vadd.f32 %v2878_v25, %v1398_v32  ;;  %v2354_v35 = vpop.f32.mrb[21].mxu0 }
 0xca0   : > { %v1401_v40 = vpop.f32.mrb[22].mxu0 }
 0xca1   : > { %1408 = vrot.lane.b32.xlu1 %v1399_v34, %s2659_s17  ;;  %1405 = vrot.lane.b32.xlu0 %v1399_v34, %s2658_s30  ;;  %v2355_v18 = vpop.f32.mrb[23].mxu0  ;;  %v1414_v38 = vpack.c.bf16 %v1399_v34, %v1399_v34  ;;  %s3279_s30 = smov 8   ;;  %s3280_s17 = smov 24  }
 0xca5   : > { %1411 = vrot.lane.b32.xlu1 %v1399_v34, %s2657_s16  ;;  %1419 = vrot.lane.b32.xlu0 %v1414_v38, %s2660_s20  ;;  %s3278_s16 = smov 16  }
 0xd13   : > { %v1409_v21 = vpop.permute.xlu1 %1408  ;;  %v1406_v33 = vpop.permute.xlu0 %1405 }
 0xd14   : > { %v3078_v41 = vpack.c.bf16 %v1409_v21, %v1409_v21  ;;  %v3080_v42 = vpack.c.bf16 %v1406_v33, %v1406_v33 }
 0xd16   : > { %1468 = vrot.lane.b32.xlu1 %v3080_v42, %s2660_s20  ;;  %1517 = vrot.lane.b32.xlu0 %v3078_v41, %s2660_s20 }
 0xd17   : > { %v1412_v25 = vpop.permute.xlu1 %1411  ;;  %v1420_v43 = vpop.permute.xlu0 %1419 }
 0xd18   : > { %v3086_v44 = vpack.c.bf16 %v1412_v25, %v1412_v25  ;;  %v1425_v46 = vsel %vm650_vm4, %v1420_v43, 0 }
 0xd19   : > { %2357 = vmatpush3.bf16.xpose.msra.mxu0 %v1425_v46 }
 0xd1a   : > { %1566 = vrot.lane.b32.xlu1 %v3086_v44, %s2660_s20  ;;  %2368 = vmatprep.subr.bf16.mxu0 %v2655_v8  ;;  %s498_s20 = sand.u32 1, %s2642_s19  }
 0xd1b   : > { %s2064_s29 = scalar_lea.sflag [#allocation4], %s498_s20 }
 0xd20   : > { %2359 = vmatmul.mubr.msk.bf16.vlgmr.msra.gmra.mrb[24].mxu0 %vm650_vm4, %v1414_v38 }
 0xd21   : > { %2370 = vmatprep.mubr.msk.bf16.mxu0 %vm2656_vm1, %v2655_v8 }
 0xd88   : > { %v1469_v47 = vpop.permute.xlu1 %1468  ;;  %v1518_v49 = vpop.permute.xlu0 %1517 }
 0xd89   : > { %v1474_v50 = vsel %vm650_vm4, %v1469_v47, 0  ;;  %v1523_v51 = vsel %vm650_vm4, %v1518_v49, 0 }
 0xd8a   : > { %2363 = vmatpush3.bf16.xpose.msra.mxu1 %v1474_v50  ;;  %2369 = vmatpush3.bf16.xpose.msra.mxu0 %v1523_v51 }
 0xd8b   : > { %2374 = vmatprep.subr.bf16.mxu1 %v2655_v8  ;;  %2380 = vmatprep.subr.bf16.mxu0 %v2655_v8 }
 0xd8c   : > { %v1567_v53 = vpop.permute.xlu1 %1566 }
 0xd8d   : > { %v1572_v54 = vsel %vm650_vm4, %v1567_v53, 0 }
 0xd91   : > { %2365 = vmatmul.mubr.msk.bf16.vlgmr.msra.gmra.mrb[28].mxu1 %vm650_vm4, %v3080_v42  ;;  %2371 = vmatmul.mubr.msk.bf16.vlgmr.msra.gmra.mrb[28].mxu0 %vm650_vm4, %v3078_v41 }
 0xd92   : > { %2375 = vmatpush3.bf16.xpose.msra.mxu1 %v1572_v54  ;;  %2376 = vmatprep.mubr.msk.bf16.mxu1 %vm2656_vm1, %v2655_v8 }
 0xd93   : > { %2382 = vmatprep.mubr.msk.bf16.mxu0 %vm2656_vm1, %v2655_v8  ;;  %2386 = vmatprep.subr.bf16.mxu1 %v2655_v8 }
 0xd99   : > { %2377 = vmatmul.mubr.msk.bf16.vlgmr.msra.gmra.mrb[32].mxu1 %vm650_vm4, %v3086_v44 }
 0xd9a   : > { %2388 = vmatprep.mubr.msk.bf16.mxu1 %vm2656_vm1, %v2655_v8 }
 0xdf3   : > { %v1461_v55 = vpop.f32.mrb[24].mxu0 }
 0xdf4   : > { %v2360_v56 = vpop.f32.mrb[25].mxu0  ;;  %v1614_v59 = vsel %vm650_vm4, %v1461_v55, -inf }
 0xdf5   : > { %1615 = vmax.xlane.f32.xlu0 %v1614_v59  ;;  %v1464_v60 = vpop.f32.mrb[26].mxu0 }
 0xdf6   : > { %v2361_v61 = vpop.f32.mrb[27].mxu0 }
 0xe64   : > { %v1510_v63 = vpop.f32.mrb[28].mxu1  ;;  %v1559_v1 = vpop.f32.mrb[28].mxu0 }
 0xe65   : > { %v2366_v2 = vpop.f32.mrb[29].mxu1  ;;  %v2372_v3 = vpop.f32.mrb[29].mxu0  ;;  %v1620_v5 = vsel %vm650_vm4, %v1559_v1, -inf  ;;  %v1617_v6 = vsel %vm650_vm4, %v1510_v63, -inf }
 0xe66   : > { %1621 = vmax.xlane.f32.xlu0 %v1620_v5  ;;  %v1562_v10 = vpop.f32.mrb[30].mxu0  ;;  %1618 = vmax.xlane.f32.xlu1 %v1617_v6  ;;  %v1513_v11 = vpop.f32.mrb[30].mxu1 }
 0xe67   : > { %v2367_v12 = vpop.f32.mrb[31].mxu1  ;;  %v2373_v13 = vpop.f32.mrb[31].mxu0 }
 0xe6c   : > { %v1608_v14 = vpop.f32.mrb[32].mxu1 }
 0xe6d   : > { %v2378_v15 = vpop.f32.mrb[33].mxu1  ;;  %v1623_v16 = vsel %vm650_vm4, %v1608_v14, -inf }
 0xe6e   : > { %1624 = vmax.xlane.f32.xlu0 %v1623_v16  ;;  %v1611_v17 = vpop.f32.mrb[34].mxu1 }
 0xe6f   : > { %v2379_v20 = vpop.f32.mrb[35].mxu1 }
 0xe77   : > { %1662 = vrot.lane.b32.xlu1 %v1414_v38, %s2661_s24 }
 0xe82   : > { %v1616_v22 = vpop.xlane.xlu0 %1615 }
 0xe83   : > { %v1626_v23 = vsub.f32 %v1461_v55, %v1616_v22 }
 0xe85   : > { %v1630_v24 = vmul.f32 1.442695, %v1626_v23 }
 0xe87   : > { %2532 = vpow2.f32 %v1630_v24 }
 0xe91   : > { %v2533_v26 = vpop.eup %2532 }
 0xe92   : > { %v1638_v27 = vsel %vm650_vm4, %v2533_v26, 0.0 }
 0xe9b   : > { %1639 = vadd.xlane.f32.xlu1 %v1638_v27 }
 0xef3   : > { %v1622_v28 = vpop.xlane.xlu0 %1621  ;;  %v1619_v29 = vpop.xlane.xlu1 %1618 }
 0xef4   : > { %v1628_v30 = vsub.f32 %v1559_v1, %v1622_v28  ;;  %v1627_v31 = vsub.f32 %v1510_v63, %v1619_v29 }
 0xef6   : > { %v1634_v32 = vmul.f32 1.442695, %v1628_v30  ;;  %v1632_v34 = vmul.f32 1.442695, %v1627_v31 }
 0xef7   : > { %v1663_v35 = vpop.permute.xlu1 %1662 }
 0xef8   : > { %2534 = vpow2.f32 %v1634_v32  ;;  %v1668_v40 = vsel %vm897_vm5, %v1663_v35, 0 }
 0xef9   : > { %2536 = vpow2.f32 %v1632_v34  ;;  %2381 = vmatpush3.bf16.msra.mxu0 %v1668_v40 }
 0xefa   : > { %2392 = vmatprep.subr.bf16.mxu0 %v2655_v8 }
 0xefb   : > { %v1625_v18 = vpop.xlane.xlu0 %1624 }
 0xefc   : > { %v1629_v38 = vsub.f32 %v1608_v14, %v1625_v18 }
 0xefe   : > { %v1636_v21 = vmul.f32 1.442695, %v1629_v38 }
 0xf00   : > { %2538 = vpow2.f32 %v1636_v21 }
 0xf02   : > { %v2535_v33 = vpop.eup %2534 }
 0xf03   : > { %v2537_v25 = vpop.eup %2536  ;;  %v1644_v43 = vsel %vm650_vm4, %v2535_v33, 0.0 }
 0xf04   : > { %1645 = vadd.xlane.f32.xlu1 %v1644_v43  ;;  %v1641_v46 = vsel %vm650_vm4, %v2537_v25, 0.0 }
 0xf05   : > { %1642 = vadd.xlane.f32.xlu0 %v1641_v46 }
 0xf0a   : > { %v2539_v47 = vpop.eup %2538 }
 0xf0b   : > { %v1647_v49 = vsel %vm650_vm4, %v2539_v47, 0.0 }
 0xf0c   : > { %1648 = vadd.xlane.f32.xlu0 %v1647_v49 }
 0xf15   : > { %1758 = vrot.lane.b32.xlu1 %v3078_v41, %s2661_s24 }
 0xf19   : > { %1806 = vrot.lane.b32.xlu1 %v3086_v44, %s2661_s24 }
 0xf22   : > { %1710 = vrot.lane.b32.xlu0 %v3080_v42, %s2661_s24  ;;  %s2154_s24 = sshll.u32 %s498_s20, 3 }
 0xf23   : > { %s500_s27 = scalar_lea.vmem [#allocation5], %s2154_s24  ;;  %s2588_s24 = sshll.u32 %s2665_s22, 4  ;;  %s2589_s24 = int_to_ptr.vmem [resolvable:$false] %s2588_s24 }
 0xf24   : > { %s2590_s26 = scalar_lea.vmem %s2589_s24, 256 }
 0xf28   : > { %v1640_v50 = vpop.xlane.xlu1 %1639 }
 0xf29   : > { %2540 = vrcp.f32 %v1640_v50 }
 0xf33   : > { %v2541_v51 = vpop.eup %2540 }
 0xf34   : > { %v1654_v53 = vmul.f32 %v2541_v51, %v2533_v26 }
 0xf36   : > { %v1658_v54 = vpack.c.bf16 %v1654_v53, %v1654_v53 }
 0xf38   : > { %2383 = vmatmul.mubr.msk.bf16.vlgmr.msra.gmra.mrb[32].mxu0 %vm650_vm4, %v1658_v54 }
 0xf39   : > { %2394 = vmatprep.mubr.msk.bf16.mxu0 %vm2656_vm1, %v2655_v8 }
 0xf91   : > { %v1646_v55 = vpop.xlane.xlu1 %1645 }
 0xf92   : > { %2542 = vrcp.f32 %v1646_v55  ;;  %v1643_v56 = vpop.xlane.xlu0 %1642 }
 0xf93   : > { %2544 = vrcp.f32 %v1643_v56 }
 0xf95   : > { %v1759_v41 = vpop.permute.xlu1 %1758 }
 0xf96   : > { %v1764_v44 = vsel %vm897_vm5, %v1759_v41, 0 }
 0xf97   : > { %2393 = vmatpush3.bf16.msra.mxu0 %v1764_v44 }
 0xf98   : > { %2404 = vmatprep.subr.bf16.mxu0 %v2655_v8 }
 0xf99   : > { %v1649_v42 = vpop.xlane.xlu0 %1648  ;;  %v1807_v3 = vpop.permute.xlu1 %1806 }
 0xf9a   : > { %2546 = vrcp.f32 %v1649_v42  ;;  %v1812_v10 = vsel %vm897_vm5, %v1807_v3, 0 }
 0xf9c   : > { %v2543_v59 = vpop.eup %2542 }
 0xf9d   : > { %v2545_v60 = vpop.eup %2544  ;;  %v1656_v61 = vmul.f32 %v2543_v59, %v2535_v33  ;;  %v1711_v63 = vpop.permute.xlu0 %1710 }
 0xf9e   : > { %v1655_v1 = vmul.f32 %v2545_v60, %v2537_v25  ;;  %v1716_v2 = vsel %vm897_vm5, %v1711_v63, 0 }
 0xf9f   : > { %2387 = vmatpush3.bf16.msra.mxu1 %v1716_v2  ;;  %v1660_v5 = vpack.c.bf16 %v1656_v61, %v1656_v61 }
 0xfa0   : > { %v1659_v6 = vpack.c.bf16 %v1655_v1, %v1655_v1  ;;  %2398 = vmatprep.subr.bf16.mxu1 %v2655_v8 }
 0xfa1   : > { %2395 = vmatmul.mubr.msk.bf16.vlgmr.msra.gmra.mrb[36].mxu0 %vm650_vm4, %v1660_v5 }
 0xfa2   : > { %2389 = vmatmul.mubr.msk.bf16.vlgmr.msra.gmra.mrb[36].mxu1 %vm650_vm4, %v1659_v6  ;;  %2405 = vmatpush3.bf16.msra.mxu0 %v2958_v57 }
 0xfa3   : > { %2399 = vmatpush3.bf16.msra.mxu1 %v1812_v10  ;;  %2400 = vmatprep.mubr.msk.bf16.mxu1 %vm2656_vm1, %v2655_v8 }
 0xfa4   : > { %v2547_v11 = vpop.eup %2546  ;;  %2406 = vmatprep.subr.bf16.mxu0 %v2655_v8  ;;  %2408 = vmatprep.mubr.msk.bf16.mxu0 %vm2656_vm1, %v2655_v8 }
 0xfa5   : > { %v1657_v12 = vmul.f32 %v2547_v11, %v2539_v47  ;;  %2412 = vmatprep.subr.bf16.mxu1 %v2655_v8 }
 0xfa6   : > { %2407 = vmatpush3.bf16.msra.mxu0 %v2965_v58 }
 0xfa7   : > { %v1661_v13 = vpack.c.bf16 %v1657_v12, %v1657_v12  ;;  %2420 = vmatprep.subr.bf16.mxu0 %v2655_v8 }
 0xfaa   : > { %2401 = vmatmul.mubr.msk.bf16.vlgmr.msra.gmra.mrb[40].mxu1 %vm650_vm4, %v1661_v13 }
 0xfab   : > { %2413 = vmatpush3.bf16.msra.mxu1 %v2991_v36  ;;  %2416 = vmatprep.mubr.msk.bf16.mxu1 %vm2656_vm1, %v2655_v8 }
 0xfac   : > { %2414 = vmatprep.subr.bf16.mxu1 %v2655_v8 }
 0xfaf   : > { %2415 = vmatpush3.bf16.msra.mxu1 %v2994_v37 }
0x100b   : > { %v1704_v57 = vpop.f32.mrb[32].mxu0 }
0x100c   : > { %v2384_v14 = vpop.f32.mrb[33].mxu0 }
0x100d   : > { %v1707_v15 = vpop.f32.mrb[34].mxu0 }
0x100e   : > { %v2385_v16 = vpop.f32.mrb[35].mxu0 }
0x1074   : > { %v1800_v17 = vpop.f32.mrb[36].mxu0 }
0x1075   : > { %1859 = vrot.lane.b32.xlu1 %v1800_v17, %s3278_s16  ;;  %v1752_v58 = vpop.f32.mrb[36].mxu1  ;;  %v2396_v20 = vpop.f32.mrb[37].mxu0  ;;  %s2077_s16 = sshll.u32 %s500_s27, 4  ;;  %s3196_s16 = int_to_ptr.vmem [resolvable:$true] %s2077_s16 }
0x1076   : > { %v1803_v22 = vpop.f32.mrb[38].mxu0  ;;  %1855 = vrot.lane.b32.xlu0 %v1752_v58, %s3279_s30  ;;  %v2390_v36 = vpop.f32.mrb[37].mxu1  ;;  %s2584_s23 = scalar_lea.vmem %s3196_s16, 128  ;;  %p2591_p2 = scmp.lt.s32.totalorder %s3196_s16, %s2589_s24 }
0x1077   : > { %v1755_v23 = vpop.f32.mrb[38].mxu1  ;;  %v2397_v24 = vpop.f32.mrb[39].mxu0  ;;  %p2585_p6 = scmp.ne.s32.totalorder %s3196_s16, %s2584_s23  ;;  %p2592_p3 = scmp.lt.s32.totalorder %s2590_s26, %s2584_s23 }
0x1078   : > { %v2391_v26 = vpop.f32.mrb[39].mxu1 }
0x1079   : > { %v2198_v26 = vld [vmem:[%s3250_s13] ss:$0 sm:$0xff]  ;;  %p2586_p10 = pnand %p2585_p6, %p3281_p9  ;;  %p2593_p4 = por %p2592_p3, %p2591_p2 }
0x107b   : > { %p2587_p12 = pneg %p2586_p10 }
0x107d   : > { %v1848_v27 = vpop.f32.mrb[40].mxu1  ;;  %p2594_p7 = pnand %p2593_p4, %p2587_p12 }
0x107e   : > { %1863 = vrot.lane.b32.xlu0 %v1848_v27, %s3280_s17  ;;  %v2402_v37 = vpop.f32.mrb[41].mxu1 }
0x107f   : > { %v1851_v28 = vpop.f32.mrb[42].mxu1 }
0x1080   : > { %v2403_v29 = vpop.f32.mrb[43].mxu1  ;;  %v2199_v28 = vld [vmem:[%s3251_s14] ss:$0 sm:$0xff] }
0x10e7   : > { %v1860_v32 = vpop.permute.xlu1 %1859 }
0x10e8   : > { %v1856_v30 = vpop.permute.xlu0 %1855 }
0x10e9   : > { %v1866_v31 = vsel %vm650_vm4, %v1704_v57, %v1856_v30 }
0x10ea   : > { %v1867_v34 = vsel %vm1098_vm6, %v1866_v31, %v1860_v32 }
0x10f0   : > { %v1864_v35 = vpop.permute.xlu0 %1863 }
0x10f1   : > { %v1868_v40 = vsel %vm1100_vm7, %v1867_v34, %v1864_v35 }
0x10f2   : > { %v1869_v18 = vpack.c.bf16 %v1868_v40, %v1868_v40 }
0x10f4   : > { %2409 = vmatmul.mubr.msk.bf16.vlgmr.msra.gmra.mrb[40].mxu0 %vm535_vm0, %v1869_v18 }
0x10f5   : > { %2421 = vmatpush3.bf16.msra.mxu0 %v3002_v0  ;;  %2428 = vmatprep.mubr.msk.bf16.mxu0 %vm2656_vm1, %v2655_v8 }
0x10f6   : > { %2422 = vmatprep.subr.bf16.mxu0 %v2655_v8 }
0x10f9   : > { %2423 = vmatpush3.bf16.msra.mxu0 %v3008_v39 }
0x10fa   : > { %2424 = vmatprep.subr.bf16.mxu0 %v2655_v8 }
0x10fd   : > { %2425 = vmatpush3.bf16.msra.mxu0 %v3035_v52 }
0x10fe   : > { %2426 = vmatprep.subr.bf16.mxu0 %v2655_v8 }
0x1101   : > { %2427 = vmatpush3.bf16.msra.mxu0 %v3042_v7 }
0x11c7   : > { %v1907_v38 = vpop.f32.mrb[40].mxu0 }
0x11c8   : > { %v1908_v21 = vadd.f32 %v2981_v19, %v1907_v38  ;;  %v2410_v33 = vpop.f32.mrb[41].mxu0 }
0x11c9   : > { %v1910_v0 = vpop.f32.mrb[42].mxu0 }
0x11ca   : > { %v1913_v25 = vadd.f32 %v1908_v21, %v3062_v4  ;;  %v2411_v43 = vpop.f32.mrb[43].mxu0 }
0x11cc   : > { %v1914_v46 = vsel %vm535_vm0, %v1913_v25, 0.0 }
0x11cd   : > { %1915 = vadd.xlane.f32.xlu1 %v1914_v46 }
0x125a   : > { %v1916_v39 = vpop.xlane.xlu1 %1915 }
0x125b   : > { %v1917_v47 = vmul.f32 0.03125, %v1916_v39 }
0x125d   : > { %v1918_v49 = vsub.f32 %v1913_v25, %v1917_v47 }
0x125f   : > { %v1919_v50 = vmul.f32 %v1918_v49, %v1918_v49  ;;  %v1933_v56 = vmul.f32 %v3016_v45, %v1918_v49 }
0x1261   : > { %v1920_v52 = vsel %vm535_vm0, %v1919_v50, 0.0 }
0x1262   : > { %1921 = vadd.xlane.f32.xlu0 %v1920_v52 }
0x12ef   : > { %v1922_v8 = vpop.xlane.xlu0 %1921 }
0x12f0   : > { %v1923_v7 = vmul.f32 0.032258064, %v1922_v8 }
0x12f2   : > { %2548 = vrsqrt.f32 %v1923_v7  ;;  %vm1926_vm13 = vcmp.eq.f32.partialorder %v1923_v7, inf  ;;  %v1929_v53 = vand.u32 2147483648, %v1923_v7  ;;  %vm1928_vm14 = vcmp.eq.f32.partialorder %v1923_v7, 0.0 }
0x12fc   : > { %v2549_v51 = vpop.eup %2548 }
0x12fd   : > { %v1925_v19 = vmul.f32 %v2549_v51, %v1923_v7 }
0x12ff   : > { %v1927_v54 = vsel %vm1926_vm13, %v1923_v7, %v1925_v19 }
0x1300   : > { %v1930_v4 = vsel %vm1928_vm14, %v1929_v53, %v1927_v54 }
0x1301   : > { %v1931_v55 = vadd.f32 1e-06, %v1930_v4 }
0x1303   : > { %2550 = vrcp.f32 %v1931_v55 }
0x130d   : > { %v2551_v41 = vpop.eup %2550 }
0x130e   : > { %v1934_v44 = vmul.f32 %v2551_v41, %v1933_v56 }
0x1310   : > { %v1935_v42 = vadd.f32 %v3022_v48, %v1934_v44 }
0x1312   : > { %v1936_v59 = vpack.c.bf16 %v1935_v42, %v1935_v42 }
0x1314   : > { %2417 = vmatmul.mubr.msk.bf16.vlgmr.msra.gmra.mrb[44].mxu1 %vm535_vm0, %v1936_v59 }
0x13e7   : > { %v1974_v60 = vpop.f32.mrb[44].mxu1 }
0x13e8   : > { %v1975_v61 = vadd.f32 %v3049_v9, %v1974_v60  ;;  %v2418_v63 = vpop.f32.mrb[45].mxu1 }
0x13e9   : > { %v1977_v1 = vpop.f32.mrb[46].mxu1 }
0x13ea   : > { %v1980_v2 = vmax.f32 %v1975_v61, 0.0  ;;  %v2419_v3 = vpop.f32.mrb[47].mxu1 }
0x13ec   : > { %v1981_v5 = vpack.c.bf16 %v1980_v2, %v1980_v2 }
0x13ee   : > { %2429 = vmatmul.mubr.msk.bf16.vlgmr.msra.gmra.mrb[44].mxu0 %vm1293_vm10, %v1981_v5 }
0x14c1   : > { %v2019_v6 = vpop.f32.mrb[44].mxu0 }
0x14c2   : > { %v2020_v45 = vadd.f32 %v3058_v62, %v2019_v6  ;;  %v2430_v10 = vpop.f32.mrb[45].mxu0 }
0x14c3   : > { %v2022_v11 = vpop.f32.mrb[46].mxu0 }
0x14c4   : > { %v2431_v12 = vpop.f32.mrb[47].mxu0  ;;  %v2025_v48 = vadd.f32 %v2020_v45, %v1913_v25 }
0x14c6   : > { %v2028_v13 = vsel %vm535_vm0, %v2025_v48, 0.0 }
0x14c7   : > { %2029 = vadd.xlane.f32.xlu0 %v2028_v13 }
0x1554   : > { %v2030_v57 = vpop.xlane.xlu0 %2029 }
0x1555   : > { %v2031_v14 = vmul.f32 0.03125, %v2030_v57 }
0x1557   : > { %v2032_v9 = vsub.f32 %v2025_v48, %v2031_v14 }
0x1559   : > { %v2033_v15 = vmul.f32 %v2032_v9, %v2032_v9  ;;  %v2053_v27 = vmul.f32 %v2198_v26, %v2032_v9 }
0x155b   : > { %v2034_v16 = vsel %vm535_vm0, %v2033_v15, 0.0 }
0x155c   : > { %2035 = vadd.xlane.f32.xlu1 %v2034_v16 }
0x15e9   : > { %v2036_v17 = vpop.xlane.xlu1 %2035 }
0x15ea   : > { %v2037_v58 = vmul.f32 0.032258064, %v2036_v17 }
0x15ec   : > { %2552 = vrsqrt.f32 %v2037_v58  ;;  %vm2040_vm15 = vcmp.eq.f32.partialorder %v2037_v58, inf  ;;  %v2043_v22 = vand.u32 2147483648, %v2037_v58  ;;  %vm2042_vm1 = vcmp.eq.f32.partialorder %v2037_v58, 0.0 }
0x15f6   : > { %v2553_v62 = vpop.eup %2552 }
0x15f7   : > { %v2039_v20 = vmul.f32 %v2553_v62, %v2037_v58 }
0x15f9   : > { %v2041_v36 = vsel %vm2040_vm15, %v2037_v58, %v2039_v20 }
0x15fa   : > { %v2044_v23 = vsel %vm2042_vm1, %v2043_v22, %v2041_v36 }
0x15fb   : > { %v2045_v24 = vadd.f32 1e-06, %v2044_v23 }
0x15fd   : > { %2554 = vrcp.f32 %v2045_v24 }
0x1607   : > { %v2555_v37 = vpop.eup %2554 }
0x1608   : > { %v2054_v29 = vmul.f32 %v2555_v37, %v2053_v27 }
0x160a   : > { %v2061_v30 = vadd.f32 %v2199_v28, %v2054_v29 }
0x160c   : > { %2062 = vst.msk [vmem:[%s500_s27] sm:$0xff] %vm535_vm0, %v2061_v30 }
0x160d   : > { %2597 = shalt.err (!%p2594_p7)
}
0x160e   : > { %s2598_s20 = scalar_lea.hbm %s3194_s0, 128  ;;  %s2602_s27 = scalar_lea.hbm %s3252_s15, 256 }
0x160f   : > { %p2599_p8 = scmp.ne.s32.totalorder %s3194_s0, %s2598_s20  ;;  %p2603_p1 = scmp.lt.u32.totalorder %s3194_s0, %s3252_s15 }
0x1610   : > { %p2604_p0 = scmp.lt.u32.totalorder %s2602_s27, %s2598_s20  ;;  %p2606_p6 = scmp.lt.u32.totalorder %s2598_s20, %s3194_s0 }
0x1611   : > { %p2600_p11 = pnand %p2599_p8, %p3281_p9 }
0x1612   : > { %p2605_p5 = por %p2604_p0, %p2603_p1 }
0x1613   : > { %p2601_p13 = pneg %p2600_p11 }
0x1614   : > { %p2607_p10 = por %p2606_p6, %p2605_p5 }
0x1616   : > { %p2608_p12 = pnand %p2607_p10, %p2601_p13 }
0x1618   : > { %2611 = shalt.err (!%p2608_p12)
}
0x1619   : > { %2436 = dma.vmem_to_hbm [thread:$0]  (%p3281_p9), %s3196_s16, 128, %s3194_s0, %s2064_s29  }
0x161a PF: > { %s3282_s23 = sld [smem:[#allocation8_spill]]  ;;  %s3283_s22 = sld [smem:[#allocation12_spill]] }
0x161b   : > { %p2448_p2 = scmp.ge.s32.totalorder %s2650_s21, 2 }
0x1620   : > { %s2089_s24 = sand.u32 1, %s3282_s23   ;;  %p3284_p3 = scmp.ne.s32.totalorder %s3283_s22, 0 }
0x1621   : > { %s2090_s26 = scalar_lea.sflag [#allocation4], %s2089_s24 }
0x1622   : > { %p2443_p4 = pnand %p2448_p2, %p3284_p3 }
0x1624   : > { %2633 = dma.done.wait (!%p2443_p4), %s2090_s26, 128  }
0x1625   : > { %2635 = vsyncadd (!%p2443_p4), %s2090_s26, 4294967168  ;;  %s3285_s21 = sld [smem:[#allocation10_spill]]  ;;  %s3286_s20 = sld [smem:[#allocation9_spill]] }
0x1626   : > { %s3287_s25 = sld [smem:[#allocation11_spill]]  ;;  %s3288_s18 = smov %s2642_s19 }
0x162b   : > { %p26_p7 = scmp.ge.s32.totalorder %s3285_s21, 4   ;;  %s3289_s19 = smov %s3286_s20 }
0x162c   : > { %s3290_s20 = smov %s3287_s25 }
0x162d   :  { %28 = sbr.rel (!%p26_p7) target bundleno = 6 (0x6), region = 120 }
0x1634   :  { %2095 = vsyncpa [#allocation3], 1 }
0x1635   :  { %2097 = vsyncpa [#allocation3 + $0x1], 1 }
0x1636   :  { %2098 = vsyncpa [#allocation4], 1 }
0x1637   :  { %2100 = vsyncpa [#allocation4 + $0x1], 1 }

</bundles_post_ra>
